<compile_context>
chip_gen: v7x
topology: tpu7x:2x2x1
jax: 0.10.0
libtpu: 0.0.40
codegen_flags: <defaults>
</compile_context>

<pallas_src>
import functools

import jax
import jax.numpy as jnp
from jax.experimental import pallas as pl
from jax.experimental.pallas import tpu as pltpu

N_FEATURE = 104
N_CLASS = 9
LAYER_DIMS = [N_FEATURE, 977, 365, 703, 41, N_CLASS]


def _round_up(x, m):
    return (x + m - 1) // m * m


PADDED_DIMS = [_round_up(d, 128) for d in LAYER_DIMS]   # [128,1024,384,768,128,128]


# ------------------------------- Pallas kernel -------------------------------

def _audio_mlp_kernel(x_ref,
                      w1_ref, b1_ref, w2_ref, b2_ref, w3_ref, b3_ref,
                      w4_ref, b4_ref, w5_ref, b5_ref,
                      o_ref):
    """Fused MLP: out = (relu∘linear)^4 then linear.  All operands in VMEM."""
    h = x_ref[...]
    layers = ((w1_ref, b1_ref, True),
              (w2_ref, b2_ref, True),
              (w3_ref, b3_ref, True),
              (w4_ref, b4_ref, True),
              (w5_ref, b5_ref, False))
    for w_ref, b_ref, relu in layers:
        h = jnp.dot(h, w_ref[...], preferred_element_type=jnp.float32) + b_ref[...]
        if relu:
            h = jnp.maximum(h, 0.0)
    o_ref[...] = h.astype(o_ref.dtype)


# --------------------------------- wrapper -----------------------------------

def init_params(key):
    """Pre-padded (in,out) weights + (1,out) biases; PyTorch-Linear-style init."""
    params = []
    for li in range(len(LAYER_DIMS) - 1):
        fin, fout = LAYER_DIMS[li], LAYER_DIMS[li + 1]
        fin_p, fout_p = PADDED_DIMS[li], PADDED_DIMS[li + 1]
        key, k1, k2 = jax.random.split(key, 3)
        bound = fin ** -0.5
        w = jax.random.uniform(k1, (fin, fout), jnp.float32, -bound, bound)
        b = jax.random.uniform(k2, (fout,), jnp.float32, -bound, bound)
        # Pad once at init; zero padding is numerically inert.
        w_p = jnp.pad(w, ((0, fin_p - fin), (0, fout_p - fout)))
        b_p = jnp.pad(b, (0, fout_p - fout)).reshape(1, fout_p)
        params.append((w_p, b_p))
    return params


def audio_mlp_forward(params, x, *, tm=256):
    """x: (M, 104) -> (M, 9).  One fused pallas_call for the whole MLP."""
    M, K = x.shape
    assert K == N_FEATURE
    Kp = PADDED_DIMS[0]
    Np_out = PADDED_DIMS[-1]

    tm = min(tm, _round_up(M, 8))          # batch tile (sublane-aligned)
    Mp = _round_up(M, tm)
    x_p = jnp.pad(x.astype(jnp.float32), ((0, Mp - M), (0, Kp - K)))

    in_specs = [pl.BlockSpec((tm, Kp), lambda i: (i, 0))]
    args = [x_p]
    for w_p, b_p in params:
        kp, np_ = w_p.shape
        # Constant index_map -> weights/biases stay resident across batch tiles.
        in_specs.append(pl.BlockSpec((kp, np_), lambda i: (0, 0)))
        in_specs.append(pl.BlockSpec((1, np_), lambda i: (0, 0)))
        args.extend([w_p, b_p])

    out = pl.pallas_call(
        _audio_mlp_kernel,
        out_shape=jax.ShapeDtypeStruct((Mp, Np_out), jnp.float32),
        grid_spec=pltpu.PrefetchScalarGridSpec(
            num_scalar_prefetch=0,
            grid=(Mp // tm,),
            in_specs=in_specs,
            out_specs=pl.BlockSpec((tm, Np_out), lambda i: (i, 0)),
        ),
        compiler_params=pltpu.CompilerParams(
            dimension_semantics=("parallel",),
            vmem_limit_bytes=32 * 1024 * 1024,   # headroom; safe on v7x's 64 MiB
        ),
    )(*args)
    return out[:M, :N_CLASS]


# ------------------------------ reference check ------------------------------

def _reference_forward(params, x):
    h = x.astype(jnp.float32)
    for li, (w_p, b_p) in enumerate(params):
        fin, fout = LAYER_DIMS[li], LAYER_DIMS[li + 1]
        w = w_p[:fin, :fout]
        b = b_p[0, :fout]
        h = h @ w + b
        if li < len(params) - 1:
            h = jnp.maximum(h, 0.0)
    return h


if __name__ == "__main__":
    key = jax.random.PRNGKey(0)
    kp, kx = jax.random.split(key)
    params = init_params(kp)

    batch = 2
    x = jax.random.normal(kx, (batch, N_FEATURE), jnp.float32)

    out = jax.jit(audio_mlp_forward)(params, x)
    out = jax.block_until_ready(out)

    assert out.shape == (batch, N_CLASS) and out.dtype == jnp.float32
    assert bool(jnp.all(jnp.isfinite(out)))

    ref = _reference_forward(params, x)
    assert bool(jnp.allclose(out, ref, rtol=2e-2, atol=2e-2)), "mismatch vs reference"

    print("KERNEL_OK")
</pallas_src>

<mosaic_0001>
module attributes {stable_mosaic.version = 11 : i64} {
  func.func @_audio_mlp_kernel(%arg0: i32, %arg1: memref<8x128xf32, #tpu.memory_space<vmem>>, %arg2: memref<128x1024xf32, #tpu.memory_space<vmem>>, %arg3: memref<1x1024xf32, #tpu.memory_space<vmem>>, %arg4: memref<1024x384xf32, #tpu.memory_space<vmem>>, %arg5: memref<1x384xf32, #tpu.memory_space<vmem>>, %arg6: memref<384x768xf32, #tpu.memory_space<vmem>>, %arg7: memref<1x768xf32, #tpu.memory_space<vmem>>, %arg8: memref<768x128xf32, #tpu.memory_space<vmem>>, %arg9: memref<1x128xf32, #tpu.memory_space<vmem>>, %arg10: memref<128x128xf32, #tpu.memory_space<vmem>>, %arg11: memref<1x128xf32, #tpu.memory_space<vmem>>, %arg12: memref<8x128xf32, #tpu.memory_space<vmem>>) attributes {dimension_semantics = [#tpu.dimension_semantics<parallel>], iteration_bounds = array<i64: 1>, scalar_prefetch = 0 : i64, scratch_operands = 0 : i64, tpu.core_type = #tpu.core_type<tc>, window_params = [{transform_indices = @transform_0, window_bounds = array<i64: 8, 128>}, {pipeline_mode = #tpu.pipeline_mode<synchronous>, transform_indices = @transform_1, window_bounds = array<i64: 128, 1024>}, {pipeline_mode = #tpu.pipeline_mode<synchronous>, transform_indices = @transform_2, window_bounds = array<i64: 1, 1024>}, {pipeline_mode = #tpu.pipeline_mode<synchronous>, transform_indices = @transform_3, window_bounds = array<i64: 1024, 384>}, {pipeline_mode = #tpu.pipeline_mode<synchronous>, transform_indices = @transform_4, window_bounds = array<i64: 1, 384>}, {pipeline_mode = #tpu.pipeline_mode<synchronous>, transform_indices = @transform_5, window_bounds = array<i64: 384, 768>}, {pipeline_mode = #tpu.pipeline_mode<synchronous>, transform_indices = @transform_6, window_bounds = array<i64: 1, 768>}, {pipeline_mode = #tpu.pipeline_mode<synchronous>, transform_indices = @transform_7, window_bounds = array<i64: 768, 128>}, {pipeline_mode = #tpu.pipeline_mode<synchronous>, transform_indices = @transform_8, window_bounds = array<i64: 1, 128>}, {pipeline_mode = #tpu.pipeline_mode<synchronous>, transform_indices = @transform_9, window_bounds = array<i64: 128, 128>}, {pipeline_mode = #tpu.pipeline_mode<synchronous>, transform_indices = @transform_10, window_bounds = array<i64: 1, 128>}, {transform_indices = @transform_11, window_bounds = array<i64: 8, 128>}]} {
    %c0 = arith.constant 0 : index
    %c0_0 = arith.constant 0 : index
    %0 = vector.load %arg1[%c0, %c0_0] : memref<8x128xf32, #tpu.memory_space<vmem>>, vector<8x128xf32>
    %c0_1 = arith.constant 0 : index
    %c0_2 = arith.constant 0 : index
    %1 = vector.load %arg2[%c0_1, %c0_2] : memref<128x1024xf32, #tpu.memory_space<vmem>>, vector<128x1024xf32>
    %cst = arith.constant dense<0.000000e+00> : vector<8x1024xf32>
    %2 = tpu.matmul %0, %1, %cst {dimension_numbers = #tpu.dot_dimension_numbers<[1], [0], [0], [1], [0, 0, 1, 1], [], []>} : vector<8x128xf32>, vector<128x1024xf32>, vector<8x1024xf32> -> vector<8x1024xf32>
    %c0_3 = arith.constant 0 : index
    %c0_4 = arith.constant 0 : index
    %3 = vector.load %arg3[%c0_3, %c0_4] : memref<1x1024xf32, #tpu.memory_space<vmem>>, vector<1x1024xf32>
    %4 = vector.broadcast %3 : vector<1x1024xf32> to vector<8x1024xf32>
    %5 = arith.addf %2, %4 : vector<8x1024xf32>
    %cst_5 = arith.constant 0.000000e+00 : f32
    %6 = vector.broadcast %cst_5 : f32 to vector<8x1024xf32>
    %7 = arith.maximumf %5, %6 : vector<8x1024xf32>
    %c0_6 = arith.constant 0 : index
    %c0_7 = arith.constant 0 : index
    %8 = vector.load %arg4[%c0_6, %c0_7] : memref<1024x384xf32, #tpu.memory_space<vmem>>, vector<1024x384xf32>
    %cst_8 = arith.constant dense<0.000000e+00> : vector<8x384xf32>
    %9 = tpu.matmul %7, %8, %cst_8 {dimension_numbers = #tpu.dot_dimension_numbers<[1], [0], [0], [1], [0, 0, 1, 1], [], []>} : vector<8x1024xf32>, vector<1024x384xf32>, vector<8x384xf32> -> vector<8x384xf32>
    %c0_9 = arith.constant 0 : index
    %c0_10 = arith.constant 0 : index
    %10 = vector.load %arg5[%c0_9, %c0_10] : memref<1x384xf32, #tpu.memory_space<vmem>>, vector<1x384xf32>
    %11 = vector.broadcast %10 : vector<1x384xf32> to vector<8x384xf32>
    %12 = arith.addf %9, %11 : vector<8x384xf32>
    %cst_11 = arith.constant 0.000000e+00 : f32
    %13 = vector.broadcast %cst_11 : f32 to vector<8x384xf32>
    %14 = arith.maximumf %12, %13 : vector<8x384xf32>
    %c0_12 = arith.constant 0 : index
    %c0_13 = arith.constant 0 : index
    %15 = vector.load %arg6[%c0_12, %c0_13] : memref<384x768xf32, #tpu.memory_space<vmem>>, vector<384x768xf32>
    %cst_14 = arith.constant dense<0.000000e+00> : vector<8x768xf32>
    %16 = tpu.matmul %14, %15, %cst_14 {dimension_numbers = #tpu.dot_dimension_numbers<[1], [0], [0], [1], [0, 0, 1, 1], [], []>} : vector<8x384xf32>, vector<384x768xf32>, vector<8x768xf32> -> vector<8x768xf32>
    %c0_15 = arith.constant 0 : index
    %c0_16 = arith.constant 0 : index
    %17 = vector.load %arg7[%c0_15, %c0_16] : memref<1x768xf32, #tpu.memory_space<vmem>>, vector<1x768xf32>
    %18 = vector.broadcast %17 : vector<1x768xf32> to vector<8x768xf32>
    %19 = arith.addf %16, %18 : vector<8x768xf32>
    %cst_17 = arith.constant 0.000000e+00 : f32
    %20 = vector.broadcast %cst_17 : f32 to vector<8x768xf32>
    %21 = arith.maximumf %19, %20 : vector<8x768xf32>
    %c0_18 = arith.constant 0 : index
    %c0_19 = arith.constant 0 : index
    %22 = vector.load %arg8[%c0_18, %c0_19] : memref<768x128xf32, #tpu.memory_space<vmem>>, vector<768x128xf32>
    %cst_20 = arith.constant dense<0.000000e+00> : vector<8x128xf32>
    %23 = tpu.matmul %21, %22, %cst_20 {dimension_numbers = #tpu.dot_dimension_numbers<[1], [0], [0], [1], [0, 0, 1, 1], [], []>} : vector<8x768xf32>, vector<768x128xf32>, vector<8x128xf32> -> vector<8x128xf32>
    %c0_21 = arith.constant 0 : index
    %c0_22 = arith.constant 0 : index
    %24 = vector.load %arg9[%c0_21, %c0_22] : memref<1x128xf32, #tpu.memory_space<vmem>>, vector<1x128xf32>
    %25 = vector.broadcast %24 : vector<1x128xf32> to vector<8x128xf32>
    %26 = arith.addf %23, %25 : vector<8x128xf32>
    %cst_23 = arith.constant 0.000000e+00 : f32
    %27 = vector.broadcast %cst_23 : f32 to vector<8x128xf32>
    %28 = arith.maximumf %26, %27 : vector<8x128xf32>
    %c0_24 = arith.constant 0 : index
    %c0_25 = arith.constant 0 : index
    %29 = vector.load %arg10[%c0_24, %c0_25] : memref<128x128xf32, #tpu.memory_space<vmem>>, vector<128x128xf32>
    %cst_26 = arith.constant dense<0.000000e+00> : vector<8x128xf32>
    %30 = tpu.matmul %28, %29, %cst_26 {dimension_numbers = #tpu.dot_dimension_numbers<[1], [0], [0], [1], [0, 0, 1, 1], [], []>} : vector<8x128xf32>, vector<128x128xf32>, vector<8x128xf32> -> vector<8x128xf32>
    %c0_27 = arith.constant 0 : index
    %c0_28 = arith.constant 0 : index
    %31 = vector.load %arg11[%c0_27, %c0_28] : memref<1x128xf32, #tpu.memory_space<vmem>>, vector<1x128xf32>
    %32 = vector.broadcast %31 : vector<1x128xf32> to vector<8x128xf32>
    %33 = arith.addf %30, %32 : vector<8x128xf32>
    %c0_29 = arith.constant 0 : index
    %c0_30 = arith.constant 0 : index
    %34 = vector.load %arg12[%c0_29, %c0_30] : memref<8x128xf32, #tpu.memory_space<vmem>>, vector<8x128xf32>
    tpu.vector_store %arg12[%c0_29, %c0_30], %33 {strides = array<i32>} : memref<8x128xf32, #tpu.memory_space<vmem>>, vector<8x128xf32>,
    return
  }
  func.func @transform_0(%arg0: i32) -> (i32, i32) {
    %c0_i32 = arith.constant 0 : i32
    %c0_i32_0 = arith.constant 0 : i32
    return %arg0, %c0_i32 : i32, i32
  }
  func.func @transform_1(%arg0: i32) -> (i32, i32) {
    %c0_i32 = arith.constant 0 : i32
    %c0_i32_0 = arith.constant 0 : i32
    %c0_i32_1 = arith.constant 0 : i32
    return %c0_i32, %c0_i32_0 : i32, i32
  }
  func.func @transform_2(%arg0: i32) -> (i32, i32) {
    %c0_i32 = arith.constant 0 : i32
    %c0_i32_0 = arith.constant 0 : i32
    %c0_i32_1 = arith.constant 0 : i32
    return %c0_i32, %c0_i32_0 : i32, i32
  }
  func.func @transform_3(%arg0: i32) -> (i32, i32) {
    %c0_i32 = arith.constant 0 : i32
    %c0_i32_0 = arith.constant 0 : i32
    %c0_i32_1 = arith.constant 0 : i32
    return %c0_i32, %c0_i32_0 : i32, i32
  }
  func.func @transform_4(%arg0: i32) -> (i32, i32) {
    %c0_i32 = arith.constant 0 : i32
    %c0_i32_0 = arith.constant 0 : i32
    %c0_i32_1 = arith.constant 0 : i32
    return %c0_i32, %c0_i32_0 : i32, i32
  }
  func.func @transform_5(%arg0: i32) -> (i32, i32) {
    %c0_i32 = arith.constant 0 : i32
    %c0_i32_0 = arith.constant 0 : i32
    %c0_i32_1 = arith.constant 0 : i32
    return %c0_i32, %c0_i32_0 : i32, i32
  }
  func.func @transform_6(%arg0: i32) -> (i32, i32) {
    %c0_i32 = arith.constant 0 : i32
    %c0_i32_0 = arith.constant 0 : i32
    %c0_i32_1 = arith.constant 0 : i32
    return %c0_i32, %c0_i32_0 : i32, i32
  }
  func.func @transform_7(%arg0: i32) -> (i32, i32) {
    %c0_i32 = arith.constant 0 : i32
    %c0_i32_0 = arith.constant 0 : i32
    %c0_i32_1 = arith.constant 0 : i32
    return %c0_i32, %c0_i32_0 : i32, i32
  }
  func.func @transform_8(%arg0: i32) -> (i32, i32) {
    %c0_i32 = arith.constant 0 : i32
    %c0_i32_0 = arith.constant 0 : i32
    %c0_i32_1 = arith.constant 0 : i32
    return %c0_i32, %c0_i32_0 : i32, i32
  }
  func.func @transform_9(%arg0: i32) -> (i32, i32) {
    %c0_i32 = arith.constant 0 : i32
    %c0_i32_0 = arith.constant 0 : i32
    %c0_i32_1 = arith.constant 0 : i32
    return %c0_i32, %c0_i32_0 : i32, i32
  }
  func.func @transform_10(%arg0: i32) -> (i32, i32) {
    %c0_i32 = arith.constant 0 : i32
    %c0_i32_0 = arith.constant 0 : i32
    %c0_i32_1 = arith.constant 0 : i32
    return %c0_i32, %c0_i32_0 : i32, i32
  }
  func.func @transform_11(%arg0: i32) -> (i32, i32) {
    %c0_i32 = arith.constant 0 : i32
    %c0_i32_0 = arith.constant 0 : i32
    return %arg0, %c0_i32 : i32, i32
  }
}

</mosaic_0001>

<bundles_post_ra>
// kernel: audio_mlp_forward.1
= control target key start
LH: loop header
LB: loop body
LE: loop exit
PB: predicated region body
PF: predicated region fallthrough
CT: control target
= control target key end

     0   :  { %16 = vsyncpa [#allocation3], 0  ;;  %s4609_s0 = inlined_call_operand.vmem [shape: f32[8,128], index: 0, kind: input, shape index: {}]   ;;  %s4610_s1 = inlined_call_operand.hbm [shape: f32[128,1024], index: 1, kind: input, shape index: {}]   ;;  %s4611_s2 = inlined_call_operand.hbm [shape: f32[1,1024], index: 2, kind: input, shape index: {}]   ;;  %s4612_s3 = inlined_call_operand.hbm [shape: f32[1024,384], index: 3, kind: input, shape index: {}]   ;;  %s4613_s4 = inlined_call_operand.hbm [shape: f32[1,384], index: 4, kind: input, shape index: {}]   ;;  %s4614_s5 = inlined_call_operand.hbm [shape: f32[384,768], index: 5, kind: input, shape index: {}]   ;;  %s4615_s6 = inlined_call_operand.hbm [shape: f32[1,768], index: 6, kind: input, shape index: {}]   ;;  %s4616_s7 = inlined_call_operand.hbm [shape: f32[768,128], index: 7, kind: input, shape index: {}]   ;;  %s4617_s8 = inlined_call_operand.hbm [shape: f32[1,128], index: 8, kind: input, shape index: {}]   ;;  %s4618_s9 = inlined_call_operand.hbm [shape: f32[128,128], index: 9, kind: input, shape index: {}]   ;;  %s4619_s10 = inlined_call_operand.hbm [shape: f32[1,128], index: 10, kind: input, shape index: {}]   ;;  %s4620_s11 = inlined_call_operand.vmem [shape: f32[8,128], index: 11, kind: output, shape index: {}]  }
   0x1   :  { %17 = vsyncpa [#allocation5], 0 }
   0x2   :  { %18 = vsyncpa [#allocation8], 0 }
   0x3   :  { %19 = vsyncpa [#allocation11], 0 }
   0x4   :  { %20 = vsyncpa [#allocation14], 0 }
   0x5   :  { %21 = vsyncpa [#allocation17], 0  ;;  %s4257_s17 = smov [#allocation4]   ;;  %s4258_s19 = smov [#allocation7]  }
   0x6   :  { %s42_s18 = sshll.u32 %s4257_s17, 4  ;;  %s64_s20 = sshll.u32 %s4258_s19, 4  ;;  %s43_s18 = int_to_ptr.vmem [resolvable:$true] %s42_s18  ;;  %s65_s20 = int_to_ptr.vmem [resolvable:$true] %s64_s20 }
   0x7   :  { %s4025_s23 = scalar_lea.hbm %s4611_s2, 128 }
   0x8   :  { %p4026_p0 = scmp.ne.s32.totalorder %s4611_s2, %s4025_s23  ;;  %p4029_p1 = scmp.lt.u32.totalorder %s4025_s23, %s4611_s2 }
   0xa   :  { %p4031_p2 = pnand %p4029_p1, %p4026_p0 }
   0xc   :  { %4034 = shalt.err (!%p4031_p2)
}
   0xd   :  { %s4035_s28 = scalar_lea.vmem %s43_s18, 128  ;;  %p4040_p4 = scmp.lt.s32.totalorder %s43_s18, %s43_s18 }
   0xe   :  { %p4036_p3 = scmp.ne.s32.totalorder %s43_s18, %s4035_s28  ;;  %p4041_p5 = scmp.lt.s32.totalorder %s4035_s28, %s4035_s28 }
  0x10   :  { %p4042_p6 = por %p4041_p5, %p4040_p4 }
  0x12   :  { %p4043_p7 = pnand %p4042_p6, %p4036_p3 }
  0x14   :  { %4046 = shalt.err (!%p4043_p7)
}
  0x15   :  { %45 = dma.hbm_to_vmem [thread:$0]  %s4611_s2, 128, %s43_s18, [#allocation5]  }
  0x16   :  { %s4047_s14 = scalar_lea.hbm %s4613_s4, 48 }
  0x17   :  { %p4048_p8 = scmp.ne.s32.totalorder %s4613_s4, %s4047_s14  ;;  %p4051_p9 = scmp.lt.u32.totalorder %s4047_s14, %s4613_s4 }
  0x19   :  { %p4053_p10 = pnand %p4051_p9, %p4048_p8 }
  0x1b   :  { %4056 = shalt.err (!%p4053_p10)
}
  0x1c   :  { %s4057_s21 = scalar_lea.vmem %s65_s20, 48  ;;  %s4061_s22 = scalar_lea.vmem %s65_s20, 64 }
  0x1d   :  { %p4058_p11 = scmp.ne.s32.totalorder %s65_s20, %s4057_s21  ;;  %p4062_p12 = scmp.lt.s32.totalorder %s65_s20, %s65_s20 }
  0x1e   :  { %p4063_p13 = scmp.lt.s32.totalorder %s4061_s22, %s4057_s21 }
  0x20   :  { %p4064_p0 = por %p4063_p13, %p4062_p12 }
  0x22   :  { %p4065_p1 = pnand %p4064_p0, %p4058_p11 }
  0x24   :  { %4068 = shalt.err (!%p4065_p1)
}
  0x25   :  { %67 = dma.hbm_to_vmem [thread:$0]  %s4613_s4, 48, %s65_s20, [#allocation8]  }
  0x26   :  { %s4259_s23 = smov [#allocation10]   ;;  %s4260_s25 = smov [#allocation13]  }
  0x27   :  { %s86_s24 = sshll.u32 %s4259_s23, 4  ;;  %s108_s26 = sshll.u32 %s4260_s25, 4  ;;  %s87_s24 = int_to_ptr.vmem [resolvable:$true] %s86_s24  ;;  %s109_s26 = int_to_ptr.vmem [resolvable:$true] %s108_s26 }
  0x28   :  { %s4069_s29 = scalar_lea.hbm %s4615_s6, 96 }
  0x29   :  { %p4070_p2 = scmp.ne.s32.totalorder %s4615_s6, %s4069_s29  ;;  %p4073_p3 = scmp.lt.u32.totalorder %s4069_s29, %s4615_s6 }
  0x2b   :  { %p4075_p4 = pnand %p4073_p3, %p4070_p2 }
  0x2d   :  { %4078 = shalt.err (!%p4075_p4)
}
  0x2e   :  { %s4079_s4 = scalar_lea.vmem %s87_s24, 96  ;;  %p4084_p6 = scmp.lt.s32.totalorder %s87_s24, %s87_s24 }
  0x2f   :  { %p4080_p5 = scmp.ne.s32.totalorder %s87_s24, %s4079_s4  ;;  %p4085_p7 = scmp.lt.s32.totalorder %s4079_s4, %s4079_s4 }
  0x31   :  { %p4086_p8 = por %p4085_p7, %p4084_p6 }
  0x33   :  { %p4087_p9 = pnand %p4086_p8, %p4080_p5 }
  0x35   :  { %4090 = shalt.err (!%p4087_p9)
}
  0x36   :  { %89 = dma.hbm_to_vmem [thread:$0]  %s4615_s6, 96, %s87_s24, [#allocation11]  }
  0x37   :  { %s4091_s19 = scalar_lea.hbm %s4617_s8, 16 }
  0x38   :  { %p4092_p10 = scmp.ne.s32.totalorder %s4617_s8, %s4091_s19  ;;  %p4095_p11 = scmp.lt.u32.totalorder %s4091_s19, %s4617_s8 }
  0x3a   :  { %p4097_p12 = pnand %p4095_p11, %p4092_p10 }
  0x3c   :  { %4100 = shalt.err (!%p4097_p12)
}
  0x3d   :  { %s4101_s23 = scalar_lea.vmem %s109_s26, 16  ;;  %s4105_s25 = scalar_lea.vmem %s109_s26, 32 }
  0x3e   :  { %p4102_p13 = scmp.ne.s32.totalorder %s109_s26, %s4101_s23  ;;  %p4106_p0 = scmp.lt.s32.totalorder %s109_s26, %s109_s26 }
  0x3f   :  { %p4107_p1 = scmp.lt.s32.totalorder %s4105_s25, %s4101_s23 }
  0x41   :  { %p4108_p2 = por %p4107_p1, %p4106_p0 }
  0x43   :  { %p4109_p3 = pnand %p4108_p2, %p4102_p13 }
  0x45   :  { %4112 = shalt.err (!%p4109_p3)
}
  0x46   :  { %111 = dma.hbm_to_vmem [thread:$0]  %s4617_s8, 16, %s109_s26, [#allocation14]  }
  0x47   :  { %s4261_s27 = smov [#allocation2]   ;;  %s4113_s12 = scalar_lea.hbm %s4610_s1, 16384 }
  0x48   :  { %s29_s28 = sshll.u32 %s4261_s27, 4  ;;  %p4114_p4 = scmp.ne.s32.totalorder %s4610_s1, %s4113_s12  ;;  %s30_s28 = int_to_ptr.vmem [resolvable:$true] %s29_s28 }
  0x49   :  { %p4117_p5 = scmp.lt.u32.totalorder %s4113_s12, %s4610_s1 }
  0x4b   :  { %p4119_p6 = pnand %p4117_p5, %p4114_p4 }
  0x4d   :  { %4122 = shalt.err (!%p4119_p6)
}
  0x4e   :  { %s4123_s15 = scalar_lea.vmem %s30_s28, 16384  ;;  %p4128_p8 = scmp.lt.s32.totalorder %s30_s28, %s30_s28 }
  0x4f   :  { %p4124_p7 = scmp.ne.s32.totalorder %s30_s28, %s4123_s15  ;;  %p4129_p9 = scmp.lt.s32.totalorder %s4123_s15, %s4123_s15 }
  0x51   :  { %p4130_p10 = por %p4129_p9, %p4128_p8 }
  0x53   :  { %p4131_p11 = pnand %p4130_p10, %p4124_p7 }
  0x55   :  { %4134 = shalt.err (!%p4131_p11)
}
  0x56   :  { %s4262_s8 = smov 1024   ;;  %s4263_s26 = smov 64  }
  0x57   :  { %35 = dma.hbm_to_vmem [thread:$0]  %s4610_s1, 16384, %s30_s28, [#allocation3], %s4262_s8, %s4262_s8, %s4263_s26  }
  0x58   :  { %s4264_s19 = smov [#allocation6]   ;;  %s4135_s18 = scalar_lea.hbm %s4612_s3, 49152 }
  0x59   :  { %s51_s21 = sshll.u32 %s4264_s19, 4  ;;  %p4136_p12 = scmp.ne.s32.totalorder %s4612_s3, %s4135_s18  ;;  %s52_s21 = int_to_ptr.vmem [resolvable:$true] %s51_s21 }
  0x5a   :  { %p4139_p13 = scmp.lt.u32.totalorder %s4135_s18, %s4612_s3 }
  0x5c   :  { %p4141_p0 = pnand %p4139_p13, %p4136_p12 }
  0x5e   :  { %4144 = shalt.err (!%p4141_p0)
}
  0x5f   :  { %s4145_s27 = scalar_lea.vmem %s52_s21, 49152  ;;  %p4150_p2 = scmp.lt.s32.totalorder %s52_s21, %s52_s21 }
  0x60   :  { %p4146_p1 = scmp.ne.s32.totalorder %s52_s21, %s4145_s27  ;;  %p4151_p3 = scmp.lt.s32.totalorder %s4145_s27, %s4145_s27 }
  0x62   :  { %p4152_p4 = por %p4151_p3, %p4150_p2 }
  0x64   :  { %p4153_p5 = pnand %p4152_p4, %p4146_p1 }
  0x66   :  { %4156 = shalt.err (!%p4153_p5)
}
  0x67   :  { %s4265_s1 = smov 384   ;;  %s4266_s28 = smov 24  }
  0x68   :  { %57 = dma.hbm_to_vmem [thread:$0]  %s4612_s3, 49152, %s52_s21, [#allocation5], %s4265_s1, %s4265_s1, %s4266_s28  }
  0x69   :  { %s4267_s12 = smov [#allocation9]   ;;  %s4157_s20 = scalar_lea.hbm %s4614_s5, 36864 }
  0x6a   :  { %s73_s13 = sshll.u32 %s4267_s12, 4  ;;  %p4158_p6 = scmp.ne.s32.totalorder %s4614_s5, %s4157_s20  ;;  %s74_s13 = int_to_ptr.vmem [resolvable:$true] %s73_s13 }
  0x6b   :  { %p4161_p7 = scmp.lt.u32.totalorder %s4157_s20, %s4614_s5 }
  0x6d   :  { %p4163_p8 = pnand %p4161_p7, %p4158_p6 }
  0x6f   :  { %4166 = shalt.err (!%p4163_p8)
}
  0x70   :  { %s4167_s17 = scalar_lea.vmem %s74_s13, 36864  ;;  %p4172_p10 = scmp.lt.s32.totalorder %s74_s13, %s74_s13 }
  0x71   :  { %p4168_p9 = scmp.ne.s32.totalorder %s74_s13, %s4167_s17  ;;  %p4173_p11 = scmp.lt.s32.totalorder %s4167_s17, %s4167_s17 }
  0x73   :  { %p4174_p12 = por %p4173_p11, %p4172_p10 }
  0x75   :  { %p4175_p13 = pnand %p4174_p12, %p4168_p9 }
  0x77   :  { %4178 = shalt.err (!%p4175_p13)
}
  0x78   :  { %s4268_s3 = smov 768   ;;  %s4269_s19 = smov 48  }
  0x79   :  { %79 = dma.hbm_to_vmem [thread:$0]  %s4614_s5, 36864, %s74_s13, [#allocation8], %s4268_s3, %s4268_s3, %s4269_s19  }
  0x7a   :  { %s4270_s2 = smov [#allocation12]   ;;  %s4179_s6 = scalar_lea.hbm %s4616_s7, 12288 }
  0x7b   :  { %s95_s18 = sshll.u32 %s4270_s2, 4  ;;  %p4180_p0 = scmp.ne.s32.totalorder %s4616_s7, %s4179_s6  ;;  %s96_s18 = int_to_ptr.vmem [resolvable:$true] %s95_s18 }
  0x7c   :  { %p4183_p1 = scmp.lt.u32.totalorder %s4179_s6, %s4616_s7 }
  0x7e   :  { %p4185_p2 = pnand %p4183_p1, %p4180_p0 }
  0x80   :  { %4188 = shalt.err (!%p4185_p2)
}
  0x81   :  { %s4189_s29 = scalar_lea.vmem %s96_s18, 12288  ;;  %p4194_p4 = scmp.lt.s32.totalorder %s96_s18, %s96_s18 }
  0x82   :  { %p4190_p3 = scmp.ne.s32.totalorder %s96_s18, %s4189_s29  ;;  %p4195_p5 = scmp.lt.s32.totalorder %s4189_s29, %s4189_s29 }
  0x84   :  { %p4196_p6 = por %p4195_p5, %p4194_p4 }
  0x86   :  { %p4197_p7 = pnand %p4196_p6, %p4190_p3 }
  0x88   :  { %4200 = shalt.err (!%p4197_p7)
}
  0x89   :  { %s4271_s5 = smov 128   ;;  %s4272_s30 = smov 8  }
  0x8a   :  { %101 = dma.hbm_to_vmem [thread:$0]  %s4616_s7, 12288, %s96_s18, [#allocation11], %s4271_s5, %s4271_s5, %s4272_s30  }
  0x8b   :  { %s4273_s14 = smov [#allocation15]   ;;  %s4274_s20 = smov [#allocation16]  }
  0x8c   :  { %s117_s4 = sshll.u32 %s4273_s14, 4  ;;  %s130_s15 = sshll.u32 %s4274_s20, 4  ;;  %s118_s4 = int_to_ptr.vmem [resolvable:$true] %s117_s4  ;;  %s131_s15 = int_to_ptr.vmem [resolvable:$true] %s130_s15 }
  0x8d   :  { %s4201_s16 = scalar_lea.hbm %s4618_s9, 2048 }
  0x8e   :  { %p4202_p8 = scmp.ne.s32.totalorder %s4618_s9, %s4201_s16  ;;  %p4205_p9 = scmp.lt.u32.totalorder %s4201_s16, %s4618_s9 }
  0x90   :  { %p4207_p10 = pnand %p4205_p9, %p4202_p8 }
  0x92   :  { %4210 = shalt.err (!%p4207_p10)
}
  0x93   :  { %s4211_s7 = scalar_lea.vmem %s118_s4, 2048  ;;  %p4216_p12 = scmp.lt.s32.totalorder %s118_s4, %s118_s4 }
  0x94   :  { %p4212_p11 = scmp.ne.s32.totalorder %s118_s4, %s4211_s7  ;;  %p4217_p13 = scmp.lt.s32.totalorder %s4211_s7, %s4211_s7 }
  0x96   :  { %p4218_p0 = por %p4217_p13, %p4216_p12 }
  0x98   :  { %p4219_p1 = pnand %p4218_p0, %p4212_p11 }
  0x9a   :  { %4222 = shalt.err (!%p4219_p1)
}
  0x9b   :  { %123 = dma.hbm_to_vmem [thread:$0]  %s4618_s9, 2048, %s118_s4, [#allocation14], %s4271_s5, %s4271_s5, %s4272_s30  }
  0x9c   :  { %s4223_s25 = scalar_lea.hbm %s4619_s10, 16 }
  0x9d   :  { %p4224_p2 = scmp.ne.s32.totalorder %s4619_s10, %s4223_s25  ;;  %p4227_p3 = scmp.lt.u32.totalorder %s4223_s25, %s4619_s10 }
  0x9f   :  { %p4229_p4 = pnand %p4227_p3, %p4224_p2 }
  0xa1   :  { %4232 = shalt.err (!%p4229_p4)
}
  0xa2   :  { %s4233_s28 = scalar_lea.vmem %s131_s15, 16  ;;  %s4237_s29 = scalar_lea.vmem %s131_s15, 32 }
  0xa3   :  { %p4234_p5 = scmp.ne.s32.totalorder %s131_s15, %s4233_s28  ;;  %p4238_p6 = scmp.lt.s32.totalorder %s131_s15, %s131_s15 }
  0xa4   :  { %p4239_p7 = scmp.lt.s32.totalorder %s4237_s29, %s4233_s28 }
  0xa6   :  { %p4240_p8 = por %p4239_p7, %p4238_p6 }
  0xa8   :  { %p4241_p9 = pnand %p4240_p8, %p4234_p5 }
  0xaa   :  { %4244 = shalt.err (!%p4241_p9)
}
  0xab   :  { %133 = dma.hbm_to_vmem [thread:$0]  %s4619_s10, 16, %s131_s15, [#allocation17]  }
  0xac   :  { %4245 = dma.done.wait [#allocation3], 16384  }
  0xad   :  { %4246 = vsyncadd [#allocation3], 4294950912 }
  0xae   :  { %4247 = dma.done.wait [#allocation5], 49280  }
  0xaf   :  { %4248 = vsyncadd [#allocation5], 4294918016 }
  0xb0   :  { %4249 = dma.done.wait [#allocation8], 36912  }
  0xb1   :  { %4250 = vsyncadd [#allocation8], 4294930384 }
  0xb2   :  { %4251 = dma.done.wait [#allocation11], 12384  }
  0xb3   :  { %4252 = vsyncadd [#allocation11], 4294954912 }
  0xb4   :  { %4253 = dma.done.wait [#allocation14], 2064  }
  0xb5   :  { %4254 = vsyncadd [#allocation14], 4294965232 }
  0xb6   :  { %4255 = dma.done.wait [#allocation17], 16  }
  0xb7   :  { %4256 = vsyncadd [#allocation17], 4294967280  ;;  %v4275_v0 = vmov 0.0   ;;  %v166_v1 = vld [vmem:[#allocation2 + $0x8] sm:$0xff]  ;;  %v165_v3 = vld [vmem:[#allocation2] sm:$0xff]  ;;  %vm4277_vm0 = vmmov 0  }
  0xb8   :  { %399 = vmatprep.mubr.f32.mxu0 %v4275_v0  ;;  %470 = vmatprep.mubr.f32.mxu1 %v4275_v0  ;;  %v174_v2 = vld [vmem:[#allocation2 + $0x48] sm:$0xff]  ;;  %v173_v5 = vld [vmem:[#allocation2 + $0x40] sm:$0xff]  ;;  %v168_v26 = vld [vmem:[#allocation2 + $0x18] sm:$0xff] }
  0xb9   :  { %v3064_v4 = vpack.c.bf16 %v174_v2, %v166_v1  ;;  %v182_v6 = vld [vmem:[#allocation2 + $0x88] sm:$0xff]  ;;  %v3066_v8 = vpack.c.bf16 %v173_v5, %v165_v3  ;;  %v181_v10 = vld [vmem:[#allocation2 + $0x80] sm:$0xff]  ;;  %v176_v29 = vld [vmem:[#allocation2 + $0x58] sm:$0xff] }
  0xba   :  { %v190_v7 = vld [vmem:[#allocation2 + $0xc8] sm:$0xff]  ;;  %v189_v11 = vld [vmem:[#allocation2 + $0xc0] sm:$0xff]  ;;  %v167_v30 = vld [vmem:[#allocation2 + $0x10] sm:$0xff]  ;;  %v3096_v32 = vpack.c.bf16 %v176_v29, %v168_v26 }
  0xbb   :  { %v3068_v9 = vpack.c.bf16 %v190_v7, %v182_v6  ;;  %v198_v12 = vld [vmem:[#allocation2 + $0x108] sm:$0xff]  ;;  %3065 = vmatprep.subr.bf16.mxu0 %v3064_v4  ;;  %v3070_v14 = vpack.c.bf16 %v189_v11, %v181_v10  ;;  %v197_v16 = vld [vmem:[#allocation2 + $0x100] sm:$0xff]  ;;  %v175_v33 = vld [vmem:[#allocation2 + $0x50] sm:$0xff] }
  0xbc   :  { %v206_v13 = vld [vmem:[#allocation2 + $0x148] sm:$0xff]  ;;  %3067 = vmatpush1.bf16.msra.mxu0 %v3066_v8  ;;  %v205_v17 = vld [vmem:[#allocation2 + $0x140] sm:$0xff]  ;;  %v184_v34 = vld [vmem:[#allocation2 + $0x98] sm:$0xff]  ;;  %v3098_v37 = vpack.c.bf16 %v175_v33, %v167_v30  ;;  %3097 = vmatprep.subr.bf16.mxu1 %v3096_v32 }
  0xbd   :  { %3069 = vmatprep.subr.bf16.mxu0 %v3068_v9  ;;  %v3072_v15 = vpack.c.bf16 %v206_v13, %v198_v12  ;;  %v214_v18 = vld [vmem:[#allocation2 + $0x188] sm:$0xff]  ;;  %v3074_v20 = vpack.c.bf16 %v205_v17, %v197_v16  ;;  %v213_v22 = vld [vmem:[#allocation2 + $0x180] sm:$0xff]  ;;  %v192_v35 = vld [vmem:[#allocation2 + $0xd8] sm:$0xff] }
  0xbe   :  { %v222_v19 = vld [vmem:[#allocation2 + $0x1c8] sm:$0xff]  ;;  %v221_v23 = vld [vmem:[#allocation2 + $0x1c0] sm:$0xff]  ;;  %v3100_v38 = vpack.c.bf16 %v192_v35, %v184_v34  ;;  %v183_v39 = vld [vmem:[#allocation2 + $0x90] sm:$0xff]  ;;  %3099 = vmatpush1.bf16.msra.mxu1 %v3098_v37 }
  0xbf   :  { %v3076_v21 = vpack.c.bf16 %v222_v19, %v214_v18  ;;  %v230_v24 = vld [vmem:[#allocation2 + $0x208] sm:$0xff]  ;;  %v229_v27 = vld [vmem:[#allocation2 + $0x200] sm:$0xff]  ;;  %v3078_v31 = vpack.c.bf16 %v221_v23, %v213_v22  ;;  %v191_v40 = vld [vmem:[#allocation2 + $0xd0] sm:$0xff] }
  0xc0   :  { %3071 = vmatpush1.bf16.msra.mxu0 %v3070_v14  ;;  %v238_v25 = vld [vmem:[#allocation2 + $0x248] sm:$0xff]  ;;  %v237_v28 = vld [vmem:[#allocation2 + $0x240] sm:$0xff]  ;;  %v200_v41 = vld [vmem:[#allocation2 + $0x118] sm:$0xff]  ;;  %v3102_v45 = vpack.c.bf16 %v191_v40, %v183_v39  ;;  %3101 = vmatprep.subr.bf16.mxu1 %v3100_v38 }
  0xc1   :  { %3073 = vmatprep.subr.bf16.mxu0 %v3072_v15  ;;  %v3080_v36 = vpack.c.bf16 %v238_v25, %v230_v24  ;;  %v246_v42 = vld [vmem:[#allocation2 + $0x288] sm:$0xff]  ;;  %v208_v44 = vld [vmem:[#allocation2 + $0x158] sm:$0xff]  ;;  %v3082_v46 = vpack.c.bf16 %v237_v28, %v229_v27  ;;  %v245_v47 = vld [vmem:[#allocation2 + $0x280] sm:$0xff] }
  0xc2   :  { %v254_v43 = vld [vmem:[#allocation2 + $0x2c8] sm:$0xff]  ;;  %v3104_v48 = vpack.c.bf16 %v208_v44, %v200_v41  ;;  %v199_v49 = vld [vmem:[#allocation2 + $0x110] sm:$0xff]  ;;  %v253_v52 = vld [vmem:[#allocation2 + $0x2c0] sm:$0xff]  ;;  %3103 = vmatpush1.bf16.msra.mxu1 %v3102_v45 }
  0xc3   :  { %v207_v50 = vld [vmem:[#allocation2 + $0x150] sm:$0xff]  ;;  %v3084_v51 = vpack.c.bf16 %v254_v43, %v246_v42  ;;  %v216_v53 = vld [vmem:[#allocation2 + $0x198] sm:$0xff]  ;;  %v262_v55 = vld [vmem:[#allocation2 + $0x308] sm:$0xff]  ;;  %v3086_v58 = vpack.c.bf16 %v253_v52, %v245_v47 }
  0xc4   :  { %3075 = vmatpush1.bf16.msra.mxu0 %v3074_v20  ;;  %v224_v54 = vld [vmem:[#allocation2 + $0x1d8] sm:$0xff]  ;;  %v270_v56 = vld [vmem:[#allocation2 + $0x348] sm:$0xff]  ;;  %v3106_v57 = vpack.c.bf16 %v207_v50, %v199_v49  ;;  %v261_v59 = vld [vmem:[#allocation2 + $0x300] sm:$0xff]  ;;  %3105 = vmatprep.subr.bf16.mxu1 %v3104_v48 }
  0xc5   :  { %3077 = vmatprep.subr.bf16.mxu0 %v3076_v21  ;;  %v3108_v60 = vpack.c.bf16 %v224_v54, %v216_v53  ;;  %v215_v61 = vld [vmem:[#allocation2 + $0x190] sm:$0xff]  ;;  %v3088_v63 = vpack.c.bf16 %v270_v56, %v262_v55  ;;  %v269_v1 = vld [vmem:[#allocation2 + $0x340] sm:$0xff]  ;;  %v232_v2 = vld [vmem:[#allocation2 + $0x218] sm:$0xff] }
  0xc6   :  { %v223_v62 = vld [vmem:[#allocation2 + $0x1d0] sm:$0xff]  ;;  %v240_v3 = vld [vmem:[#allocation2 + $0x258] sm:$0xff]  ;;  %v278_v4 = vld [vmem:[#allocation2 + $0x388] sm:$0xff]  ;;  %3107 = vmatpush1.bf16.msra.mxu1 %v3106_v57  ;;  %v3090_v7 = vpack.c.bf16 %v269_v1, %v261_v59 }
  0xc7   :  { %v286_v5 = vld [vmem:[#allocation2 + $0x3c8] sm:$0xff]  ;;  %v3110_v6 = vpack.c.bf16 %v223_v62, %v215_v61  ;;  %v277_v8 = vld [vmem:[#allocation2 + $0x380] sm:$0xff]  ;;  %3109 = vmatprep.subr.bf16.mxu1 %v3108_v60  ;;  %v3112_v9 = vpack.c.bf16 %v240_v3, %v232_v2  ;;  %v231_v10 = vld [vmem:[#allocation2 + $0x210] sm:$0xff] }
  0xc8   :  { %3079 = vmatpush1.bf16.msra.mxu0 %v3078_v31  ;;  %v239_v11 = vld [vmem:[#allocation2 + $0x250] sm:$0xff]  ;;  %v3092_v12 = vpack.c.bf16 %v286_v5, %v278_v4  ;;  %v285_v13 = vld [vmem:[#allocation2 + $0x3c0] sm:$0xff]  ;;  %v248_v14 = vld [vmem:[#allocation2 + $0x298] sm:$0xff] }
  0xc9   :  { %3081 = vmatprep.subr.bf16.mxu0 %v3080_v36  ;;  %v256_v15 = vld [vmem:[#allocation2 + $0x2d8] sm:$0xff]  ;;  %v170_v16 = vld [vmem:[#allocation2 + $0x28] sm:$0xff]  ;;  %v3114_v18 = vpack.c.bf16 %v239_v11, %v231_v10  ;;  %v3094_v19 = vpack.c.bf16 %v285_v13, %v277_v8  ;;  %v247_v21 = vld [vmem:[#allocation2 + $0x290] sm:$0xff] }
  0xca   :  { %v178_v17 = vld [vmem:[#allocation2 + $0x68] sm:$0xff]  ;;  %3111 = vmatpush1.bf16.msra.mxu1 %v3110_v6  ;;  %v3116_v20 = vpack.c.bf16 %v256_v15, %v248_v14  ;;  %v255_v22 = vld [vmem:[#allocation2 + $0x2d0] sm:$0xff]  ;;  %v264_v23 = vld [vmem:[#allocation2 + $0x318] sm:$0xff] }
  0xcb   :  { %3113 = vmatprep.subr.bf16.mxu1 %v3112_v9  ;;  %v272_v24 = vld [vmem:[#allocation2 + $0x358] sm:$0xff]  ;;  %v3128_v25 = vpack.c.bf16 %v178_v17, %v170_v16  ;;  %v169_v26 = vld [vmem:[#allocation2 + $0x20] sm:$0xff]  ;;  %v186_v28 = vld [vmem:[#allocation2 + $0xa8] sm:$0xff]  ;;  %v3118_v31 = vpack.c.bf16 %v255_v22, %v247_v21 }
  0xcc   :  { %3083 = vmatpush1.bf16.msra.mxu0 %v3082_v46  ;;  %v177_v27 = vld [vmem:[#allocation2 + $0x60] sm:$0xff]  ;;  %v194_v29 = vld [vmem:[#allocation2 + $0xe8] sm:$0xff]  ;;  %v3120_v32 = vpack.c.bf16 %v272_v24, %v264_v23  ;;  %v263_v33 = vld [vmem:[#allocation2 + $0x310] sm:$0xff] }
  0xcd   :  { %3085 = vmatprep.subr.bf16.mxu0 %v3084_v51  ;;  %v4463_v30 = vld [vmem:[%s4609_s0] sm:$0xff]  ;;  %v271_v34 = vld [vmem:[#allocation2 + $0x350] sm:$0xff]  ;;  %v280_v35 = vld [vmem:[#allocation2 + $0x398] sm:$0xff]  ;;  %v3130_v36 = vpack.c.bf16 %v177_v27, %v169_v26  ;;  %v3132_v38 = vpack.c.bf16 %v194_v29, %v186_v28 }
  0xce   :  { %3115 = vmatpush1.bf16.msra.mxu1 %v3114_v18  ;;  %v288_v37 = vld [vmem:[#allocation2 + $0x3d8] sm:$0xff]  ;;  %v185_v39 = vld [vmem:[#allocation2 + $0xa0] sm:$0xff]  ;;  %v202_v41 = vld [vmem:[#allocation2 + $0x128] sm:$0xff]  ;;  %v3122_v43 = vpack.c.bf16 %v271_v34, %v263_v33 }
  0xcf   :  { %3117 = vmatprep.subr.bf16.mxu1 %v3116_v20  ;;  %v193_v40 = vld [vmem:[#allocation2 + $0xe0] sm:$0xff]  ;;  %v210_v42 = vld [vmem:[#allocation2 + $0x168] sm:$0xff]  ;;  %v3124_v44 = vpack.c.bf16 %v288_v37, %v280_v35  ;;  %v279_v45 = vld [vmem:[#allocation2 + $0x390] sm:$0xff] }
  0xd0   :  { %3087 = vmatpush1.bf16.msra.mxu0 %v3086_v58  ;;  %v287_v46 = vld [vmem:[#allocation2 + $0x3d0] sm:$0xff]  ;;  %v3134_v47 = vpack.c.bf16 %v193_v40, %v185_v39  ;;  %v201_v48 = vld [vmem:[#allocation2 + $0x120] sm:$0xff]  ;;  %v3136_v49 = vpack.c.bf16 %v210_v42, %v202_v41  ;;  %v172_v51 = vld [vmem:[#allocation2 + $0x38] sm:$0xff] }
  0xd1   :  { %3089 = vmatprep.subr.bf16.mxu0 %v3088_v63  ;;  %v209_v50 = vld [vmem:[#allocation2 + $0x160] sm:$0xff]  ;;  %v180_v52 = vld [vmem:[#allocation2 + $0x78] sm:$0xff]  ;;  %v218_v53 = vld [vmem:[#allocation2 + $0x1a8] sm:$0xff]  ;;  %v3126_v55 = vpack.c.bf16 %v287_v46, %v279_v45 }
  0xd2   :  { %3119 = vmatpush1.bf16.msra.mxu1 %v3118_v31  ;;  %v226_v54 = vld [vmem:[#allocation2 + $0x1e8] sm:$0xff]  ;;  %v3138_v56 = vpack.c.bf16 %v209_v50, %v201_v48  ;;  %v217_v57 = vld [vmem:[#allocation2 + $0x1a0] sm:$0xff]  ;;  %v3160_v58 = vpack.c.bf16 %v180_v52, %v172_v51  ;;  %v171_v59 = vld [vmem:[#allocation2 + $0x30] sm:$0xff] }
  0xd3   :  { %3121 = vmatprep.subr.bf16.mxu1 %v3120_v32  ;;  %v179_v60 = vld [vmem:[#allocation2 + $0x70] sm:$0xff]  ;;  %v3140_v61 = vpack.c.bf16 %v226_v54, %v218_v53  ;;  %v225_v62 = vld [vmem:[#allocation2 + $0x1e0] sm:$0xff]  ;;  %v188_v63 = vld [vmem:[#allocation2 + $0xb8] sm:$0xff] }
  0xd4   :  { %3091 = vmatpush1.bf16.msra.mxu0 %v3090_v7  ;;  %v196_v1 = vld [vmem:[#allocation2 + $0xf8] sm:$0xff]  ;;  %v234_v2 = vld [vmem:[#allocation2 + $0x228] sm:$0xff]  ;;  %v3162_v4 = vpack.c.bf16 %v179_v60, %v171_v59  ;;  %v3142_v5 = vpack.c.bf16 %v225_v62, %v217_v57  ;;  %v233_v6 = vld [vmem:[#allocation2 + $0x220] sm:$0xff] }
  0xd5   :  { %3093 = vmatprep.subr.bf16.mxu0 %v3092_v12  ;;  %v242_v3 = vld [vmem:[#allocation2 + $0x268] sm:$0xff]  ;;  %v3164_v7 = vpack.c.bf16 %v196_v1, %v188_v63  ;;  %v187_v8 = vld [vmem:[#allocation2 + $0xb0] sm:$0xff]  ;;  %v241_v11 = vld [vmem:[#allocation2 + $0x260] sm:$0xff] }
  0xd6   :  { %3123 = vmatpush1.bf16.msra.mxu1 %v3122_v43  ;;  %v195_v9 = vld [vmem:[#allocation2 + $0xf0] sm:$0xff]  ;;  %v3144_v10 = vpack.c.bf16 %v242_v3, %v234_v2  ;;  %v204_v12 = vld [vmem:[#allocation2 + $0x138] sm:$0xff]  ;;  %v250_v14 = vld [vmem:[#allocation2 + $0x2a8] sm:$0xff]  ;;  %v3146_v17 = vpack.c.bf16 %v241_v11, %v233_v6 }
  0xd7   :  { %3125 = vmatprep.subr.bf16.mxu1 %v3124_v44  ;;  %v212_v13 = vld [vmem:[#allocation2 + $0x178] sm:$0xff]  ;;  %v258_v15 = vld [vmem:[#allocation2 + $0x2e8] sm:$0xff]  ;;  %v3166_v16 = vpack.c.bf16 %v195_v9, %v187_v8  ;;  %v249_v18 = vld [vmem:[#allocation2 + $0x2a0] sm:$0xff] }
  0xd8   :  { %3095 = vmatpush1.bf16.msra.mxu0 %v3094_v19  ;;  %v3168_v19 = vpack.c.bf16 %v212_v13, %v204_v12  ;;  %v203_v20 = vld [vmem:[#allocation2 + $0x130] sm:$0xff]  ;;  %v3148_v22 = vpack.c.bf16 %v258_v15, %v250_v14  ;;  %v257_v23 = vld [vmem:[#allocation2 + $0x2e0] sm:$0xff]  ;;  %v220_v24 = vld [vmem:[#allocation2 + $0x1b8] sm:$0xff] }
  0xd9   :  { %3129 = vmatprep.subr.bf16.mxu0 %v3128_v25  ;;  %v211_v21 = vld [vmem:[#allocation2 + $0x170] sm:$0xff]  ;;  %v228_v25 = vld [vmem:[#allocation2 + $0x1f8] sm:$0xff]  ;;  %v266_v26 = vld [vmem:[#allocation2 + $0x328] sm:$0xff]  ;;  %v3150_v29 = vpack.c.bf16 %v257_v23, %v249_v18 }
  0xda   :  { %3127 = vmatpush1.bf16.msra.mxu1 %v3126_v55  ;;  %v274_v27 = vld [vmem:[#allocation2 + $0x368] sm:$0xff]  ;;  %v3170_v28 = vpack.c.bf16 %v211_v21, %v203_v20  ;;  %v265_v31 = vld [vmem:[#allocation2 + $0x320] sm:$0xff]  ;;  %v3172_v32 = vpack.c.bf16 %v228_v25, %v220_v24  ;;  %v219_v33 = vld [vmem:[#allocation2 + $0x1b0] sm:$0xff] }
  0xdb   :  { %400 = vmatmul.mubr.f32.vlgmr.msra.gmra.mrb[0].mxu0 %v4463_v30  ;;  %3161 = vmatprep.subr.bf16.mxu1 %v3160_v58  ;;  %v227_v34 = vld [vmem:[#allocation2 + $0x1f0] sm:$0xff]  ;;  %v3152_v35 = vpack.c.bf16 %v274_v27, %v266_v26  ;;  %v236_v37 = vld [vmem:[#allocation2 + $0x238] sm:$0xff]  ;;  %v282_v39 = vld [vmem:[#allocation2 + $0x3a8] sm:$0xff] }
  0xdc   :  { %3131 = vmatpush1.bf16.msra.mxu0 %v3130_v36  ;;  %541 = vmatprep.mubr.f32.mxu0 %v4275_v0  ;;  %v273_v36 = vld [vmem:[#allocation2 + $0x360] sm:$0xff]  ;;  %v290_v40 = vld [vmem:[#allocation2 + $0x3e8] sm:$0xff]  ;;  %v3174_v41 = vpack.c.bf16 %v227_v34, %v219_v33  ;;  %v235_v45 = vld [vmem:[#allocation2 + $0x230] sm:$0xff] }
  0xdd   :  { %3133 = vmatprep.subr.bf16.mxu0 %v3132_v38  ;;  %471 = vmatmul.mubr.f32.vlgmr.msra.gmra.mrb[0].mxu1 %v4463_v30  ;;  %v244_v38 = vld [vmem:[#allocation2 + $0x278] sm:$0xff]  ;;  %v3154_v42 = vpack.c.bf16 %v273_v36, %v265_v31  ;;  %v281_v43 = vld [vmem:[#allocation2 + $0x3a0] sm:$0xff]  ;;  %v243_v46 = vld [vmem:[#allocation2 + $0x270] sm:$0xff] }
  0xde   :  { %3163 = vmatpush1.bf16.msra.mxu1 %v3162_v4  ;;  %612 = vmatprep.mubr.f32.mxu1 %v4275_v0  ;;  %v3176_v44 = vpack.c.bf16 %v244_v38, %v236_v37  ;;  %v289_v48 = vld [vmem:[#allocation2 + $0x3e0] sm:$0xff]  ;;  %v260_v50 = vld [vmem:[#allocation2 + $0x2f8] sm:$0xff]  ;;  %v628_v51 = vld [vmem:[#allocation6 + $0x8] sm:$0xff]  ;;  %v3178_v53 = vpack.c.bf16 %v243_v46, %v235_v45 }
  0xdf   :  { %3165 = vmatprep.subr.bf16.mxu1 %v3164_v7  ;;  %v631_v52 = vld [vmem:[#allocation6 + $0x20] sm:$0xff]  ;;  %v3158_v54 = vpack.c.bf16 %v289_v48, %v281_v43  ;;  %v259_v57 = vld [vmem:[#allocation2 + $0x2f0] sm:$0xff]  ;;  %v268_v58 = vld [vmem:[#allocation2 + $0x338] sm:$0xff] }
  0xe0   :  { %3135 = vmatpush1.bf16.msra.mxu0 %v3134_v47  ;;  %v3156_v47 = vpack.c.bf16 %v290_v40, %v282_v39  ;;  %v276_v59 = vld [vmem:[#allocation2 + $0x378] sm:$0xff]  ;;  %v3192_v60 = vpack.c.bf16 %v631_v52, %v628_v51  ;;  %v630_v62 = vld [vmem:[#allocation6 + $0x18] sm:$0xff]  ;;  %v267_v4 = vld [vmem:[#allocation2 + $0x330] sm:$0xff] }
  0xe1   :  { %3137 = vmatprep.subr.bf16.mxu0 %v3136_v49  ;;  %v252_v49 = vld [vmem:[#allocation2 + $0x2b8] sm:$0xff]  ;;  %v634_v63 = vld [vmem:[#allocation6 + $0x38] sm:$0xff]  ;;  %v3184_v3 = vpack.c.bf16 %v276_v59, %v268_v58  ;;  %v636_v11 = vld [vmem:[#allocation6 + $0x48] sm:$0xff] }
  0xe2   :  { %3167 = vmatpush1.bf16.msra.mxu1 %v3166_v16  ;;  %v3180_v55 = vpack.c.bf16 %v260_v50, %v252_v49  ;;  %v637_v1 = vld [vmem:[#allocation6 + $0x50] sm:$0xff]  ;;  %v640_v12 = vld [vmem:[#allocation6 + $0x68] sm:$0xff]  ;;  %v643_v13 = vld [vmem:[#allocation6 + $0x80] sm:$0xff] }
  0xe3   :  { %3169 = vmatprep.subr.bf16.mxu1 %v3168_v19  ;;  %v284_v6 = vld [vmem:[#allocation2 + $0x3b8] sm:$0xff]  ;;  %v3196_v9 = vpack.c.bf16 %v637_v1, %v634_v63  ;;  %v283_v16 = vld [vmem:[#allocation2 + $0x3b0] sm:$0xff]  ;;  %v639_v19 = vld [vmem:[#allocation6 + $0x60] sm:$0xff]  ;;  %v3200_v20 = vpack.c.bf16 %v643_v13, %v640_v12 }
  0xe4   :  { %3139 = vmatpush1.bf16.msra.mxu0 %v3138_v56  ;;  %v251_v56 = vld [vmem:[#allocation2 + $0x2b0] sm:$0xff]  ;;  %v292_v8 = vld [vmem:[#allocation2 + $0x3f8] sm:$0xff]  ;;  %v642_v21 = vld [vmem:[#allocation6 + $0x78] sm:$0xff] }
  0xe5   :  { %3141 = vmatprep.subr.bf16.mxu0 %v3140_v61  ;;  %v627_v61 = vld [vmem:[#allocation6] sm:$0xff]  ;;  %v3182_v2 = vpack.c.bf16 %v259_v57, %v251_v56  ;;  %v3188_v15 = vpack.c.bf16 %v292_v8, %v284_v6  ;;  %v680_v23 = vld [vmem:[#allocation6 + $0x1a8] sm:$0xff]  ;;  %v646_v24 = vld [vmem:[#allocation6 + $0x98] sm:$0xff]  ;;  %v3202_v27 = vpack.c.bf16 %v642_v21, %v639_v19 }
  0xe6   :  { %3171 = vmatpush1.bf16.msra.mxu1 %v3170_v28  ;;  %v3194_v7 = vpack.c.bf16 %v630_v62, %v627_v61  ;;  %v649_v25 = vld [vmem:[#allocation6 + $0xb0] sm:$0xff]  ;;  %v648_v34 = vld [vmem:[#allocation6 + $0xa8] sm:$0xff]  ;;  %v686_v36 = vld [vmem:[#allocation6 + $0x1d8] sm:$0xff] }
  0xe7   :  { %3173 = vmatprep.subr.bf16.mxu1 %v3172_v32  ;;  %v645_v28 = vld [vmem:[#allocation6 + $0x90] sm:$0xff]  ;;  %v632_v32 = vld [vmem:[#allocation6 + $0x28] sm:$0xff]  ;;  %v3204_v33 = vpack.c.bf16 %v649_v25, %v646_v24  ;;  %v655_v38 = vld [vmem:[#allocation6 + $0xe0] sm:$0xff] }
  0xe8   :  { %3143 = vmatpush1.bf16.msra.mxu0 %v3142_v5  ;;  %v275_v5 = vld [vmem:[#allocation2 + $0x370] sm:$0xff]  ;;  %v629_v31 = vld [vmem:[#allocation6 + $0x10] sm:$0xff]  ;;  %v3206_v40 = vpack.c.bf16 %v648_v34, %v645_v28  ;;  %v635_v43 = vld [vmem:[#allocation6 + $0x40] sm:$0xff] }
  0xe9   :  { %3145 = vmatprep.subr.bf16.mxu0 %v3144_v10  ;;  %v633_v10 = vld [vmem:[#allocation6 + $0x30] sm:$0xff]  ;;  %v3186_v14 = vpack.c.bf16 %v275_v5, %v267_v4  ;;  %v652_v37 = vld [vmem:[#allocation6 + $0xc8] sm:$0xff]  ;;  %v3450_v39 = vpack.c.bf16 %v632_v32, %v629_v31  ;;  %v654_v46 = vld [vmem:[#allocation6 + $0xd8] sm:$0xff] }
  0xea   :  { %3175 = vmatpush1.bf16.msra.mxu1 %v3174_v41  ;;  %v3198_v18 = vpack.c.bf16 %v636_v11, %v633_v10  ;;  %v651_v41 = vld [vmem:[#allocation6 + $0xc0] sm:$0xff]  ;;  %v3208_v45 = vpack.c.bf16 %v655_v38, %v652_v37  ;;  %v692_v48 = vld [vmem:[#allocation6 + $0x208] sm:$0xff]  ;;  %v658_v49 = vld [vmem:[#allocation6 + $0xf8] sm:$0xff] }
  0xeb   :  { %3177 = vmatprep.subr.bf16.mxu1 %v3176_v44  ;;  %v638_v44 = vld [vmem:[#allocation6 + $0x58] sm:$0xff]  ;;  %v661_v50 = vld [vmem:[#allocation6 + $0x110] sm:$0xff]  ;;  %v3210_v52 = vpack.c.bf16 %v654_v46, %v651_v41  ;;  %v644_v56 = vld [vmem:[#allocation6 + $0x88] sm:$0xff] }
  0xec   :  { %3147 = vmatpush1.bf16.msra.mxu0 %v3146_v17  ;;  %v291_v17 = vld [vmem:[#allocation2 + $0x3f0] sm:$0xff]  ;;  %v3454_v51 = vpack.c.bf16 %v638_v44, %v635_v43  ;;  %v3212_v57 = vpack.c.bf16 %v661_v50, %v658_v49  ;;  %v695_v59 = vld [vmem:[#allocation6 + $0x220] sm:$0xff]  ;;  %v650_v4 = vld [vmem:[#allocation6 + $0xb8] sm:$0xff] }
  0xed   :  { %3149 = vmatprep.subr.bf16.mxu0 %v3148_v22  ;;  %v677_v22 = vld [vmem:[#allocation6 + $0x190] sm:$0xff]  ;;  %v3190_v26 = vpack.c.bf16 %v291_v17, %v283_v16  ;;  %v660_v58 = vld [vmem:[#allocation6 + $0x108] sm:$0xff]  ;;  %v667_v62 = vld [vmem:[#allocation6 + $0x140] sm:$0xff] }
  0xee   :  { %3179 = vmatpush1.bf16.msra.mxu1 %v3178_v53  ;;  %v657_v53 = vld [vmem:[#allocation6 + $0xf0] sm:$0xff]  ;;  %v664_v61 = vld [vmem:[#allocation6 + $0x128] sm:$0xff]  ;;  %v663_v1 = vld [vmem:[#allocation6 + $0x120] sm:$0xff] }
  0xef   :  { %3181 = vmatprep.subr.bf16.mxu1 %v3180_v55  ;;  %v641_v55 = vld [vmem:[#allocation6 + $0x70] sm:$0xff]  ;;  %v3214_v63 = vpack.c.bf16 %v660_v58, %v657_v53  ;;  %v3216_v5 = vpack.c.bf16 %v667_v62, %v664_v61  ;;  %v666_v6 = vld [vmem:[#allocation6 + $0x138] sm:$0xff]  ;;  %v704_v8 = vld [vmem:[#allocation6 + $0x268] sm:$0xff] }
  0xf0   :  { %3151 = vmatpush1.bf16.msra.mxu0 %v3150_v29  ;;  %v3448_v29 = vpack.c.bf16 %v680_v23, %v677_v22  ;;  %v673_v10 = vld [vmem:[#allocation6 + $0x170] sm:$0xff]  ;;  %v3218_v12 = vpack.c.bf16 %v666_v6, %v663_v1  ;;  %v656_v16 = vld [vmem:[#allocation6 + $0xe8] sm:$0xff]  ;;  %v707_v19 = vld [vmem:[#allocation6 + $0x280] sm:$0xff] }
  0xf1   :  { %3153 = vmatprep.subr.bf16.mxu0 %v3152_v35  ;;  %v683_v35 = vld [vmem:[#allocation6 + $0x1c0] sm:$0xff]  ;;  %v669_v13 = vld [vmem:[#allocation6 + $0x150] sm:$0xff]  ;;  %v676_v21 = vld [vmem:[#allocation6 + $0x188] sm:$0xff] }
  0xf2   :  { %3183 = vmatpush1.bf16.msra.mxu1 %v3182_v2  ;;  %v679_v22 = vld [vmem:[#allocation6 + $0x1a0] sm:$0xff]  ;;  %v662_v28 = vld [vmem:[#allocation6 + $0x118] sm:$0xff]  ;;  %v713_v32 = vld [vmem:[#allocation6 + $0x2b0] sm:$0xff] }
  0xf3   :  { %3185 = vmatprep.subr.bf16.mxu1 %v3184_v3  ;;  %v647_v3 = vld [vmem:[#allocation6 + $0xa0] sm:$0xff]  ;;  %v678_v31 = vld [vmem:[#allocation6 + $0x198] sm:$0xff]  ;;  %v684_v43 = vld [vmem:[#allocation6 + $0x1c8] sm:$0xff] }
  0xf4   :  { %3155 = vmatpush1.bf16.msra.mxu0 %v3154_v42  ;;  %v3452_v42 = vpack.c.bf16 %v686_v36, %v683_v35  ;;  %v3462_v11 = vpack.c.bf16 %v650_v4, %v647_v3  ;;  %v675_v25 = vld [vmem:[#allocation6 + $0x180] sm:$0xff]  ;;  %v682_v34 = vld [vmem:[#allocation6 + $0x1b8] sm:$0xff]  ;;  %v685_v35 = vld [vmem:[#allocation6 + $0x1d0] sm:$0xff] }
  0xf5   :  { %3157 = vmatprep.subr.bf16.mxu0 %v3156_v47  ;;  %v689_v47 = vld [vmem:[#allocation6 + $0x1f0] sm:$0xff]  ;;  %v3226_v37 = vpack.c.bf16 %v678_v31, %v675_v25  ;;  %v3228_v41 = vpack.c.bf16 %v685_v35, %v682_v34  ;;  %v688_v44 = vld [vmem:[#allocation6 + $0x1e8] sm:$0xff]  ;;  %v687_v49 = vld [vmem:[#allocation6 + $0x1e0] sm:$0xff]  ;;  %v295_v31 = vlaneseq }
  0xf6   :  { %3187 = vmatpush1.bf16.msra.mxu1 %v3186_v14  ;;  %v690_v50 = vld [vmem:[#allocation6 + $0x1f8] sm:$0xff]  ;;  %v703_v58 = vld [vmem:[#allocation6 + $0x260] sm:$0xff]  ;;  %v705_v3 = vld [vmem:[#allocation6 + $0x270] sm:$0xff] }
  0xf7   :  { %3189 = vmatprep.subr.bf16.mxu1 %v3188_v15  ;;  %v653_v15 = vld [vmem:[#allocation6 + $0xd0] sm:$0xff]  ;;  %v3234_v53 = vpack.c.bf16 %v690_v50, %v687_v49  ;;  %v699_v61 = vld [vmem:[#allocation6 + $0x240] sm:$0xff]  ;;  %v702_v62 = vld [vmem:[#allocation6 + $0x258] sm:$0xff] }
  0xf8   :  { %3159 = vmatpush1.bf16.msra.mxu0 %v3158_v54  ;;  %v3456_v54 = vpack.c.bf16 %v692_v48, %v689_v47  ;;  %v3466_v23 = vpack.c.bf16 %v656_v16, %v653_v15  ;;  %v3242_v1 = vpack.c.bf16 %v702_v62, %v699_v61  ;;  %v708_v4 = vld [vmem:[#allocation6 + $0x288] sm:$0xff]  ;;  %v715_v6 = vld [vmem:[#allocation6 + $0x2c0] sm:$0xff]  ;;  %v4476_v34 = vld [vmem:[#allocation4] sm:$0xff] }
  0xf9   :  { %3193 = vmatprep.subr.bf16.mxu0 %v3192_v60  ;;  %v698_v60 = vld [vmem:[#allocation6 + $0x238] sm:$0xff]  ;;  %v671_v16 = vld [vmem:[#allocation6 + $0x160] sm:$0xff] }
  0xfa   :  { %3191 = vmatpush1.bf16.msra.mxu1 %v3190_v26  ;;  %v3460_v2 = vpack.c.bf16 %v698_v60, %v695_v59  ;;  %v727_v25 = vld [vmem:[#allocation6 + $0x320] sm:$0xff]  ;;  %v782_v49 = vld [vmem:[#allocation6 + $0x4d8] sm:$0xff] }
  0xfb   :  { %542 = vmatmul.mubr.f32.vlgmr.msra.gmra.mrb[2].mxu0 %v4463_v30  ;;  %3449 = vmatprep.subr.bf16.mxu1 %v3448_v29  ;;  %v3224_v29 = vpack.c.bf16 %v679_v22, %v676_v21  ;;  %v717_v21 = vld [vmem:[#allocation6 + $0x2d0] sm:$0xff]  ;;  %v720_v22 = vld [vmem:[#allocation6 + $0x2e8] sm:$0xff]  ;;  %v739_v62 = vld [vmem:[#allocation6 + $0x380] sm:$0xff] }
  0xfc   :  { %3195 = vmatpush1.bf16.msra.mxu0 %v3194_v7  ;;  %v701_v7 = vld [vmem:[#allocation6 + $0x250] sm:$0xff] }
  0xfd   :  { %3197 = vmatprep.subr.bf16.mxu0 %v3196_v9  ;;  %613 = vmatmul.mubr.f32.vlgmr.msra.gmra.mrb[2].mxu1 %v4463_v30  ;;  %v3458_v30 = vpack.c.bf16 %v644_v56, %v641_v55  ;;  %v670_v9 = vld [vmem:[#allocation6 + $0x158] sm:$0xff]  ;;  %v3464_v14 = vpack.c.bf16 %v704_v8, %v701_v7  ;;  %v693_v55 = vld [vmem:[#allocation6 + $0x210] sm:$0xff]  ;;  %v696_v56 = vld [vmem:[#allocation6 + $0x228] sm:$0xff]  ;;  %v3246_v7 = vpack.c.bf16 %v708_v4, %v705_v3 }
  0xfe   :  { %3451 = vmatpush3.bf16.msra.mxu1 %v3450_v39  ;;  %v3220_v17 = vpack.c.bf16 %v673_v10, %v670_v9  ;;  %v665_v39 = vld [vmem:[#allocation6 + $0x130] sm:$0xff]  ;;  %v3238_v59 = vpack.c.bf16 %v696_v56, %v693_v55  ;;  %v711_v9 = vld [vmem:[#allocation6 + $0x2a0] sm:$0xff]  ;;  %v714_v10 = vld [vmem:[#allocation6 + $0x2b8] sm:$0xff] }
  0xff   :  { %3453 = vmatprep.subr.bf16.mxu1 %v3452_v42  ;;  %v681_v42 = vld [vmem:[#allocation6 + $0x1b0] sm:$0xff]  ;;  %v735_v3 = vld [vmem:[#allocation6 + $0x360] sm:$0xff]  ;;  %v738_v4 = vld [vmem:[#allocation6 + $0x378] sm:$0xff] }
 0x100   :  { %3199 = vmatpush1.bf16.msra.mxu0 %v3198_v18  ;;  %v672_v18 = vld [vmem:[#allocation6 + $0x168] sm:$0xff]  ;;  %v3230_v47 = vpack.c.bf16 %v684_v43, %v681_v42  ;;  %v725_v43 = vld [vmem:[#allocation6 + $0x310] sm:$0xff] }
 0x101   :  { %3201 = vmatprep.subr.bf16.mxu0 %v3200_v20  ;;  %v710_v20 = vld [vmem:[#allocation6 + $0x298] sm:$0xff]  ;;  %v3222_v24 = vpack.c.bf16 %v672_v18, %v669_v13  ;;  %v721_v13 = vld [vmem:[#allocation6 + $0x2f0] sm:$0xff]  ;;  %v3250_v18 = vpack.c.bf16 %v714_v10, %v711_v9 }
 0x102   :  { %3455 = vmatpush3.bf16.msra.mxu1 %v3454_v51  ;;  %v3468_v26 = vpack.c.bf16 %v710_v20, %v707_v19  ;;  %v694_v51 = vld [vmem:[#allocation6 + $0x218] sm:$0xff] }
 0x103   :  { %3457 = vmatprep.subr.bf16.mxu1 %v3456_v54  ;;  %v742_v9 = vld [vmem:[#allocation6 + $0x398] sm:$0xff] }
 0x104   :  { %3203 = vmatpush1.bf16.msra.mxu0 %v3202_v27  ;;  %v659_v27 = vld [vmem:[#allocation6 + $0x100] sm:$0xff] }
 0x105   :  { %3205 = vmatprep.subr.bf16.mxu0 %v3204_v33  ;;  %v716_v33 = vld [vmem:[#allocation6 + $0x2c8] sm:$0xff]  ;;  %v3470_v36 = vpack.c.bf16 %v662_v28, %v659_v27  ;;  %v3254_v28 = vpack.c.bf16 %v720_v22, %v717_v21  ;;  %v743_v22 = vld [vmem:[#allocation6 + $0x3a0] sm:$0xff] }
 0x106   :  { %3459 = vmatpush3.bf16.msra.mxu1 %v3458_v30  ;;  %v3472_v38 = vpack.c.bf16 %v716_v33, %v713_v32  ;;  %v706_v30 = vld [vmem:[#allocation6 + $0x278] sm:$0xff]  ;;  %v4471_v32 = vshrl.u32 %v295_v31, 7 }
 0x107   :  { %3461 = vmatprep.subr.bf16.mxu1 %v3460_v2 }
 0x108   :  { %3207 = vmatpush1.bf16.msra.mxu0 %v3206_v40  ;;  %v668_v40 = vld [vmem:[#allocation6 + $0x148] sm:$0xff]  ;;  %v4474_v33 = vsub.s32 0, %v4471_v32  ;;  %v4479_v35 = vsub.s32 1, %v4471_v32  ;;  %v309_v61 = vsub.s32 3, %v4471_v32 }
 0x109   :  { %3209 = vmatprep.subr.bf16.mxu0 %v3208_v45  ;;  %v691_v45 = vld [vmem:[#allocation6 + $0x200] sm:$0xff]  ;;  %v3474_v46 = vpack.c.bf16 %v668_v40, %v665_v39  ;;  %v726_v40 = vld [vmem:[#allocation6 + $0x318] sm:$0xff] }
 0x10a   :  { %3463 = vmatpush3.bf16.msra.mxu1 %v3462_v11  ;;  %v3232_v48 = vpack.c.bf16 %v691_v45, %v688_v44  ;;  %v719_v11 = vld [vmem:[#allocation6 + $0x2e0] sm:$0xff]  ;;  %v728_v44 = vld [vmem:[#allocation6 + $0x328] sm:$0xff]  ;;  %v730_v45 = vld [vmem:[#allocation6 + $0x338] sm:$0xff]  ;;  %v310_v10 = vrot.slane %v4476_v34, %v309_v61 }
 0x10b   :  { %3465 = vmatprep.subr.bf16.mxu1 %v3464_v14  ;;  %v722_v14 = vld [vmem:[#allocation6 + $0x2f8] sm:$0xff]  ;;  %v723_v39 = vld [vmem:[#allocation6 + $0x300] sm:$0xff] }
 0x10c   :  { %3211 = vmatpush1.bf16.msra.mxu0 %v3210_v52  ;;  %v697_v52 = vld [vmem:[#allocation6 + $0x230] sm:$0xff]  ;;  %v3476_v15 = vpack.c.bf16 %v722_v14, %v719_v11 }
 0x10d   :  { %3213 = vmatprep.subr.bf16.mxu0 %v3212_v57  ;;  %v3236_v54 = vpack.c.bf16 %v697_v52, %v694_v51  ;;  %v700_v57 = vld [vmem:[#allocation6 + $0x248] sm:$0xff]  ;;  %v3258_v51 = vpack.c.bf16 %v726_v40, %v723_v39  ;;  %v3482_v52 = vpack.c.bf16 %v728_v44, %v725_v43  ;;  %v745_v11 = vld [vmem:[#allocation6 + $0x3b0] sm:$0xff]  ;;  %v754_v43 = vld [vmem:[#allocation6 + $0x3f8] sm:$0xff] }
 0x10e   :  { %3467 = vmatpush3.bf16.msra.mxu1 %v3466_v23  ;;  %v3240_v60 = vpack.c.bf16 %v703_v58, %v700_v57  ;;  %v773_v23 = vld [vmem:[#allocation6 + $0x490] sm:$0xff]  ;;  %v731_v58 = vld [vmem:[#allocation6 + $0x340] sm:$0xff] }
 0x10f   :  { %3469 = vmatprep.subr.bf16.mxu1 %v3468_v26  ;;  %v776_v26 = vld [vmem:[#allocation6 + $0x4a8] sm:$0xff]  ;;  %v757_v44 = vld [vmem:[#allocation6 + $0x410] sm:$0xff] }
 0x110   :  { %3215 = vmatpush1.bf16.msra.mxu0 %v3214_v63  ;;  %v709_v63 = vld [vmem:[#allocation6 + $0x290] sm:$0xff]  ;;  %v3480_v27 = vpack.c.bf16 %v776_v26, %v773_v23  ;;  %v746_v23 = vld [vmem:[#allocation6 + $0x3b8] sm:$0xff]  ;;  %v751_v26 = vld [vmem:[#allocation6 + $0x3e0] sm:$0xff] }
 0x111   :  { %3217 = vmatprep.subr.bf16.mxu0 %v3216_v5  ;;  %v3244_v2 = vpack.c.bf16 %v709_v63, %v706_v30  ;;  %v712_v5 = vld [vmem:[#allocation6 + $0x2a8] sm:$0xff]  ;;  %v785_v30 = vld [vmem:[#allocation6 + $0x4f0] sm:$0xff] }
 0x112   :  { %3471 = vmatpush3.bf16.msra.mxu1 %v3470_v36  ;;  %v3248_v8 = vpack.c.bf16 %v715_v6, %v712_v5  ;;  %v298_v36 = vrot.slane %v4476_v34, %v4474_v33  ;;  %v788_v63 = vld [vmem:[#allocation6 + $0x508] sm:$0xff] }
 0x113   :  { %3473 = vmatprep.subr.bf16.mxu1 %v3472_v38  ;;  %v3488_v6 = vpack.c.bf16 %v788_v63, %v785_v30  ;;  %v759_v30 = vld [vmem:[#allocation6 + $0x420] sm:$0xff]  ;;  %v762_v63 = vld [vmem:[#allocation6 + $0x438] sm:$0xff] }
 0x114   :  { %3219 = vmatpush1.bf16.msra.mxu0 %v3218_v12  ;;  %v718_v12 = vld [vmem:[#allocation6 + $0x2d8] sm:$0xff] }
 0x115   :  { %3221 = vmatprep.subr.bf16.mxu0 %v3220_v17  ;;  %v674_v17 = vld [vmem:[#allocation6 + $0x178] sm:$0xff]  ;;  %v3252_v20 = vpack.c.bf16 %v721_v13, %v718_v12  ;;  %v791_v12 = vld [vmem:[#allocation6 + $0x520] sm:$0xff] }
 0x116   :  { %3475 = vmatpush3.bf16.msra.mxu1 %v3474_v46  ;;  %v3478_v19 = vpack.c.bf16 %v674_v17, %v671_v16  ;;  %v794_v13 = vld [vmem:[#allocation6 + $0x538] sm:$0xff]  ;;  %v741_v17 = vld [vmem:[#allocation6 + $0x390] sm:$0xff] }
 0x117   :  { %3477 = vmatprep.subr.bf16.mxu1 %v3476_v15  ;;  %v3266_v15 = vpack.c.bf16 %v738_v4, %v735_v3  ;;  %v3492_v21 = vpack.c.bf16 %v794_v13, %v791_v12  ;;  %v761_v3 = vld [vmem:[#allocation6 + $0x430] sm:$0xff]  ;;  %v764_v4 = vld [vmem:[#allocation6 + $0x448] sm:$0xff] }
 0x118   :  { %3223 = vmatpush1.bf16.msra.mxu0 %v3222_v24  ;;  %v724_v24 = vld [vmem:[#allocation6 + $0x308] sm:$0xff]  ;;  %v3506_v12 = vpack.c.bf16 %v764_v4, %v761_v3  ;;  %v765_v13 = vld [vmem:[#allocation6 + $0x450] sm:$0xff] }
 0x119   :  { %3225 = vmatprep.subr.bf16.mxu0 %v3224_v29  ;;  %v3256_v29 = vpack.c.bf16 %v727_v25, %v724_v24  ;;  %v748_v24 = vld [vmem:[#allocation6 + $0x3c8] sm:$0xff]  ;;  %v833_v3 = vld [vmem:[#allocation6 + $0x670] sm:$0xff] }
 0x11a   :  { %3479 = vmatpush3.bf16.msra.mxu1 %v3478_v19  ;;  %v3272_v39 = vpack.c.bf16 %v751_v26, %v748_v24  ;;  %v836_v4 = vld [vmem:[#allocation6 + $0x688] sm:$0xff] }
 0x11b   :  { %3481 = vmatprep.subr.bf16.mxu1 %v3480_v27  ;;  %v797_v27 = vld [vmem:[#allocation6 + $0x550] sm:$0xff] }
 0x11c   :  { %3227 = vmatpush1.bf16.msra.mxu0 %v3226_v37  ;;  %v302_v37 = vrot.slane %v4476_v34, %v4479_v35 }
 0x11d   :  { %3229 = vmatprep.subr.bf16.mxu0 %v3228_v41 }
 0x120   :  { %3231 = vmatpush1.bf16.msra.mxu0 %v3230_v47  ;;  %v733_v47 = vld [vmem:[#allocation6 + $0x350] sm:$0xff] }
 0x121   :  { %3233 = vmatprep.subr.bf16.mxu0 %v3232_v48  ;;  %v779_v48 = vld [vmem:[#allocation6 + $0x4c0] sm:$0xff]  ;;  %v3260_v56 = vpack.c.bf16 %v733_v47, %v730_v45 }
 0x122   :  { %v3484_v57 = vpack.c.bf16 %v782_v49, %v779_v48  ;;  %v803_v45 = vld [vmem:[#allocation6 + $0x580] sm:$0xff]  ;;  %v753_v49 = vld [vmem:[#allocation6 + $0x3f0] sm:$0xff] }
 0x124   :  { %3235 = vmatpush1.bf16.msra.mxu0 %v3234_v53  ;;  %v729_v53 = vld [vmem:[#allocation6 + $0x330] sm:$0xff] }
 0x125   :  { %3237 = vmatprep.subr.bf16.mxu0 %v3236_v54  ;;  %v732_v54 = vld [vmem:[#allocation6 + $0x348] sm:$0xff] }
 0x128   :  { %3239 = vmatpush1.bf16.msra.mxu0 %v3238_v59  ;;  %v734_v59 = vld [vmem:[#allocation6 + $0x358] sm:$0xff] }
 0x129   :  { %3241 = vmatprep.subr.bf16.mxu0 %v3240_v60  ;;  %v736_v60 = vld [vmem:[#allocation6 + $0x368] sm:$0xff] }
 0x12a   :  { %v3264_v5 = vpack.c.bf16 %v739_v62, %v736_v60 }
 0x12c   :  { %3243 = vmatpush1.bf16.msra.mxu0 %v3242_v1  ;;  %v3262_v1 = vpack.c.bf16 %v732_v54, %v729_v53  ;;  %v755_v53 = vld [vmem:[#allocation6 + $0x400] sm:$0xff]  ;;  %v758_v54 = vld [vmem:[#allocation6 + $0x418] sm:$0xff] }
 0x12d   :  { %3245 = vmatprep.subr.bf16.mxu0 %v3244_v2  ;;  %v3486_v2 = vpack.c.bf16 %v734_v59, %v731_v58  ;;  %v812_v58 = vld [vmem:[#allocation6 + $0x5c8] sm:$0xff]  ;;  %v4492_v59 = vsub.s32 2, %v4471_v32  ;;  %v3502_v62 = vpack.c.bf16 %v758_v54, %v755_v53  ;;  %v830_v53 = vld [vmem:[#allocation6 + $0x658] sm:$0xff] }
 0x12e   :  { %v784_v54 = vld [vmem:[#allocation6 + $0x4e8] sm:$0xff] }
 0x130   :  { %3247 = vmatpush1.bf16.msra.mxu0 %v3246_v7  ;;  %v737_v7 = vld [vmem:[#allocation6 + $0x370] sm:$0xff] }
 0x131   :  { %3249 = vmatprep.subr.bf16.mxu0 %v3248_v8  ;;  %v740_v8 = vld [vmem:[#allocation6 + $0x388] sm:$0xff] }
 0x132   :  { %v3490_v16 = vpack.c.bf16 %v740_v8, %v737_v7  ;;  %v815_v7 = vld [vmem:[#allocation6 + $0x5e0] sm:$0xff]  ;;  %v818_v8 = vld [vmem:[#allocation6 + $0x5f8] sm:$0xff] }
 0x134   :  { %3251 = vmatpush1.bf16.msra.mxu0 %v3250_v18  ;;  %v744_v18 = vld [vmem:[#allocation6 + $0x3a8] sm:$0xff] }
 0x135   :  { %3253 = vmatprep.subr.bf16.mxu0 %v3252_v20  ;;  %v3268_v20 = vpack.c.bf16 %v745_v11, %v742_v9  ;;  %v3270_v31 = vpack.c.bf16 %v744_v18, %v741_v17  ;;  %v317_v9 = vsub.s32 5, %v4471_v32  ;;  %v3282_v11 = vpack.c.bf16 %v762_v63, %v759_v30  ;;  %v767_v18 = vld [vmem:[#allocation6 + $0x460] sm:$0xff]  ;;  %v786_v63 = vld [vmem:[#allocation6 + $0x4f8] sm:$0xff] }
 0x136   :  { %v3508_v17 = vpack.c.bf16 %v818_v8, %v815_v7  ;;  %v783_v30 = vld [vmem:[#allocation6 + $0x4e0] sm:$0xff]  ;;  %v890_v8 = vld [vmem:[#allocation6 + $0x838] sm:$0xff] }
 0x137   :  { %v318_v24 = vrot.slane %v4476_v34, %v317_v9  ;;  %v887_v7 = vld [vmem:[#allocation6 + $0x820] sm:$0xff] }
 0x138   :  { %3255 = vmatpush1.bf16.msra.mxu0 %v3254_v28  ;;  %v800_v28 = vld [vmem:[#allocation6 + $0x568] sm:$0xff] }
 0x139   :  { %3257 = vmatprep.subr.bf16.mxu0 %v3256_v29  ;;  %v3496_v40 = vpack.c.bf16 %v800_v28, %v797_v27  ;;  %v771_v28 = vld [vmem:[#allocation6 + $0x480] sm:$0xff] }
 0x1ae   :  { %v401_v38 = vpop.f32.mrb[0].mxu0 }
 0x1af   :  { %v402_v41 = vadd.f32 %v401_v38, %v298_v36  ;;  %v403_v42 = vpop.f32.mrb[1].mxu0  ;;  %v3494_v36 = vpack.c.bf16 %v746_v23, %v743_v22  ;;  %v750_v38 = vld [vmem:[#allocation6 + $0x3d8] sm:$0xff]  ;;  %v869_v22 = vld [vmem:[#allocation6 + $0x790] sm:$0xff]  ;;  %v872_v23 = vld [vmem:[#allocation6 + $0x7a8] sm:$0xff] }
 0x1b0   :  { %v404_v46 = vadd.f32 %v403_v42, %v302_v37  ;;  %v4489_v14 = vpop.f32.mrb[0].mxu1  ;;  %v747_v37 = vld [vmem:[#allocation6 + $0x3c0] sm:$0xff]  ;;  %v752_v42 = vld [vmem:[#allocation6 + $0x3e8] sm:$0xff] }
 0x1b1   :  { %v619_v55 = vmax.f32 %v402_v41, 0.0  ;;  %v474_v19 = vpop.f32.mrb[1].mxu1  ;;  %v749_v41 = vld [vmem:[#allocation6 + $0x3d0] sm:$0xff]  ;;  %v3274_v47 = vpack.c.bf16 %v750_v38, %v747_v37  ;;  %v3512_v37 = vpack.c.bf16 %v872_v23, %v869_v22  ;;  %v799_v22 = vld [vmem:[#allocation6 + $0x560] sm:$0xff] }
 0x1b2   :  { %v620_v50 = vmax.f32 %v404_v46, 0.0  ;;  %v475_v25 = vadd.f32 %v474_v19, %v310_v10  ;;  %v806_v46 = vld [vmem:[#allocation6 + $0x598] sm:$0xff]  ;;  %v3498_v48 = vpack.c.bf16 %v752_v42, %v749_v41  ;;  %v306_v10 = vrot.slane %v4476_v34, %v4492_v59  ;;  %v821_v38 = vld [vmem:[#allocation6 + $0x610] sm:$0xff] }
 0x1b3   :  { %v770_v19 = vld [vmem:[#allocation6 + $0x478] sm:$0xff]  ;;  %v781_v42 = vld [vmem:[#allocation6 + $0x4d0] sm:$0xff] }
 0x1b4   :  { %1092 = vmatprep.mubr.f32.mxu0 %v620_v50  ;;  %1376 = vmatprep.mubr.f32.mxu1 %v620_v50  ;;  %v622_v29 = vmax.f32 %v475_v25, 0.0  ;;  %v756_v50 = vld [vmem:[#allocation6 + $0x408] sm:$0xff]  ;;  %v4501_v25 = vadd.f32 %v4489_v14, %v306_v10  ;;  %v3510_v27 = vpack.c.bf16 %v770_v19, %v767_v18  ;;  %v878_v14 = vld [vmem:[#allocation6 + $0x7d8] sm:$0xff]  ;;  %v3524_v18 = vpack.c.bf16 %v890_v8, %v887_v7  ;;  %v839_v19 = vld [vmem:[#allocation6 + $0x6a0] sm:$0xff] }
 0x1b5   :  { %1093 = vmatmul.mubr.f32.vlgmr.msra.gmra.mrb[4].mxu0 %v619_v55  ;;  %1377 = vmatmul.mubr.f32.vlgmr.msra.gmra.mrb[4].mxu1 %v619_v55  ;;  %v760_v55 = vld [vmem:[#allocation6 + $0x428] sm:$0xff]  ;;  %v3278_v60 = vpack.c.bf16 %v756_v50, %v753_v49  ;;  %v893_v23 = vld [vmem:[#allocation6 + $0x850] sm:$0xff]  ;;  %v911_v7 = vld [vmem:[#allocation6 + $0x8e0] sm:$0xff] }
 0x1b6   :  { %3259 = vmatpush1.bf16.msra.mxu0 %v3258_v51  ;;  %3483 = vmatpush3.bf16.msra.mxu1 %v3482_v52  ;;  %v3276_v51 = vpack.c.bf16 %v757_v44, %v754_v43  ;;  %v3500_v52 = vpack.c.bf16 %v806_v46, %v803_v45  ;;  %v875_v43 = vld [vmem:[#allocation6 + $0x7c0] sm:$0xff]  ;;  %v621_v45 = vmax.f32 %v4501_v25, 0.0  ;;  %v780_v49 = vld [vmem:[#allocation6 + $0x4c8] sm:$0xff]  ;;  %v914_v8 = vld [vmem:[#allocation6 + $0x8f8] sm:$0xff] }
 0x1b7   :  { %3261 = vmatprep.subr.bf16.mxu0 %v3260_v56  ;;  %3485 = vmatprep.subr.bf16.mxu1 %v3484_v57  ;;  %v763_v56 = vld [vmem:[#allocation6 + $0x440] sm:$0xff]  ;;  %v809_v57 = vld [vmem:[#allocation6 + $0x5b0] sm:$0xff]  ;;  %v986_v25 = vld [vmem:[#allocation6 + $0xb38] sm:$0xff] }
 0x1b8   :  { %1446 = vmatprep.mubr.f32.mxu1 %v622_v29  ;;  %1163 = vmatprep.mubr.f32.mxu0 %v622_v29  ;;  %v774_v29 = vld [vmem:[#allocation6 + $0x498] sm:$0xff] }
 0x1b9   :  { %v3290_v46 = vpack.c.bf16 %v774_v29, %v771_v28  ;;  %v795_v28 = vld [vmem:[#allocation6 + $0x540] sm:$0xff]  ;;  %v798_v29 = vld [vmem:[#allocation6 + $0x558] sm:$0xff] }
 0x1ba   :  { %3263 = vmatpush1.bf16.msra.mxu0 %v3262_v1  ;;  %3487 = vmatpush3.bf16.msra.mxu1 %v3486_v2  ;;  %v3280_v1 = vpack.c.bf16 %v763_v56, %v760_v55  ;;  %v3504_v2 = vpack.c.bf16 %v812_v58, %v809_v57  ;;  %v787_v55 = vld [vmem:[#allocation6 + $0x500] sm:$0xff]  ;;  %v881_v56 = vld [vmem:[#allocation6 + $0x7f0] sm:$0xff]  ;;  %v884_v57 = vld [vmem:[#allocation6 + $0x808] sm:$0xff] }
 0x1bb   :  { %3265 = vmatprep.subr.bf16.mxu0 %v3264_v5  ;;  %3489 = vmatprep.subr.bf16.mxu1 %v3488_v6  ;;  %v766_v5 = vld [vmem:[#allocation6 + $0x458] sm:$0xff]  ;;  %v769_v6 = vld [vmem:[#allocation6 + $0x470] sm:$0xff] }
 0x1be   :  { %3267 = vmatpush1.bf16.msra.mxu0 %v3266_v15  ;;  %3491 = vmatpush3.bf16.msra.mxu1 %v3490_v16  ;;  %v768_v15 = vld [vmem:[#allocation6 + $0x468] sm:$0xff]  ;;  %v3284_v16 = vpack.c.bf16 %v769_v6, %v766_v5  ;;  %v790_v5 = vld [vmem:[#allocation6 + $0x518] sm:$0xff]  ;;  %v793_v6 = vld [vmem:[#allocation6 + $0x530] sm:$0xff] }
 0x1bf   :  { %3269 = vmatprep.subr.bf16.mxu0 %v3268_v20  ;;  %3493 = vmatprep.subr.bf16.mxu1 %v3492_v21  ;;  %v772_v20 = vld [vmem:[#allocation6 + $0x488] sm:$0xff]  ;;  %v775_v21 = vld [vmem:[#allocation6 + $0x4a0] sm:$0xff]  ;;  %v3286_v26 = vpack.c.bf16 %v768_v15, %v765_v13  ;;  %v789_v13 = vld [vmem:[#allocation6 + $0x510] sm:$0xff] }
 0x1c0   :  { %v792_v15 = vld [vmem:[#allocation6 + $0x528] sm:$0xff] }
 0x1c2   :  { %3271 = vmatpush1.bf16.msra.mxu0 %v3270_v31  ;;  %3495 = vmatpush3.bf16.msra.mxu1 %v3494_v36  ;;  %v3288_v36 = vpack.c.bf16 %v775_v21, %v772_v20  ;;  %v842_v20 = vld [vmem:[#allocation6 + $0x6b8] sm:$0xff]  ;;  %v796_v21 = vld [vmem:[#allocation6 + $0x548] sm:$0xff] }
 0x1c3   :  { %3273 = vmatprep.subr.bf16.mxu0 %v3272_v39  ;;  %3497 = vmatprep.subr.bf16.mxu1 %v3496_v40  ;;  %v824_v39 = vld [vmem:[#allocation6 + $0x628] sm:$0xff]  ;;  %v778_v40 = vld [vmem:[#allocation6 + $0x4b8] sm:$0xff] }
 0x1c4   :  { %v3292_v50 = vpack.c.bf16 %v781_v42, %v778_v40  ;;  %v802_v40 = vld [vmem:[#allocation6 + $0x578] sm:$0xff]  ;;  %v899_v42 = vld [vmem:[#allocation6 + $0x880] sm:$0xff] }
 0x1c6   :  { %3275 = vmatpush1.bf16.msra.mxu0 %v3274_v47  ;;  %3499 = vmatpush3.bf16.msra.mxu1 %v3498_v48  ;;  %v3514_v47 = vpack.c.bf16 %v824_v39, %v821_v38  ;;  %v777_v48 = vld [vmem:[#allocation6 + $0x4b0] sm:$0xff]  ;;  %v848_v39 = vld [vmem:[#allocation6 + $0x6e8] sm:$0xff] }
 0x1c7   :  { %3277 = vmatprep.subr.bf16.mxu0 %v3276_v51  ;;  %3501 = vmatprep.subr.bf16.mxu1 %v3500_v52  ;;  %v3516_v51 = vpack.c.bf16 %v878_v14, %v875_v43  ;;  %v827_v52 = vld [vmem:[#allocation6 + $0x640] sm:$0xff]  ;;  %v845_v38 = vld [vmem:[#allocation6 + $0x6d0] sm:$0xff]  ;;  %v902_v43 = vld [vmem:[#allocation6 + $0x898] sm:$0xff]  ;;  %v3306_v14 = vpack.c.bf16 %v798_v29, %v795_v28 }
 0x1ca   :  { %3279 = vmatpush1.bf16.msra.mxu0 %v3278_v60  ;;  %3503 = vmatpush3.bf16.msra.mxu1 %v3502_v62  ;;  %v3294_v60 = vpack.c.bf16 %v780_v49, %v777_v48  ;;  %v3518_v62 = vpack.c.bf16 %v830_v53, %v827_v52  ;;  %v804_v48 = vld [vmem:[#allocation6 + $0x588] sm:$0xff]  ;;  %v854_v52 = vld [vmem:[#allocation6 + $0x718] sm:$0xff] }
 0x1cb   :  { %3281 = vmatprep.subr.bf16.mxu0 %v3280_v1  ;;  %3505 = vmatprep.subr.bf16.mxu1 %v3504_v2  ;;  %v3296_v1 = vpack.c.bf16 %v787_v55, %v784_v54  ;;  %v3520_v2 = vpack.c.bf16 %v884_v57, %v881_v56  ;;  %v808_v53 = vld [vmem:[#allocation6 + $0x5a8] sm:$0xff]  ;;  %v811_v54 = vld [vmem:[#allocation6 + $0x5c0] sm:$0xff]  ;;  %v905_v55 = vld [vmem:[#allocation6 + $0x8b0] sm:$0xff]  ;;  %v313_v57 = vsub.s32 4, %v4471_v32 }
 0x1cc   :  { %v908_v56 = vld [vmem:[#allocation6 + $0x8c8] sm:$0xff] }
 0x1ce   :  { %3283 = vmatpush1.bf16.msra.mxu0 %v3282_v11  ;;  %3507 = vmatpush3.bf16.msra.mxu1 %v3506_v12  ;;  %v4503_v31 = vpop.f32.mrb[2].mxu0  ;;  %v3298_v11 = vpack.c.bf16 %v786_v63, %v783_v30  ;;  %v3522_v12 = vpack.c.bf16 %v836_v4, %v833_v3  ;;  %v807_v30 = vld [vmem:[#allocation6 + $0x5a0] sm:$0xff]  ;;  %v810_v63 = vld [vmem:[#allocation6 + $0x5b8] sm:$0xff]  ;;  %v857_v3 = vld [vmem:[#allocation6 + $0x730] sm:$0xff] }
 0x1cf   :  { %3285 = vmatprep.subr.bf16.mxu0 %v3284_v16  ;;  %3509 = vmatprep.subr.bf16.mxu1 %v3508_v17  ;;  %v545_v41 = vpop.f32.mrb[3].mxu0  ;;  %v3300_v17 = vpack.c.bf16 %v793_v6, %v790_v5  ;;  %v860_v4 = vld [vmem:[#allocation6 + $0x748] sm:$0xff]  ;;  %v814_v5 = vld [vmem:[#allocation6 + $0x5d8] sm:$0xff]  ;;  %v817_v6 = vld [vmem:[#allocation6 + $0x5f0] sm:$0xff] }
 0x1d0   :  { %v4505_v44 = vadd.f32 %v545_v41, %v318_v24  ;;  %v4513_v10 = vpop.f32.mrb[2].mxu1  ;;  %v896_v24 = vld [vmem:[#allocation6 + $0x868] sm:$0xff]  ;;  %v805_v41 = vld [vmem:[#allocation6 + $0x590] sm:$0xff] }
 0x1d1   :  { %v4515_v16 = vpop.f32.mrb[3].mxu1  ;;  %v3308_v49 = vpack.c.bf16 %v805_v41, %v802_v40 }
 0x1d2   :  { %3287 = vmatpush1.bf16.msra.mxu0 %v3286_v26  ;;  %3511 = vmatpush3.bf16.msra.mxu1 %v3510_v27  ;;  %v624_v58 = vmax.f32 %v4505_v44, 0.0  ;;  %v3302_v26 = vpack.c.bf16 %v792_v15, %v789_v13  ;;  %v3526_v27 = vpack.c.bf16 %v842_v20, %v839_v19  ;;  %v3314_v13 = vpack.c.bf16 %v810_v63, %v807_v30  ;;  %v835_v30 = vld [vmem:[#allocation6 + $0x680] sm:$0xff]  ;;  %v977_v63 = vld [vmem:[#allocation6 + $0xaf0] sm:$0xff] }
 0x1d3   :  { %3289 = vmatprep.subr.bf16.mxu0 %v3288_v36  ;;  %3513 = vmatprep.subr.bf16.mxu1 %v3512_v37  ;;  %v3304_v36 = vpack.c.bf16 %v799_v22, %v796_v21  ;;  %v3528_v37 = vpack.c.bf16 %v896_v24, %v893_v23  ;;  %v3538_v15 = vpack.c.bf16 %v860_v4, %v857_v3  ;;  %v863_v21 = vld [vmem:[#allocation6 + $0x760] sm:$0xff]  ;;  %v866_v22 = vld [vmem:[#allocation6 + $0x778] sm:$0xff]  ;;  %v820_v23 = vld [vmem:[#allocation6 + $0x608] sm:$0xff] }
 0x1d4   :  { %v3316_v19 = vpack.c.bf16 %v817_v6, %v814_v5  ;;  %v3540_v20 = vpack.c.bf16 %v914_v8, %v911_v7  ;;  %v823_v24 = vld [vmem:[#allocation6 + $0x620] sm:$0xff]  ;;  %v834_v5 = vld [vmem:[#allocation6 + $0x678] sm:$0xff]  ;;  %v929_v8 = vld [vmem:[#allocation6 + $0x970] sm:$0xff] }
 0x1d5   :  { %1447 = vmatmul.mubr.f32.vlgmr.msra.gmra.mrb[6].mxu1 %v621_v45  ;;  %v3320_v40 = vpack.c.bf16 %v823_v24, %v820_v23  ;;  %v831_v4 = vld [vmem:[#allocation6 + $0x660] sm:$0xff]  ;;  %v938_v23 = vld [vmem:[#allocation6 + $0x9b8] sm:$0xff]  ;;  %v844_v24 = vld [vmem:[#allocation6 + $0x6c8] sm:$0xff] }
 0x1d6   :  { %3291 = vmatpush1.bf16.msra.mxu0 %v3290_v46  ;;  %3515 = vmatpush3.bf16.msra.mxu1 %v3514_v47  ;;  %v3530_v46 = vpack.c.bf16 %v848_v39, %v845_v38  ;;  %v801_v47 = vld [vmem:[#allocation6 + $0x570] sm:$0xff]  ;;  %v819_v38 = vld [vmem:[#allocation6 + $0x600] sm:$0xff]  ;;  %v822_v39 = vld [vmem:[#allocation6 + $0x618] sm:$0xff] }
 0x1d7   :  { %3293 = vmatprep.subr.bf16.mxu0 %v3292_v50  ;;  %3517 = vmatprep.subr.bf16.mxu1 %v3516_v51  ;;  %v3532_v50 = vpack.c.bf16 %v902_v43, %v899_v42  ;;  %v851_v51 = vld [vmem:[#allocation6 + $0x700] sm:$0xff]  ;;  %v917_v42 = vld [vmem:[#allocation6 + $0x910] sm:$0xff]  ;;  %v920_v43 = vld [vmem:[#allocation6 + $0x928] sm:$0xff] }
 0x1d8   :  { %1516 = vmatprep.mubr.f32.mxu1 %v624_v58 }
 0x1da   :  { %3295 = vmatpush1.bf16.msra.mxu0 %v3294_v60  ;;  %3519 = vmatpush3.bf16.msra.mxu1 %v3518_v62  ;;  %v3310_v60 = vpack.c.bf16 %v804_v48, %v801_v47  ;;  %v3534_v62 = vpack.c.bf16 %v854_v52, %v851_v51  ;;  %v971_v47 = vld [vmem:[#allocation6 + $0xac0] sm:$0xff]  ;;  %v974_v48 = vld [vmem:[#allocation6 + $0xad8] sm:$0xff]  ;;  %v3546_v51 = vpack.c.bf16 %v920_v43, %v917_v42  ;;  %v825_v52 = vld [vmem:[#allocation6 + $0x630] sm:$0xff] }
 0x1db   :  { %3297 = vmatprep.subr.bf16.mxu0 %v3296_v1  ;;  %3521 = vmatprep.subr.bf16.mxu1 %v3520_v2  ;;  %v3312_v1 = vpack.c.bf16 %v811_v54, %v808_v53  ;;  %v3536_v2 = vpack.c.bf16 %v908_v56, %v905_v55  ;;  %v828_v53 = vld [vmem:[#allocation6 + $0x648] sm:$0xff]  ;;  %v3548_v55 = vpack.c.bf16 %v974_v48, %v971_v47  ;;  %v923_v56 = vld [vmem:[#allocation6 + $0x940] sm:$0xff]  ;;  %v850_v42 = vld [vmem:[#allocation6 + $0x6f8] sm:$0xff] }
 0x1dc   :  { %v853_v43 = vld [vmem:[#allocation6 + $0x710] sm:$0xff] }
 0x1de   :  { %3299 = vmatpush1.bf16.msra.mxu0 %v3298_v11  ;;  %3523 = vmatpush3.bf16.msra.mxu1 %v3522_v12  ;;  %v325_v11 = vsub.s32 7, %v4471_v32  ;;  %v314_v12 = vrot.slane %v4476_v34, %v313_v57 }
 0x1df   :  { %3301 = vmatprep.subr.bf16.mxu0 %v3300_v17  ;;  %3525 = vmatprep.subr.bf16.mxu1 %v3524_v18  ;;  %v813_v17 = vld [vmem:[#allocation6 + $0x5d0] sm:$0xff]  ;;  %v816_v18 = vld [vmem:[#allocation6 + $0x5e8] sm:$0xff] }
 0x1e0   :  { %v326_v28 = vrot.slane %v4476_v34, %v325_v11  ;;  %v4524_v29 = vadd.f32 %v4503_v31, %v314_v12  ;;  %v932_v11 = vld [vmem:[#allocation6 + $0x988] sm:$0xff]  ;;  %v838_v12 = vld [vmem:[#allocation6 + $0x698] sm:$0xff] }
 0x1e2   :  { %3303 = vmatpush1.bf16.msra.mxu0 %v3302_v26  ;;  %3527 = vmatpush3.bf16.msra.mxu1 %v3526_v27  ;;  %v965_v26 = vld [vmem:[#allocation6 + $0xa90] sm:$0xff]  ;;  %v968_v27 = vld [vmem:[#allocation6 + $0xaa8] sm:$0xff]  ;;  %v623_v31 = vmax.f32 %v4524_v29, 0.0  ;;  %v943_v29 = vld [vmem:[#allocation6 + $0x9e0] sm:$0xff] }
 0x1e3   :  { %3305 = vmatprep.subr.bf16.mxu0 %v3304_v36  ;;  %3529 = vmatprep.subr.bf16.mxu1 %v3528_v37  ;;  %v3318_v36 = vpack.c.bf16 %v816_v18, %v813_v17  ;;  %v3542_v37 = vpack.c.bf16 %v866_v22, %v863_v21  ;;  %v3544_v41 = vpack.c.bf16 %v968_v27, %v965_v26  ;;  %v837_v18 = vld [vmem:[#allocation6 + $0x690] sm:$0xff]  ;;  %v935_v22 = vld [vmem:[#allocation6 + $0x9a0] sm:$0xff] }
 0x1e4   :  { %v3554_v17 = vpack.c.bf16 %v932_v11, %v929_v8  ;;  %v847_v26 = vld [vmem:[#allocation6 + $0x6e0] sm:$0xff]  ;;  %v989_v27 = vld [vmem:[#allocation6 + $0xb50] sm:$0xff]  ;;  %v956_v8 = vld [vmem:[#allocation6 + $0xa48] sm:$0xff] }
 0x1e5   :  { %v862_v11 = vld [vmem:[#allocation6 + $0x758] sm:$0xff] }
 0x1e6   :  { %3307 = vmatpush1.bf16.msra.mxu0 %v3306_v14  ;;  %3531 = vmatpush3.bf16.msra.mxu1 %v3530_v46  ;;  %v826_v14 = vld [vmem:[#allocation6 + $0x638] sm:$0xff]  ;;  %v829_v46 = vld [vmem:[#allocation6 + $0x650] sm:$0xff] }
 0x1e7   :  { %3309 = vmatprep.subr.bf16.mxu0 %v3308_v49  ;;  %3533 = vmatprep.subr.bf16.mxu1 %v3532_v50  ;;  %v4527_v49 = vadd.f32 %v4515_v16, %v326_v28  ;;  %v3322_v50 = vpack.c.bf16 %v822_v39, %v819_v38  ;;  %v3324_v54 = vpack.c.bf16 %v829_v46, %v826_v14  ;;  %v992_v28 = vld [vmem:[#allocation6 + $0xb68] sm:$0xff]  ;;  %v995_v14 = vld [vmem:[#allocation6 + $0xb80] sm:$0xff]  ;;  %v998_v46 = vld [vmem:[#allocation6 + $0xb98] sm:$0xff] }
 0x1e8   :  { %v3336_v38 = vpack.c.bf16 %v847_v26, %v844_v24  ;;  %v3560_v39 = vpack.c.bf16 %v992_v28, %v989_v27  ;;  %v868_v24 = vld [vmem:[#allocation6 + $0x788] sm:$0xff]  ;;  %v871_v26 = vld [vmem:[#allocation6 + $0x7a0] sm:$0xff] }
 0x1e9   :  { %v626_v16 = vmax.f32 %v4527_v49, 0.0  ;;  %v939_v49 = vld [vmem:[#allocation6 + $0x9c0] sm:$0xff] }
 0x1ea   :  { %3311 = vmatpush1.bf16.msra.mxu0 %v3310_v60  ;;  %3535 = vmatpush3.bf16.msra.mxu1 %v3534_v62  ;;  %v926_v60 = vld [vmem:[#allocation6 + $0x958] sm:$0xff]  ;;  %v832_v62 = vld [vmem:[#allocation6 + $0x668] sm:$0xff] }
 0x1eb   :  { %3313 = vmatprep.subr.bf16.mxu0 %v3312_v1  ;;  %3537 = vmatprep.subr.bf16.mxu1 %v3536_v2  ;;  %v980_v1 = vld [vmem:[#allocation6 + $0xb08] sm:$0xff]  ;;  %v3326_v2 = vpack.c.bf16 %v828_v53, %v825_v52  ;;  %v3550_v3 = vpack.c.bf16 %v926_v60, %v923_v56  ;;  %v3328_v6 = vpack.c.bf16 %v835_v30, %v832_v62  ;;  %v859_v60 = vld [vmem:[#allocation6 + $0x740] sm:$0xff]  ;;  %v1001_v62 = vld [vmem:[#allocation6 + $0xbb0] sm:$0xff] }
 0x1ec   :  { %v3552_v7 = vpack.c.bf16 %v980_v1, %v977_v63  ;;  %v3340_v52 = vpack.c.bf16 %v853_v43, %v850_v42  ;;  %v3564_v53 = vpack.c.bf16 %v998_v46, %v995_v14  ;;  %v856_v56 = vld [vmem:[#allocation6 + $0x728] sm:$0xff]  ;;  %v321_v63 = vsub.s32 6, %v4471_v32  ;;  %v883_v14 = vld [vmem:[#allocation6 + $0x800] sm:$0xff] }
 0x1ed   :  { %v1004_v30 = vld [vmem:[#allocation6 + $0xbc8] sm:$0xff] }
 0x1ee   :  { %3315 = vmatpush1.bf16.msra.mxu0 %v3314_v13  ;;  %3539 = vmatpush3.bf16.msra.mxu1 %v3538_v15  ;;  %v841_v13 = vld [vmem:[#allocation6 + $0x6b0] sm:$0xff]  ;;  %v983_v15 = vld [vmem:[#allocation6 + $0xb20] sm:$0xff]  ;;  %v876_v42 = vld [vmem:[#allocation6 + $0x7c8] sm:$0xff] }
 0x1ef   :  { %3317 = vmatprep.subr.bf16.mxu0 %v3316_v19  ;;  %3541 = vmatprep.subr.bf16.mxu1 %v3540_v20  ;;  %v840_v19 = vld [vmem:[#allocation6 + $0x6a8] sm:$0xff]  ;;  %v3332_v20 = vpack.c.bf16 %v841_v13, %v838_v12  ;;  %v3556_v21 = vpack.c.bf16 %v986_v25, %v983_v15  ;;  %v865_v12 = vld [vmem:[#allocation6 + $0x770] sm:$0xff]  ;;  %v1007_v13 = vld [vmem:[#allocation6 + $0xbe0] sm:$0xff]  ;;  %v322_v25 = vrot.slane %v4476_v34, %v321_v63 }
 0x1f0   :  { %v3334_v44 = vpack.c.bf16 %v840_v19, %v837_v18  ;;  %v1010_v15 = vld [vmem:[#allocation6 + $0xbf8] sm:$0xff]  ;;  %v861_v18 = vld [vmem:[#allocation6 + $0x750] sm:$0xff]  ;;  %v3348_v19 = vpack.c.bf16 %v865_v12, %v862_v11  ;;  %v880_v43 = vld [vmem:[#allocation6 + $0x7e8] sm:$0xff] }
 0x1f1   :  { %v4542_v27 = vadd.f32 %v4513_v10, %v322_v25  ;;  %v873_v10 = vld [vmem:[#allocation6 + $0x7b0] sm:$0xff]  ;;  %v904_v11 = vld [vmem:[#allocation6 + $0x8a8] sm:$0xff]  ;;  %v907_v12 = vld [vmem:[#allocation6 + $0x8c0] sm:$0xff] }
 0x1f2   :  { %3319 = vmatpush1.bf16.msra.mxu0 %v3318_v36  ;;  %3543 = vmatpush3.bf16.msra.mxu1 %v3542_v37  ;;  %v843_v36 = vld [vmem:[#allocation6 + $0x6c0] sm:$0xff]  ;;  %v846_v37 = vld [vmem:[#allocation6 + $0x6d8] sm:$0xff]  ;;  %v3358_v46 = vpack.c.bf16 %v876_v42, %v873_v10  ;;  %v928_v10 = vld [vmem:[#allocation6 + $0x968] sm:$0xff] }
 0x1f3   :  { %3321 = vmatprep.subr.bf16.mxu0 %v3320_v40  ;;  %3545 = vmatprep.subr.bf16.mxu1 %v3544_v41  ;;  %v941_v40 = vld [vmem:[#allocation6 + $0x9d0] sm:$0xff]  ;;  %v944_v41 = vld [vmem:[#allocation6 + $0x9e8] sm:$0xff]  ;;  %v3338_v47 = vpack.c.bf16 %v846_v37, %v843_v36  ;;  %v870_v36 = vld [vmem:[#allocation6 + $0x798] sm:$0xff] }
 0x1f4   :  { %v3562_v48 = vpack.c.bf16 %v944_v41, %v941_v40  ;;  %v874_v37 = vld [vmem:[#allocation6 + $0x7b8] sm:$0xff]  ;;  %v903_v25 = vld [vmem:[#allocation6 + $0x8a0] sm:$0xff]  ;;  %v2665_v32 = vld [vmem:[#allocation15 + $0x20] sm:$0xff] }
 0x1f5   :  { %1164 = vmatmul.mubr.f32.vlgmr.msra.gmra.mrb[4].mxu0 %v621_v45  ;;  %1517 = vmatmul.mubr.f32.vlgmr.msra.gmra.mrb[8].mxu1 %v623_v31  ;;  %v3330_v45 = vpack.c.bf16 %v834_v5, %v831_v4  ;;  %v858_v4 = vld [vmem:[#allocation6 + $0x738] sm:$0xff]  ;;  %v3344_v5 = vpack.c.bf16 %v859_v60, %v856_v56  ;;  %v888_v56 = vld [vmem:[#allocation6 + $0x828] sm:$0xff]  ;;  %v931_v42 = vld [vmem:[#allocation6 + $0x980] sm:$0xff] }
 0x1f6   :  { %3323 = vmatpush1.bf16.msra.mxu0 %v3322_v50  ;;  %3547 = vmatpush3.bf16.msra.mxu1 %v3546_v51  ;;  %v849_v50 = vld [vmem:[#allocation6 + $0x6f0] sm:$0xff]  ;;  %v852_v51 = vld [vmem:[#allocation6 + $0x708] sm:$0xff] }
 0x1f7   :  { %3325 = vmatprep.subr.bf16.mxu0 %v3324_v54  ;;  %3549 = vmatprep.subr.bf16.mxu1 %v3548_v55  ;;  %v947_v54 = vld [vmem:[#allocation6 + $0xa00] sm:$0xff]  ;;  %v950_v55 = vld [vmem:[#allocation6 + $0xa18] sm:$0xff]  ;;  %v3342_v1 = vpack.c.bf16 %v852_v51, %v849_v50  ;;  %v892_v60 = vld [vmem:[#allocation6 + $0x848] sm:$0xff] }
 0x1f8   :  { %1586 = vmatprep.mubr.f32.mxu1 %v626_v16  ;;  %1234 = vmatprep.mubr.f32.mxu0 %v624_v58  ;;  %v3558_v58 = vpack.c.bf16 %v938_v23, %v935_v22  ;;  %v959_v22 = vld [vmem:[#allocation6 + $0xa60] sm:$0xff]  ;;  %v962_v23 = vld [vmem:[#allocation6 + $0xa78] sm:$0xff] }
 0x1f9   :  { %v3574_v28 = vpack.c.bf16 %v962_v23, %v959_v22  ;;  %v882_v50 = vld [vmem:[#allocation6 + $0x7f8] sm:$0xff]  ;;  %v912_v22 = vld [vmem:[#allocation6 + $0x8e8] sm:$0xff] }
 0x1fa   :  { %3327 = vmatpush1.bf16.msra.mxu0 %v3326_v2  ;;  %3551 = vmatpush3.bf16.msra.mxu1 %v3550_v3  ;;  %v3566_v2 = vpack.c.bf16 %v950_v55, %v947_v54  ;;  %v855_v3 = vld [vmem:[#allocation6 + $0x720] sm:$0xff]  ;;  %v886_v51 = vld [vmem:[#allocation6 + $0x818] sm:$0xff]  ;;  %v885_v55 = vld [vmem:[#allocation6 + $0x810] sm:$0xff] }
 0x1fb   :  { %3329 = vmatprep.subr.bf16.mxu0 %v3328_v6  ;;  %3553 = vmatprep.subr.bf16.mxu1 %v3552_v7  ;;  %v3568_v6 = vpack.c.bf16 %v1004_v30, %v1001_v62  ;;  %v953_v7 = vld [vmem:[#allocation6 + $0xa30] sm:$0xff]  ;;  %v895_v62 = vld [vmem:[#allocation6 + $0x860] sm:$0xff]  ;;  %v3366_v30 = vpack.c.bf16 %v888_v56, %v885_v55  ;;  %v916_v23 = vld [vmem:[#allocation6 + $0x908] sm:$0xff] }
 0x1fc   :  { %v3368_v63 = vpack.c.bf16 %v895_v62, %v892_v60  ;;  %v940_v55 = vld [vmem:[#allocation6 + $0x9c8] sm:$0xff]  ;;  %v946_v60 = vld [vmem:[#allocation6 + $0x9f8] sm:$0xff]  ;;  %v949_v62 = vld [vmem:[#allocation6 + $0xa10] sm:$0xff] }
 0x1fd   :  { %v3400_v56 = vpack.c.bf16 %v943_v29, %v940_v55  ;;  %v994_v55 = vld [vmem:[#allocation6 + $0xb78] sm:$0xff]  ;;  %v997_v29 = vld [vmem:[#allocation6 + $0xb90] sm:$0xff] }
 0x1fe   :  { %3331 = vmatpush1.bf16.msra.mxu0 %v3330_v45  ;;  %3555 = vmatpush3.bf16.msra.mxu1 %v3554_v17  ;;  %v3346_v45 = vpack.c.bf16 %v858_v4, %v855_v3  ;;  %v3570_v17 = vpack.c.bf16 %v956_v8, %v953_v7  ;;  %v898_v3 = vld [vmem:[#allocation6 + $0x878] sm:$0xff]  ;;  %v901_v4 = vld [vmem:[#allocation6 + $0x890] sm:$0xff]  ;;  %v900_v8 = vld [vmem:[#allocation6 + $0x888] sm:$0xff] }
 0x1ff   :  { %3333 = vmatprep.subr.bf16.mxu0 %v3332_v20  ;;  %3557 = vmatprep.subr.bf16.mxu1 %v3556_v21  ;;  %v3572_v20 = vpack.c.bf16 %v1010_v15, %v1007_v13  ;;  %v864_v21 = vld [vmem:[#allocation6 + $0x768] sm:$0xff]  ;;  %v897_v7 = vld [vmem:[#allocation6 + $0x870] sm:$0xff]  ;;  %v3376_v15 = vpack.c.bf16 %v907_v12, %v904_v11  ;;  %v958_v11 = vld [vmem:[#allocation6 + $0xa58] sm:$0xff] }
 0x200   :  { %v3350_v34 = vpack.c.bf16 %v864_v21, %v861_v18  ;;  %v3374_v13 = vpack.c.bf16 %v900_v8, %v897_v7  ;;  %v913_v18 = vld [vmem:[#allocation6 + $0x8f0] sm:$0xff]  ;;  %v951_v7 = vld [vmem:[#allocation6 + $0xa20] sm:$0xff]  ;;  %v954_v8 = vld [vmem:[#allocation6 + $0xa38] sm:$0xff] }
 0x201   :  { %v909_v21 = vld [vmem:[#allocation6 + $0x8d0] sm:$0xff] }
 0x202   :  { %3335 = vmatpush1.bf16.msra.mxu0 %v3334_v44  ;;  %3559 = vmatpush3.bf16.msra.mxu1 %v3558_v58  ;;  %v3352_v44 = vpack.c.bf16 %v871_v26, %v868_v24  ;;  %v867_v58 = vld [vmem:[#allocation6 + $0x780] sm:$0xff]  ;;  %v3382_v26 = vpack.c.bf16 %v912_v22, %v909_v21  ;;  %v961_v12 = vld [vmem:[#allocation6 + $0xa70] sm:$0xff]  ;;  %v966_v22 = vld [vmem:[#allocation6 + $0xa98] sm:$0xff] }
 0x203   :  { %3337 = vmatprep.subr.bf16.mxu0 %v3336_v38  ;;  %3561 = vmatprep.subr.bf16.mxu1 %v3560_v39  ;;  %v877_v38 = vld [vmem:[#allocation6 + $0x7d0] sm:$0xff]  ;;  %v625_v39 = vmax.f32 %v4542_v27, 0.0  ;;  %v3354_v40 = vpack.c.bf16 %v870_v36, %v867_v58  ;;  %v919_v24 = vld [vmem:[#allocation6 + $0x920] sm:$0xff]  ;;  %v922_v58 = vld [vmem:[#allocation6 + $0x938] sm:$0xff] }
 0x204   :  { %v3356_v41 = vpack.c.bf16 %v877_v38, %v874_v37  ;;  %v925_v36 = vld [vmem:[#allocation6 + $0x950] sm:$0xff]  ;;  %v963_v21 = vld [vmem:[#allocation6 + $0xa80] sm:$0xff] }
 0x205   :  { %v3388_v38 = vpack.c.bf16 %v925_v36, %v922_v58  ;;  %v976_v58 = vld [vmem:[#allocation6 + $0xae8] sm:$0xff]  ;;  %v979_v36 = vld [vmem:[#allocation6 + $0xb00] sm:$0xff] }
 0x206   :  { %3339 = vmatpush1.bf16.msra.mxu0 %v3338_v47  ;;  %3563 = vmatpush3.bf16.msra.mxu1 %v3562_v48  ;;  %v3360_v47 = vpack.c.bf16 %v883_v14, %v880_v43  ;;  %v879_v48 = vld [vmem:[#allocation6 + $0x7e0] sm:$0xff]  ;;  %v3392_v14 = vpack.c.bf16 %v931_v42, %v928_v10  ;;  %v982_v10 = vld [vmem:[#allocation6 + $0xb18] sm:$0xff]  ;;  %v985_v42 = vld [vmem:[#allocation6 + $0xb30] sm:$0xff] }
 0x207   :  { %3341 = vmatprep.subr.bf16.mxu0 %v3340_v52  ;;  %3565 = vmatprep.subr.bf16.mxu1 %v3564_v53  ;;  %v889_v52 = vld [vmem:[#allocation6 + $0x830] sm:$0xff]  ;;  %v3362_v53 = vpack.c.bf16 %v882_v50, %v879_v48  ;;  %v934_v48 = vld [vmem:[#allocation6 + $0x998] sm:$0xff] }
 0x208   :  { %v3364_v54 = vpack.c.bf16 %v889_v52, %v886_v51  ;;  %v937_v50 = vld [vmem:[#allocation6 + $0x9b0] sm:$0xff]  ;;  %v1650_v27 = vld [vmem:[#allocation9 + $0x1b8] sm:$0xff] }
 0x209   :  { %v3396_v52 = vpack.c.bf16 %v937_v50, %v934_v48  ;;  %v988_v48 = vld [vmem:[#allocation6 + $0xb48] sm:$0xff]  ;;  %v991_v50 = vld [vmem:[#allocation6 + $0xb60] sm:$0xff] }
 0x20a   :  { %3343 = vmatpush1.bf16.msra.mxu0 %v3342_v1  ;;  %3567 = vmatpush3.bf16.msra.mxu1 %v3566_v2  ;;  %v891_v1 = vld [vmem:[#allocation6 + $0x840] sm:$0xff]  ;;  %v894_v2 = vld [vmem:[#allocation6 + $0x858] sm:$0xff] }
 0x20b   :  { %3345 = vmatprep.subr.bf16.mxu0 %v3344_v5  ;;  %3569 = vmatprep.subr.bf16.mxu1 %v3568_v6  ;;  %v3370_v5 = vpack.c.bf16 %v894_v2, %v891_v1  ;;  %v3372_v6 = vpack.c.bf16 %v901_v4, %v898_v3  ;;  %v945_v1 = vld [vmem:[#allocation6 + $0x9f0] sm:$0xff]  ;;  %v948_v2 = vld [vmem:[#allocation6 + $0xa08] sm:$0xff]  ;;  %v955_v4 = vld [vmem:[#allocation6 + $0xa40] sm:$0xff] }
 0x20c   :  { %v952_v3 = vld [vmem:[#allocation6 + $0xa28] sm:$0xff] }
 0x20e   :  { %3347 = vmatpush1.bf16.msra.mxu0 %v3346_v45  ;;  %3571 = vmatpush3.bf16.msra.mxu1 %v3570_v17  ;;  %v906_v45 = vld [vmem:[#allocation6 + $0x8b8] sm:$0xff] }
 0x20f   :  { %3349 = vmatprep.subr.bf16.mxu0 %v3348_v19  ;;  %3573 = vmatprep.subr.bf16.mxu1 %v3572_v20  ;;  %v910_v17 = vld [vmem:[#allocation6 + $0x8d8] sm:$0xff]  ;;  %v3378_v19 = vpack.c.bf16 %v906_v45, %v903_v25  ;;  %v957_v25 = vld [vmem:[#allocation6 + $0xa50] sm:$0xff]  ;;  %v960_v45 = vld [vmem:[#allocation6 + $0xa68] sm:$0xff] }
 0x210   :  { %v3380_v20 = vpack.c.bf16 %v913_v18, %v910_v17  ;;  %v964_v17 = vld [vmem:[#allocation6 + $0xa88] sm:$0xff]  ;;  %v967_v18 = vld [vmem:[#allocation6 + $0xaa0] sm:$0xff] }
 0x212   :  { %3351 = vmatpush1.bf16.msra.mxu0 %v3350_v34  ;;  %3575 = vmatpush3.bf16.msra.mxu1 %v3574_v28  ;;  %v3384_v34 = vpack.c.bf16 %v919_v24, %v916_v23  ;;  %v915_v28 = vld [vmem:[#allocation6 + $0x900] sm:$0xff]  ;;  %v970_v23 = vld [vmem:[#allocation6 + $0xab8] sm:$0xff]  ;;  %v973_v24 = vld [vmem:[#allocation6 + $0xad0] sm:$0xff] }
 0x213   :  { %3353 = vmatprep.subr.bf16.mxu0 %v3352_v44  ;;  %v918_v44 = vld [vmem:[#allocation6 + $0x918] sm:$0xff] }
 0x214   :  { %v3386_v37 = vpack.c.bf16 %v918_v44, %v915_v28  ;;  %v969_v28 = vld [vmem:[#allocation6 + $0xab0] sm:$0xff]  ;;  %v972_v44 = vld [vmem:[#allocation6 + $0xac8] sm:$0xff] }
 0x215   :  { %1587 = vmatmul.mubr.f32.vlgmr.msra.gmra.mrb[10].mxu1 %v625_v39 }
 0x216   :  { %3355 = vmatpush1.bf16.msra.mxu0 %v3354_v40  ;;  %v921_v40 = vld [vmem:[#allocation6 + $0x930] sm:$0xff] }
 0x217   :  { %3357 = vmatprep.subr.bf16.mxu0 %v3356_v41  ;;  %v924_v41 = vld [vmem:[#allocation6 + $0x948] sm:$0xff] }
 0x218   :  { %v3390_v43 = vpack.c.bf16 %v924_v41, %v921_v40  ;;  %v975_v40 = vld [vmem:[#allocation6 + $0xae0] sm:$0xff]  ;;  %v978_v41 = vld [vmem:[#allocation6 + $0xaf8] sm:$0xff] }
 0x21a   :  { %3359 = vmatpush1.bf16.msra.mxu0 %v3358_v46  ;;  %v927_v46 = vld [vmem:[#allocation6 + $0x960] sm:$0xff] }
 0x21b   :  { %3361 = vmatprep.subr.bf16.mxu0 %v3360_v47  ;;  %v930_v47 = vld [vmem:[#allocation6 + $0x978] sm:$0xff] }
 0x21c   :  { %v3394_v51 = vpack.c.bf16 %v930_v47, %v927_v46  ;;  %v981_v46 = vld [vmem:[#allocation6 + $0xb10] sm:$0xff]  ;;  %v984_v47 = vld [vmem:[#allocation6 + $0xb28] sm:$0xff] }
 0x21e   :  { %3363 = vmatpush1.bf16.msra.mxu0 %v3362_v53  ;;  %v933_v53 = vld [vmem:[#allocation6 + $0x990] sm:$0xff] }
 0x21f   :  { %3365 = vmatprep.subr.bf16.mxu0 %v3364_v54  ;;  %v936_v54 = vld [vmem:[#allocation6 + $0x9a8] sm:$0xff] }
 0x222   :  { %3367 = vmatpush1.bf16.msra.mxu0 %v3366_v30 }
 0x223   :  { %3369 = vmatprep.subr.bf16.mxu0 %v3368_v63  ;;  %v3404_v63 = vpack.c.bf16 %v949_v62, %v946_v60  ;;  %v1000_v60 = vld [vmem:[#allocation6 + $0xba8] sm:$0xff]  ;;  %v1003_v62 = vld [vmem:[#allocation6 + $0xbc0] sm:$0xff] }
 0x226   :  { %3371 = vmatpush1.bf16.msra.mxu0 %v3370_v5  ;;  %v3406_v5 = vpack.c.bf16 %v948_v2, %v945_v1  ;;  %v999_v1 = vld [vmem:[#allocation6 + $0xba0] sm:$0xff]  ;;  %v1002_v2 = vld [vmem:[#allocation6 + $0xbb8] sm:$0xff] }
 0x227   :  { %3373 = vmatprep.subr.bf16.mxu0 %v3372_v6  ;;  %v3408_v6 = vpack.c.bf16 %v955_v4, %v952_v3  ;;  %v1006_v3 = vld [vmem:[#allocation6 + $0xbd8] sm:$0xff]  ;;  %v1009_v4 = vld [vmem:[#allocation6 + $0xbf0] sm:$0xff] }
 0x22a   :  { %3375 = vmatpush1.bf16.msra.mxu0 %v3374_v13  ;;  %v3410_v13 = vpack.c.bf16 %v954_v8, %v951_v7  ;;  %v1005_v7 = vld [vmem:[#allocation6 + $0xbd0] sm:$0xff]  ;;  %v1008_v8 = vld [vmem:[#allocation6 + $0xbe8] sm:$0xff] }
 0x22b   :  { %3377 = vmatprep.subr.bf16.mxu0 %v3376_v15  ;;  %v3412_v15 = vpack.c.bf16 %v961_v12, %v958_v11  ;;  %v3446_v11 = vpack.c.bf16 %v1008_v8, %v1005_v7  ;;  %v1596_v12 = vld [vmem:[#allocation9 + $0x8] sm:$0xff]  ;;  %v1654_v7 = vld [vmem:[#allocation9 + $0x1d8] sm:$0xff] }
 0x22c   :  { %v1656_v8 = vld [vmem:[#allocation9 + $0x1e8] sm:$0xff] }
 0x22e   :  { %3379 = vmatpush1.bf16.msra.mxu0 %v3378_v19  ;;  %v3414_v19 = vpack.c.bf16 %v960_v45, %v957_v25  ;;  %v1606_v45 = vld [vmem:[#allocation9 + $0x58] sm:$0xff] }
 0x22f   :  { %3381 = vmatprep.subr.bf16.mxu0 %v3380_v20  ;;  %v3416_v20 = vpack.c.bf16 %v967_v18, %v964_v17  ;;  %v1595_v17 = vld [vmem:[#allocation9] sm:$0xff]  ;;  %v1601_v18 = vld [vmem:[#allocation9 + $0x30] sm:$0xff] }
 0x232   :  { %3383 = vmatpush1.bf16.msra.mxu0 %v3382_v26  ;;  %v3418_v26 = vpack.c.bf16 %v966_v22, %v963_v21  ;;  %v1599_v21 = vld [vmem:[#allocation9 + $0x20] sm:$0xff]  ;;  %v1605_v22 = vld [vmem:[#allocation9 + $0x50] sm:$0xff] }
 0x233   :  { %3385 = vmatprep.subr.bf16.mxu0 %v3384_v34  ;;  %v3420_v34 = vpack.c.bf16 %v973_v24, %v970_v23  ;;  %v1608_v23 = vld [vmem:[#allocation9 + $0x68] sm:$0xff]  ;;  %v1614_v24 = vld [vmem:[#allocation9 + $0x98] sm:$0xff] }
 0x235   :  { %1235 = vmatmul.mubr.f32.vlgmr.msra.gmra.mrb[4].mxu0 %v623_v31  ;;  %v3398_v31 = vpack.c.bf16 %v936_v54, %v933_v53  ;;  %v987_v53 = vld [vmem:[#allocation6 + $0xb40] sm:$0xff]  ;;  %v990_v54 = vld [vmem:[#allocation6 + $0xb58] sm:$0xff] }
 0x236   :  { %3387 = vmatpush1.bf16.msra.mxu0 %v3386_v37  ;;  %1305 = vmatprep.mubr.f32.mxu0 %v626_v16  ;;  %v942_v16 = vld [vmem:[#allocation6 + $0x9d8] sm:$0xff]  ;;  %v3422_v37 = vpack.c.bf16 %v972_v44, %v969_v28  ;;  %v3770_v28 = vpack.c.bf16 %v1605_v22, %v1599_v21  ;;  %v3580_v44 = vpack.c.bf16 %v1614_v24, %v1608_v23  ;;  %v1668_v22 = vld [vmem:[#allocation9 + $0x248] sm:$0xff] }
 0x237   :  { %3389 = vmatprep.subr.bf16.mxu0 %v3388_v38  ;;  %v3402_v30 = vpack.c.bf16 %v942_v16, %v939_v49  ;;  %v3424_v38 = vpack.c.bf16 %v979_v36, %v976_v58  ;;  %v993_v49 = vld [vmem:[#allocation6 + $0xb70] sm:$0xff]  ;;  %v996_v16 = vld [vmem:[#allocation6 + $0xb88] sm:$0xff]  ;;  %v1666_v21 = vld [vmem:[#allocation9 + $0x238] sm:$0xff] }
 0x238   :  { %v1607_v58 = vld [vmem:[#allocation9 + $0x60] sm:$0xff]  ;;  %v1613_v36 = vld [vmem:[#allocation9 + $0x90] sm:$0xff]  ;;  %v1674_v23 = vld [vmem:[#allocation9 + $0x278] sm:$0xff] }
 0x23a   :  { %3391 = vmatpush1.bf16.msra.mxu0 %v3390_v43  ;;  %v3426_v43 = vpack.c.bf16 %v978_v41, %v975_v40  ;;  %v3582_v40 = vpack.c.bf16 %v1613_v36, %v1607_v58  ;;  %v1617_v41 = vld [vmem:[#allocation9 + $0xb0] sm:$0xff]  ;;  %v3600_v58 = vpack.c.bf16 %v1674_v23, %v1668_v22  ;;  %v1672_v36 = vld [vmem:[#allocation9 + $0x268] sm:$0xff] }
 0x23b   :  { %3393 = vmatprep.subr.bf16.mxu0 %v3392_v14  ;;  %v3428_v14 = vpack.c.bf16 %v985_v42, %v982_v10  ;;  %v1620_v10 = vld [vmem:[#allocation9 + $0xc8] sm:$0xff]  ;;  %v1626_v42 = vld [vmem:[#allocation9 + $0xf8] sm:$0xff]  ;;  %v1713_v22 = vld [vmem:[#allocation9 + $0x3b0] sm:$0xff] }
 0x23e   :  { %3395 = vmatpush1.bf16.msra.mxu0 %v3394_v51  ;;  %v3430_v51 = vpack.c.bf16 %v984_v47, %v981_v46  ;;  %v1630_v46 = vld [vmem:[#allocation9 + $0x118] sm:$0xff]  ;;  %v1619_v47 = vld [vmem:[#allocation9 + $0xc0] sm:$0xff] }
 0x23f   :  { %3397 = vmatprep.subr.bf16.mxu0 %v3396_v52  ;;  %v3432_v52 = vpack.c.bf16 %v991_v50, %v988_v48  ;;  %v1625_v48 = vld [vmem:[#allocation9 + $0xf0] sm:$0xff] }
 0x242   :  { %3399 = vmatpush1.bf16.msra.mxu0 %v3398_v31  ;;  %v3434_v31 = vpack.c.bf16 %v990_v54, %v987_v53  ;;  %v1632_v53 = vld [vmem:[#allocation9 + $0x128] sm:$0xff]  ;;  %v1638_v54 = vld [vmem:[#allocation9 + $0x158] sm:$0xff] }
 0x243   :  { %3401 = vmatprep.subr.bf16.mxu0 %v3400_v56  ;;  %v3436_v56 = vpack.c.bf16 %v997_v29, %v994_v55  ;;  %v1629_v29 = vld [vmem:[#allocation9 + $0x110] sm:$0xff] }
 0x246   :  { %3403 = vmatpush1.bf16.msra.mxu0 %v3402_v30  ;;  %v3438_v30 = vpack.c.bf16 %v996_v16, %v993_v49  ;;  %v1637_v49 = vld [vmem:[#allocation9 + $0x150] sm:$0xff]  ;;  %v1636_v16 = vld [vmem:[#allocation9 + $0x148] sm:$0xff] }
 0x247   :  { %3405 = vmatprep.subr.bf16.mxu0 %v3404_v63  ;;  %v3440_v63 = vpack.c.bf16 %v1003_v62, %v1000_v60  ;;  %v1642_v60 = vld [vmem:[#allocation9 + $0x178] sm:$0xff]  ;;  %v1644_v62 = vld [vmem:[#allocation9 + $0x188] sm:$0xff] }
 0x24a   :  { %3407 = vmatpush1.bf16.msra.mxu0 %v3406_v5  ;;  %v3442_v5 = vpack.c.bf16 %v1002_v2, %v999_v1  ;;  %v1641_v1 = vld [vmem:[#allocation9 + $0x170] sm:$0xff]  ;;  %v3780_v2 = vpack.c.bf16 %v1642_v60, %v1636_v16  ;;  %v1683_v60 = vld [vmem:[#allocation9 + $0x2c0] sm:$0xff] }
 0x24b   :  { %3409 = vmatprep.subr.bf16.mxu0 %v3408_v6  ;;  %v3444_v6 = vpack.c.bf16 %v1009_v4, %v1006_v3  ;;  %v3592_v3 = vpack.c.bf16 %v1650_v27, %v1644_v62  ;;  %v1648_v4 = vld [vmem:[#allocation9 + $0x1a8] sm:$0xff]  ;;  %v1689_v62 = vld [vmem:[#allocation9 + $0x2f0] sm:$0xff] }
 0x24e   :  { %3411 = vmatpush1.bf16.msra.mxu0 %v3410_v13  ;;  %v1602_v13 = vld [vmem:[#allocation9 + $0x38] sm:$0xff] }
 0x24f   :  { %3413 = vmatprep.subr.bf16.mxu0 %v3412_v15  ;;  %v1600_v15 = vld [vmem:[#allocation9 + $0x28] sm:$0xff]  ;;  %v3576_v25 = vpack.c.bf16 %v1602_v13, %v1596_v12 }
 0x251   :  { %3577 = vmatprep.subr.bf16.mxu1 %v3576_v25  ;;  %v1653_v25 = vld [vmem:[#allocation9 + $0x1d0] sm:$0xff] }
 0x252   :  { %3415 = vmatpush1.bf16.msra.mxu0 %v3414_v19  ;;  %v3768_v19 = vpack.c.bf16 %v1606_v45, %v1600_v15  ;;  %v1647_v15 = vld [vmem:[#allocation9 + $0x1a0] sm:$0xff]  ;;  %v3784_v45 = vpack.c.bf16 %v1654_v7, %v1648_v4  ;;  %v1710_v4 = vld [vmem:[#allocation9 + $0x398] sm:$0xff] }
 0x253   :  { %3417 = vmatprep.subr.bf16.mxu0 %v3416_v20  ;;  %v3578_v20 = vpack.c.bf16 %v1601_v18, %v1595_v17  ;;  %v1660_v18 = vld [vmem:[#allocation9 + $0x208] sm:$0xff]  ;;  %v3786_v24 = vpack.c.bf16 %v1653_v25, %v1647_v15  ;;  %v1695_v7 = vld [vmem:[#allocation9 + $0x320] sm:$0xff]  ;;  %v1709_v25 = vld [vmem:[#allocation9 + $0x390] sm:$0xff] }
 0x254   :  { %v1703_v15 = vld [vmem:[#allocation9 + $0x360] sm:$0xff] }
 0x255   :  { %3579 = vmatpush1.bf16.msra.mxu1 %v3578_v20  ;;  %v1661_v20 = vld [vmem:[#allocation9 + $0x210] sm:$0xff] }
 0x256   :  { %3419 = vmatpush1.bf16.msra.mxu0 %v3418_v26  ;;  %v1612_v26 = vld [vmem:[#allocation9 + $0x88] sm:$0xff]  ;;  %3581 = vmatprep.subr.bf16.mxu1 %v3580_v44  ;;  %v3788_v44 = vpack.c.bf16 %v1666_v21, %v1660_v18  ;;  %v1722_v18 = vld [vmem:[#allocation9 + $0x3f8] sm:$0xff]  ;;  %v1707_v21 = vld [vmem:[#allocation9 + $0x380] sm:$0xff] }
 0x257   :  { %3421 = vmatprep.subr.bf16.mxu0 %v3420_v34  ;;  %v1618_v34 = vld [vmem:[#allocation9 + $0xb8] sm:$0xff] }
 0x259   :  { %3583 = vmatpush1.bf16.msra.mxu1 %v3582_v40  ;;  %v1678_v40 = vld [vmem:[#allocation9 + $0x298] sm:$0xff] }
 0x25a   :  { %3423 = vmatpush1.bf16.msra.mxu0 %v3422_v37  ;;  %v1611_v37 = vld [vmem:[#allocation9 + $0x80] sm:$0xff] }
 0x25b   :  { %3425 = vmatprep.subr.bf16.mxu0 %v3424_v38  ;;  %v3772_v38 = vpack.c.bf16 %v1618_v34, %v1612_v26  ;;  %v3774_v50 = vpack.c.bf16 %v1617_v41, %v1611_v37  ;;  %v1659_v34 = vld [vmem:[#allocation9 + $0x200] sm:$0xff]  ;;  %v1680_v41 = vld [vmem:[#allocation9 + $0x2a8] sm:$0xff] }
 0x25c   :  { %v1667_v37 = vld [vmem:[#allocation9 + $0x240] sm:$0xff] }
 0x25e   :  { %3427 = vmatpush1.bf16.msra.mxu0 %v3426_v43  ;;  %v3584_v43 = vpack.c.bf16 %v1626_v42, %v1620_v10  ;;  %v1686_v10 = vld [vmem:[#allocation9 + $0x2d8] sm:$0xff] }
 0x25f   :  { %3429 = vmatprep.subr.bf16.mxu0 %v3428_v14  ;;  %v1624_v14 = vld [vmem:[#allocation9 + $0xe8] sm:$0xff] }
 0x260   :  { %3585 = vmatprep.subr.bf16.mxu1 %v3584_v43  ;;  %v3776_v55 = vpack.c.bf16 %v1630_v46, %v1624_v14  ;;  %v1671_v14 = vld [vmem:[#allocation9 + $0x260] sm:$0xff]  ;;  %v1677_v46 = vld [vmem:[#allocation9 + $0x290] sm:$0xff] }
 0x262   :  { %3431 = vmatpush1.bf16.msra.mxu0 %v3430_v51  ;;  %v3586_v51 = vpack.c.bf16 %v1625_v48, %v1619_v47  ;;  %v3792_v47 = vpack.c.bf16 %v1678_v40, %v1672_v36  ;;  %v3604_v48 = vpack.c.bf16 %v1686_v10, %v1680_v41  ;;  %v1734_v36 = vld [vmem:[#allocation9 + $0x458] sm:$0xff]  ;;  %v1719_v40 = vld [vmem:[#allocation9 + $0x3e0] sm:$0xff]  ;;  %v1725_v41 = vld [vmem:[#allocation9 + $0x410] sm:$0xff] }
 0x263   :  { %3433 = vmatprep.subr.bf16.mxu0 %v3432_v52  ;;  %v1623_v52 = vld [vmem:[#allocation9 + $0xe0] sm:$0xff] }
 0x264   :  { %3587 = vmatpush1.bf16.msra.mxu1 %v3586_v51  ;;  %v1679_v51 = vld [vmem:[#allocation9 + $0x2a0] sm:$0xff] }
 0x266   :  { %3435 = vmatpush1.bf16.msra.mxu0 %v3434_v31  ;;  %v3588_v31 = vpack.c.bf16 %v1638_v54, %v1632_v53  ;;  %v1690_v54 = vld [vmem:[#allocation9 + $0x2f8] sm:$0xff] }
 0x267   :  { %3437 = vmatprep.subr.bf16.mxu0 %v3436_v56  ;;  %v1631_v56 = vld [vmem:[#allocation9 + $0x120] sm:$0xff] }
 0x268   :  { %3589 = vmatprep.subr.bf16.mxu1 %v3588_v31 }
 0x26a   :  { %3439 = vmatpush1.bf16.msra.mxu0 %v3438_v30  ;;  %v3590_v30 = vpack.c.bf16 %v1637_v49, %v1631_v56  ;;  %v3794_v49 = vpack.c.bf16 %v1677_v46, %v1671_v14  ;;  %v1727_v14 = vld [vmem:[#allocation9 + $0x420] sm:$0xff]  ;;  %v1733_v46 = vld [vmem:[#allocation9 + $0x450] sm:$0xff] }
 0x26b   :  { %3441 = vmatprep.subr.bf16.mxu0 %v3440_v63  ;;  %v1635_v63 = vld [vmem:[#allocation9 + $0x140] sm:$0xff] }
 0x26c   :  { %3591 = vmatpush1.bf16.msra.mxu1 %v3590_v30  ;;  %v3782_v12 = vpack.c.bf16 %v1641_v1, %v1635_v63  ;;  %v1696_v30 = vld [vmem:[#allocation9 + $0x328] sm:$0xff]  ;;  %v1691_v63 = vld [vmem:[#allocation9 + $0x300] sm:$0xff]  ;;  %v1697_v1 = vld [vmem:[#allocation9 + $0x330] sm:$0xff] }
 0x26d   :  { %3593 = vmatprep.subr.bf16.mxu1 %v3592_v3  ;;  %v1704_v3 = vld [vmem:[#allocation9 + $0x368] sm:$0xff] }
 0x26e   :  { %3443 = vmatpush1.bf16.msra.mxu0 %v3442_v5  ;;  %v1643_v5 = vld [vmem:[#allocation9 + $0x180] sm:$0xff] }
 0x26f   :  { %3445 = vmatprep.subr.bf16.mxu0 %v3444_v6  ;;  %v1649_v6 = vld [vmem:[#allocation9 + $0x1b0] sm:$0xff] }
 0x270   :  { %v3594_v13 = vpack.c.bf16 %v1649_v6, %v1643_v5  ;;  %v3798_v5 = vpack.c.bf16 %v1689_v62, %v1683_v60  ;;  %v3610_v6 = vpack.c.bf16 %v1697_v1, %v1691_v63  ;;  %v1750_v60 = vld [vmem:[#allocation9 + $0x4d8] sm:$0xff]  ;;  %v1752_v62 = vld [vmem:[#allocation9 + $0x4e8] sm:$0xff]  ;;  %v1743_v63 = vld [vmem:[#allocation9 + $0x4a0] sm:$0xff] }
 0x271   :  { %v1749_v1 = vld [vmem:[#allocation9 + $0x4d0] sm:$0xff] }
 0x272   :  { %3447 = vmatpush1.bf16.msra.mxu0 %v3446_v11  ;;  %v1662_v11 = vld [vmem:[#allocation9 + $0x218] sm:$0xff]  ;;  %3595 = vmatpush1.bf16.msra.mxu1 %v3594_v13  ;;  %v1708_v13 = vld [vmem:[#allocation9 + $0x388] sm:$0xff] }
 0x273   :  { %3769 = vmatprep.subr.bf16.mxu0 %v3768_v19  ;;  %v3596_v17 = vpack.c.bf16 %v1662_v11, %v1656_v8  ;;  %v1655_v19 = vld [vmem:[#allocation9 + $0x1e0] sm:$0xff]  ;;  %v1701_v8 = vld [vmem:[#allocation9 + $0x350] sm:$0xff] }
 0x274   :  { %v3598_v26 = vpack.c.bf16 %v1661_v20, %v1655_v19  ;;  %v3802_v19 = vpack.c.bf16 %v1701_v8, %v1695_v7  ;;  %v3614_v20 = vpack.c.bf16 %v1709_v25, %v1703_v15  ;;  %v1762_v7 = vld [vmem:[#allocation9 + $0x538] sm:$0xff]  ;;  %v1764_v8 = vld [vmem:[#allocation9 + $0x548] sm:$0xff]  ;;  %v1755_v25 = vld [vmem:[#allocation9 + $0x500] sm:$0xff] }
 0x275   :  { %1306 = vmatmul.mubr.f32.vlgmr.msra.gmra.mrb[4].mxu0 %v625_v39  ;;  %v3778_v39 = vpack.c.bf16 %v1629_v29, %v1623_v52  ;;  %3597 = vmatprep.subr.bf16.mxu1 %v3596_v17  ;;  %v1685_v52 = vld [vmem:[#allocation9 + $0x2d0] sm:$0xff]  ;;  %v1698_v29 = vld [vmem:[#allocation9 + $0x338] sm:$0xff]  ;;  %v1716_v17 = vld [vmem:[#allocation9 + $0x3c8] sm:$0xff] }
 0x276   :  { %3771 = vmatpush1.bf16.msra.mxu0 %v3770_v28  ;;  %v1665_v28 = vld [vmem:[#allocation9 + $0x230] sm:$0xff]  ;;  %3599 = vmatpush1.bf16.msra.mxu1 %v3598_v26  ;;  %v3606_v16 = vpack.c.bf16 %v1685_v52, %v1679_v51  ;;  %v1720_v26 = vld [vmem:[#allocation9 + $0x3e8] sm:$0xff]  ;;  %v3810_v51 = vpack.c.bf16 %v1725_v41, %v1719_v40  ;;  %v3622_v52 = vpack.c.bf16 %v1733_v46, %v1727_v14 }
 0x277   :  { %3773 = vmatprep.subr.bf16.mxu0 %v3772_v38  ;;  %v1673_v38 = vld [vmem:[#allocation9 + $0x270] sm:$0xff]  ;;  %v3790_v42 = vpack.c.bf16 %v1665_v28, %v1659_v34  ;;  %3601 = vmatprep.subr.bf16.mxu1 %v3600_v58  ;;  %v1715_v34 = vld [vmem:[#allocation9 + $0x3c0] sm:$0xff]  ;;  %v1728_v58 = vld [vmem:[#allocation9 + $0x428] sm:$0xff] }
 0x278   :  { %v3602_v43 = vpack.c.bf16 %v1673_v38, %v1667_v37  ;;  %v1721_v28 = vld [vmem:[#allocation9 + $0x3f0] sm:$0xff]  ;;  %v3806_v37 = vpack.c.bf16 %v1713_v22, %v1707_v21  ;;  %v1768_v21 = vld [vmem:[#allocation9 + $0x568] sm:$0xff]  ;;  %v1774_v22 = vld [vmem:[#allocation9 + $0x598] sm:$0xff] }
 0x279   :  { %v3618_v38 = vpack.c.bf16 %v1721_v28, %v1715_v34  ;;  %v3824_v34 = vpack.c.bf16 %v1774_v22, %v1768_v21  ;;  %v1767_v28 = vld [vmem:[#allocation9 + $0x560] sm:$0xff] }
 0x27a   :  { %3775 = vmatpush1.bf16.msra.mxu0 %v3774_v50  ;;  %v1684_v50 = vld [vmem:[#allocation9 + $0x2c8] sm:$0xff]  ;;  %3603 = vmatpush1.bf16.msra.mxu1 %v3602_v43 }
 0x27b   :  { %3777 = vmatprep.subr.bf16.mxu0 %v3776_v55  ;;  %v1692_v55 = vld [vmem:[#allocation9 + $0x308] sm:$0xff]  ;;  %3605 = vmatprep.subr.bf16.mxu1 %v3604_v48  ;;  %v3796_v27 = vpack.c.bf16 %v1690_v54, %v1684_v50  ;;  %v1746_v50 = vld [vmem:[#allocation9 + $0x4b8] sm:$0xff]  ;;  %v1737_v54 = vld [vmem:[#allocation9 + $0x470] sm:$0xff] }
 0x27c   :  { %v1732_v43 = vld [vmem:[#allocation9 + $0x448] sm:$0xff] }
 0x27d   :  { %v1740_v48 = vld [vmem:[#allocation9 + $0x488] sm:$0xff] }
 0x27e   :  { %3779 = vmatpush1.bf16.msra.mxu0 %v3778_v39  ;;  %v3608_v39 = vpack.c.bf16 %v1698_v29, %v1692_v55  ;;  %3607 = vmatpush1.bf16.msra.mxu1 %v3606_v16  ;;  %v3624_v29 = vpack.c.bf16 %v1746_v50, %v1740_v48  ;;  %v1745_v16 = vld [vmem:[#allocation9 + $0x4b0] sm:$0xff]  ;;  %v1775_v48 = vld [vmem:[#allocation9 + $0x5a0] sm:$0xff] }
 0x27f   :  { %3781 = vmatprep.subr.bf16.mxu0 %v3780_v2  ;;  %v1702_v2 = vld [vmem:[#allocation9 + $0x358] sm:$0xff]  ;;  %v1781_v50 = vld [vmem:[#allocation9 + $0x5d0] sm:$0xff] }
 0x280   :  { %3609 = vmatprep.subr.bf16.mxu1 %v3608_v39  ;;  %v3800_v11 = vpack.c.bf16 %v1702_v2, %v1696_v30 }
 0x282   :  { %3783 = vmatpush1.bf16.msra.mxu0 %v3782_v12  ;;  %v3612_v12 = vpack.c.bf16 %v1710_v4, %v1704_v3  ;;  %3611 = vmatpush1.bf16.msra.mxu1 %v3610_v6  ;;  %v1756_v4 = vld [vmem:[#allocation9 + $0x508] sm:$0xff]  ;;  %v1757_v6 = vld [vmem:[#allocation9 + $0x510] sm:$0xff] }
 0x283   :  { %3785 = vmatprep.subr.bf16.mxu0 %v3784_v45  ;;  %v1714_v45 = vld [vmem:[#allocation9 + $0x3b8] sm:$0xff] }
 0x284   :  { %3613 = vmatprep.subr.bf16.mxu1 %v3612_v12  ;;  %v3804_v23 = vpack.c.bf16 %v1714_v45, %v1708_v13  ;;  %v4555_v12 = vld [vmem:[#allocation7] sm:$0x7]  ;;  %v3818_v13 = vpack.c.bf16 %v1749_v1, %v1743_v63  ;;  %v3820_v45 = vpack.c.bf16 %v1762_v7, %v1756_v4  ;;  %v1793_v7 = vld [vmem:[#allocation9 + $0x630] sm:$0xff] }
 0x285   :  { %v1020_v4 = vrot.slane %v4555_v12, %v4479_v35 }
 0x286   :  { %3787 = vmatpush1.bf16.msra.mxu0 %v3786_v24  ;;  %v3616_v24 = vpack.c.bf16 %v1722_v18, %v1716_v17  ;;  %3615 = vmatpush1.bf16.msra.mxu1 %v3614_v20  ;;  %v1761_v17 = vld [vmem:[#allocation9 + $0x530] sm:$0xff] }
 0x287   :  { %3789 = vmatprep.subr.bf16.mxu0 %v3788_v44  ;;  %v1726_v44 = vld [vmem:[#allocation9 + $0x418] sm:$0xff]  ;;  %v1769_v20 = vld [vmem:[#allocation9 + $0x570] sm:$0xff] }
 0x288   :  { %v2799_v53 = vpop.f32.mrb[4].mxu1  ;;  %3617 = vmatprep.subr.bf16.mxu1 %v3616_v24  ;;  %v3808_v10 = vpack.c.bf16 %v1726_v44, %v1720_v26  ;;  %v3822_v24 = vpack.c.bf16 %v1761_v17, %v1755_v25  ;;  %v1773_v44 = vld [vmem:[#allocation9 + $0x590] sm:$0xff]  ;;  %v1800_v25 = vld [vmem:[#allocation9 + $0x668] sm:$0xff]  ;;  %v1806_v17 = vld [vmem:[#allocation9 + $0x698] sm:$0xff] }
 0x289   :  { %v2800_v31 = vpop.f32.mrb[5].mxu1  ;;  %v3826_v40 = vpack.c.bf16 %v1773_v44, %v1767_v28  ;;  %v1803_v28 = vld [vmem:[#allocation9 + $0x680] sm:$0xff]  ;;  %v1809_v44 = vld [vmem:[#allocation9 + $0x6b0] sm:$0xff] }
 0x28a   :  { %v4553_v56 = vadd.f32 %v2800_v31, %v2799_v53  ;;  %3791 = vmatpush1.bf16.msra.mxu0 %v3790_v42  ;;  %v3620_v42 = vpack.c.bf16 %v1734_v36, %v1728_v58  ;;  %3619 = vmatpush1.bf16.msra.mxu1 %v3618_v38  ;;  %v1731_v53 = vld [vmem:[#allocation9 + $0x440] sm:$0xff]  ;;  %v1744_v31 = vld [vmem:[#allocation9 + $0x4a8] sm:$0xff] }
 0x28b   :  { %3793 = vmatprep.subr.bf16.mxu0 %v3792_v47  ;;  %v1738_v47 = vld [vmem:[#allocation9 + $0x478] sm:$0xff]  ;;  %v3814_v39 = vpack.c.bf16 %v1737_v54, %v1731_v53  ;;  %v3816_v2 = vpack.c.bf16 %v1750_v60, %v1744_v31  ;;  %v3638_v53 = vpack.c.bf16 %v1781_v50, %v1775_v48  ;;  %v1779_v54 = vld [vmem:[#allocation9 + $0x5c0] sm:$0xff]  ;;  %v1788_v31 = vld [vmem:[#allocation9 + $0x608] sm:$0xff] }
 0x28c   :  { %3621 = vmatprep.subr.bf16.mxu1 %v3620_v42  ;;  %v3812_v55 = vpack.c.bf16 %v1738_v47, %v1732_v43  ;;  %v1782_v42 = vld [vmem:[#allocation9 + $0x5d8] sm:$0xff]  ;;  %v1780_v43 = vld [vmem:[#allocation9 + $0x5c8] sm:$0xff] }
 0x28d   :  { %v1786_v47 = vld [vmem:[#allocation9 + $0x5f8] sm:$0xff]  ;;  %v1824_v48 = vld [vmem:[#allocation9 + $0x728] sm:$0xff] }
 0x28e   :  { %3795 = vmatpush1.bf16.msra.mxu0 %v3794_v49  ;;  %v1739_v49 = vld [vmem:[#allocation9 + $0x480] sm:$0xff]  ;;  %3623 = vmatpush1.bf16.msra.mxu1 %v3622_v52  ;;  %v3828_v52 = vpack.c.bf16 %v1786_v47, %v1780_v43  ;;  %v1821_v47 = vld [vmem:[#allocation9 + $0x710] sm:$0xff]  ;;  %v1830_v50 = vld [vmem:[#allocation9 + $0x758] sm:$0xff] }
 0x28f   :  { %3797 = vmatprep.subr.bf16.mxu0 %v3796_v27  ;;  %v1758_v27 = vld [vmem:[#allocation9 + $0x518] sm:$0xff]  ;;  %v3626_v30 = vpack.c.bf16 %v1745_v16, %v1739_v49  ;;  %3625 = vmatprep.subr.bf16.mxu1 %v3624_v29  ;;  %v1792_v16 = vld [vmem:[#allocation9 + $0x628] sm:$0xff] }
 0x290   :  { %v3628_v3 = vpack.c.bf16 %v1758_v27, %v1752_v62  ;;  %v1794_v49 = vld [vmem:[#allocation9 + $0x638] sm:$0xff] }
 0x291   :  { %v3640_v62 = vpack.c.bf16 %v1794_v49, %v1788_v31  ;;  %v1798_v27 = vld [vmem:[#allocation9 + $0x658] sm:$0xff]  ;;  %v1827_v49 = vld [vmem:[#allocation9 + $0x740] sm:$0xff] }
 0x292   :  { %3799 = vmatpush1.bf16.msra.mxu0 %v3798_v5  ;;  %v1751_v5 = vld [vmem:[#allocation9 + $0x4e0] sm:$0xff]  ;;  %3627 = vmatpush1.bf16.msra.mxu1 %v3626_v30 }
 0x293   :  { %3801 = vmatprep.subr.bf16.mxu0 %v3800_v11  ;;  %v1770_v11 = vld [vmem:[#allocation9 + $0x578] sm:$0xff]  ;;  %v3630_v15 = vpack.c.bf16 %v1757_v6, %v1751_v5  ;;  %3629 = vmatprep.subr.bf16.mxu1 %v3628_v3  ;;  %v1016_v3 = vrot.slane %v4555_v12, %v4474_v33  ;;  %v1787_v6 = vld [vmem:[#allocation9 + $0x600] sm:$0xff] }
 0x294   :  { %v3632_v18 = vpack.c.bf16 %v1770_v11, %v1764_v8  ;;  %v3642_v21 = vpack.c.bf16 %v1793_v7, %v1787_v6  ;;  %v1839_v6 = vld [vmem:[#allocation9 + $0x7a0] sm:$0xff]  ;;  %v1845_v7 = vld [vmem:[#allocation9 + $0x7d0] sm:$0xff] }
 0x296   :  { %3803 = vmatpush1.bf16.msra.mxu0 %v3802_v19  ;;  %v1763_v19 = vld [vmem:[#allocation9 + $0x540] sm:$0xff]  ;;  %3631 = vmatpush1.bf16.msra.mxu1 %v3630_v15  ;;  %v1797_v15 = vld [vmem:[#allocation9 + $0x650] sm:$0xff] }
 0x297   :  { %3805 = vmatprep.subr.bf16.mxu0 %v3804_v23  ;;  %v1024_v23 = vrot.slane %v4555_v12, %v4492_v59  ;;  %v3634_v26 = vpack.c.bf16 %v1769_v20, %v1763_v19  ;;  %3633 = vmatprep.subr.bf16.mxu1 %v3632_v18  ;;  %v1804_v18 = vld [vmem:[#allocation9 + $0x688] sm:$0xff]  ;;  %v1810_v19 = vld [vmem:[#allocation9 + $0x6b8] sm:$0xff]  ;;  %v3644_v12 = vpack.c.bf16 %v1806_v17, %v1800_v25  ;;  %v1847_v17 = vld [vmem:[#allocation9 + $0x7e0] sm:$0xff] }
 0x29a   :  { %3807 = vmatpush1.bf16.msra.mxu0 %v3806_v37  ;;  %v1379_v37 = vadd.f32 %v4553_v56, %v1024_v23  ;;  %3635 = vmatpush1.bf16.msra.mxu1 %v3634_v26  ;;  %v1785_v56 = vld [vmem:[#allocation9 + $0x5f0] sm:$0xff]  ;;  %v1799_v23 = vld [vmem:[#allocation9 + $0x660] sm:$0xff] }
 0x29b   :  { %3809 = vmatprep.subr.bf16.mxu0 %v3808_v10  ;;  %v1776_v10 = vld [vmem:[#allocation9 + $0x5a8] sm:$0xff]  ;;  %v3830_v29 = vpack.c.bf16 %v1785_v56, %v1779_v54  ;;  %v1823_v56 = vld [vmem:[#allocation9 + $0x720] sm:$0xff] }
 0x29c   :  { %v3636_v46 = vpack.c.bf16 %v1782_v42, %v1776_v10  ;;  %v1811_v10 = vld [vmem:[#allocation9 + $0x6c0] sm:$0xff]  ;;  %v1817_v42 = vld [vmem:[#allocation9 + $0x6f0] sm:$0xff] }
 0x29e   :  { %3811 = vmatpush1.bf16.msra.mxu0 %v3810_v51  ;;  %3637 = vmatprep.subr.bf16.mxu1 %v3636_v46  ;;  %v1815_v46 = vld [vmem:[#allocation9 + $0x6e0] sm:$0xff] }
 0x29f   :  { %3813 = vmatprep.subr.bf16.mxu0 %v3812_v55  ;;  %3639 = vmatpush1.bf16.msra.mxu1 %v3638_v53  ;;  %v3650_v53 = vpack.c.bf16 %v1817_v42, %v1811_v10  ;;  %v3842_v54 = vpack.c.bf16 %v1821_v47, %v1815_v46  ;;  %v1869_v10 = vld [vmem:[#allocation9 + $0x890] sm:$0xff]  ;;  %v1872_v42 = vld [vmem:[#allocation9 + $0x8a8] sm:$0xff]  ;;  %v1882_v46 = vld [vmem:[#allocation9 + $0x8f8] sm:$0xff] }
 0x2a0   :  { %3641 = vmatprep.subr.bf16.mxu1 %v3640_v62  ;;  %v1842_v62 = vld [vmem:[#allocation9 + $0x7b8] sm:$0xff] }
 0x2a2   :  { %3815 = vmatpush1.bf16.msra.mxu0 %v3814_v39  ;;  %v3832_v39 = vpack.c.bf16 %v1798_v27, %v1792_v16  ;;  %v1833_v16 = vld [vmem:[#allocation9 + $0x770] sm:$0xff]  ;;  %v1840_v27 = vld [vmem:[#allocation9 + $0x7a8] sm:$0xff] }
 0x2a3   :  { %3817 = vmatprep.subr.bf16.mxu0 %v3816_v2 }
 0x2a6   :  { %3819 = vmatpush1.bf16.msra.mxu0 %v3818_v13  ;;  %v1791_v13 = vld [vmem:[#allocation9 + $0x620] sm:$0xff] }
 0x2a7   :  { %3821 = vmatprep.subr.bf16.mxu0 %v3820_v45  ;;  %v3834_v22 = vpack.c.bf16 %v1797_v15, %v1791_v13  ;;  %v1852_v13 = vld [vmem:[#allocation9 + $0x808] sm:$0xff]  ;;  %v1858_v15 = vld [vmem:[#allocation9 + $0x838] sm:$0xff] }
 0x2a8   :  { %v2834_v58 = vpop.f32.mrb[6].mxu1 }
 0x2a9   :  { %v2835_v36 = vpop.f32.mrb[7].mxu1 }
 0x2aa   :  { %v2836_v38 = vadd.f32 %v2835_v36, %v2834_v58  ;;  %3823 = vmatpush1.bf16.msra.mxu0 %v3822_v24  ;;  %v1805_v24 = vld [vmem:[#allocation9 + $0x690] sm:$0xff]  ;;  %v1812_v58 = vld [vmem:[#allocation9 + $0x6c8] sm:$0xff]  ;;  %v1818_v36 = vld [vmem:[#allocation9 + $0x6f8] sm:$0xff] }
 0x2ab   :  { %3825 = vmatprep.subr.bf16.mxu0 %v3824_v34  ;;  %v3836_v34 = vpack.c.bf16 %v1810_v19, %v1804_v18  ;;  %v3648_v43 = vpack.c.bf16 %v1818_v36, %v1812_v58  ;;  %v1853_v18 = vld [vmem:[#allocation9 + $0x810] sm:$0xff]  ;;  %v1859_v36 = vld [vmem:[#allocation9 + $0x840] sm:$0xff] }
 0x2ac   :  { %v1449_v41 = vadd.f32 %v2836_v38, %v1379_v37  ;;  %v1816_v37 = vld [vmem:[#allocation9 + $0x6e8] sm:$0xff]  ;;  %v1822_v38 = vld [vmem:[#allocation9 + $0x718] sm:$0xff] }
 0x2ae   :  { %3827 = vmatpush1.bf16.msra.mxu0 %v3826_v40  ;;  %v3646_v40 = vpack.c.bf16 %v1805_v24, %v1799_v23  ;;  %v1857_v23 = vld [vmem:[#allocation9 + $0x830] sm:$0xff]  ;;  %v1860_v24 = vld [vmem:[#allocation9 + $0x848] sm:$0xff] }
 0x2af   :  { %3829 = vmatprep.subr.bf16.mxu0 %v3828_v52  ;;  %v1834_v52 = vld [vmem:[#allocation9 + $0x778] sm:$0xff] }
 0x2b2   :  { %3831 = vmatpush1.bf16.msra.mxu0 %v3830_v29  ;;  %v3652_v29 = vpack.c.bf16 %v1830_v50, %v1824_v48  ;;  %v1871_v50 = vld [vmem:[#allocation9 + $0x8a0] sm:$0xff] }
 0x2b3   :  { %3833 = vmatprep.subr.bf16.mxu0 %v3832_v39  ;;  %v1846_v39 = vld [vmem:[#allocation9 + $0x7d8] sm:$0xff] }
 0x2c8   :  { %v2869_v14 = vpop.f32.mrb[8].mxu1 }
 0x2c9   :  { %v2870_v51 = vpop.f32.mrb[9].mxu1 }
 0x2ca   :  { %v2871_v55 = vadd.f32 %v2870_v51, %v2869_v14  ;;  %v3840_v14 = vpack.c.bf16 %v1822_v38, %v1816_v37  ;;  %v1828_v51 = vld [vmem:[#allocation9 + $0x748] sm:$0xff]  ;;  %v1865_v37 = vld [vmem:[#allocation9 + $0x870] sm:$0xff] }
 0x2cb   :  { %v3844_v31 = vpack.c.bf16 %v1834_v52, %v1828_v51  ;;  %v3666_v47 = vpack.c.bf16 %v1865_v37, %v1859_v36  ;;  %v1663_v36 = vld [vmem:[#allocation9 + $0x220] sm:$0xff]  ;;  %v1670_v37 = vld [vmem:[#allocation9 + $0x258] sm:$0xff] }
 0x2cc   :  { %v1519_v60 = vadd.f32 %v2871_v55, %v1449_v41  ;;  %v3838_v41 = vpack.c.bf16 %v1809_v44, %v1803_v28  ;;  %v1829_v55 = vld [vmem:[#allocation9 + $0x750] sm:$0xff]  ;;  %v1870_v28 = vld [vmem:[#allocation9 + $0x898] sm:$0xff]  ;;  %v3662_v44 = vpack.c.bf16 %v1853_v18, %v1847_v17  ;;  %v1639_v18 = vld [vmem:[#allocation9 + $0x160] sm:$0xff] }
 0x2cd   :  { %v1633_v17 = vld [vmem:[#allocation9 + $0x130] sm:$0xff] }
 0x2e8   :  { %v2904_v30 = vpop.f32.mrb[10].mxu1 }
 0x2e9   :  { %v2905_v63 = vpop.f32.mrb[11].mxu1 }
 0x2ea   :  { %v2906_v1 = vadd.f32 %v2905_v63, %v2904_v30  ;;  %v3654_v30 = vpack.c.bf16 %v1829_v55, %v1823_v56  ;;  %v3846_v63 = vpack.c.bf16 %v1833_v16, %v1827_v49  ;;  %v1881_v56 = vld [vmem:[#allocation9 + $0x8f0] sm:$0xff]  ;;  %v1598_v55 = vld [vmem:[#allocation9 + $0x18] sm:$0xff] }
 0x2ec   :  { %v4560_v2 = vadd.f32 %v2906_v1, %v1519_v60  ;;  %v1836_v60 = vld [vmem:[#allocation9 + $0x788] sm:$0xff]  ;;  %v1835_v1 = vld [vmem:[#allocation9 + $0x780] sm:$0xff] }
 0x348   :  { %v1307_v5 = vpop.f32.mrb[4].mxu0 }
 0x349   :  { %v3984_v8 = vadd.f32 %v1307_v5, %v1016_v3  ;;  %v1309_v11 = vpop.f32.mrb[5].mxu0  ;;  %v1841_v3 = vld [vmem:[#allocation9 + $0x7b0] sm:$0xff]  ;;  %v3848_v5 = vpack.c.bf16 %v1846_v39, %v1840_v27  ;;  %v1610_v27 = vld [vmem:[#allocation9 + $0x78] sm:$0xff]  ;;  %v1616_v39 = vld [vmem:[#allocation9 + $0xa8] sm:$0xff] }
 0x34a   :  { %v3985_v45 = vadd.f32 %v1309_v11, %v1020_v4  ;;  %v3656_v4 = vpack.c.bf16 %v1842_v62, %v1836_v60  ;;  %v1854_v11 = vld [vmem:[#allocation9 + $0x818] sm:$0xff]  ;;  %v3658_v25 = vpack.c.bf16 %v1841_v3, %v1835_v1  ;;  %v1597_v60 = vld [vmem:[#allocation9 + $0x10] sm:$0xff]  ;;  %v1603_v62 = vld [vmem:[#allocation9 + $0x40] sm:$0xff]  ;;  %v3676_v1 = vpack.c.bf16 %v1616_v39, %v1610_v27 }
 0x34b   :  { %v4568_v26 = vmax.f32 %v3984_v8, 0.0  ;;  %v1848_v8 = vld [vmem:[#allocation9 + $0x7e8] sm:$0xff]  ;;  %v1609_v3 = vld [vmem:[#allocation9 + $0x70] sm:$0xff]  ;;  %v1718_v27 = vld [vmem:[#allocation9 + $0x3d8] sm:$0xff] }
 0x34c   :  { %v4566_v20 = vmax.f32 %v3985_v45, 0.0  ;;  %v3850_v45 = vpack.c.bf16 %v1845_v7, %v1839_v6  ;;  %v3660_v19 = vpack.c.bf16 %v1854_v11, %v1848_v8  ;;  %v1628_v6 = vld [vmem:[#allocation9 + $0x108] sm:$0xff]  ;;  %v1621_v11 = vld [vmem:[#allocation9 + $0xd0] sm:$0xff] }
 0x34d   :  { %v1724_v39 = vld [vmem:[#allocation9 + $0x408] sm:$0xff] }
 0x34e   :  { %1979 = vmatprep.mubr.f32.mxu1 %v4566_v20  ;;  %2263 = vmatprep.mubr.f32.mxu0 %v4566_v20 }
 0x34f   :  { %1980 = vmatmul.mubr.f32.vlgmr.msra.gmra.mrb[12].mxu1 %v4568_v26  ;;  %2264 = vmatmul.mubr.f32.vlgmr.msra.gmra.mrb[6].mxu0 %v4568_v26 }
 0x350   :  { %3643 = vmatpush1.bf16.msra.mxu1 %v3642_v21  ;;  %3835 = vmatpush1.bf16.msra.mxu0 %v3834_v22  ;;  %v3852_v21 = vpack.c.bf16 %v1858_v15, %v1852_v13  ;;  %v1851_v22 = vld [vmem:[#allocation9 + $0x800] sm:$0xff]  ;;  %v1640_v15 = vld [vmem:[#allocation9 + $0x168] sm:$0xff] }
 0x351   :  { %3645 = vmatprep.subr.bf16.mxu1 %v3644_v12  ;;  %3837 = vmatprep.subr.bf16.mxu0 %v3836_v34  ;;  %v1866_v12 = vld [vmem:[#allocation9 + $0x878] sm:$0xff]  ;;  %v1864_v34 = vld [vmem:[#allocation9 + $0x868] sm:$0xff]  ;;  %v3854_v58 = vpack.c.bf16 %v1857_v23, %v1851_v22  ;;  %v1627_v13 = vld [vmem:[#allocation9 + $0x100] sm:$0xff]  ;;  %v3686_v22 = vpack.c.bf16 %v1639_v18, %v1633_v17 }
 0x352   :  { %2050 = vmatprep.mubr.f32.mxu1 %v4275_v0  ;;  %2334 = vmatprep.mubr.f32.mxu0 %v4275_v0  ;;  %v3664_v38 = vpack.c.bf16 %v1866_v12, %v1860_v24  ;;  %v1651_v24 = vld [vmem:[#allocation9 + $0x1c0] sm:$0xff]  ;;  %v1658_v12 = vld [vmem:[#allocation9 + $0x1f8] sm:$0xff]  ;;  %v1741_v17 = vld [vmem:[#allocation9 + $0x490] sm:$0xff] }
 0x353   :  { %v1747_v18 = vld [vmem:[#allocation9 + $0x4c0] sm:$0xff] }
 0x354   :  { %3647 = vmatpush1.bf16.msra.mxu1 %v3646_v40  ;;  %3839 = vmatpush1.bf16.msra.mxu0 %v3838_v41  ;;  %v3856_v40 = vpack.c.bf16 %v1870_v28, %v1864_v34  ;;  %v1863_v41 = vld [vmem:[#allocation9 + $0x860] sm:$0xff]  ;;  %v1664_v34 = vld [vmem:[#allocation9 + $0x228] sm:$0xff] }
 0x355   :  { %3649 = vmatprep.subr.bf16.mxu1 %v3648_v43  ;;  %3841 = vmatprep.subr.bf16.mxu0 %v3840_v14  ;;  %v1878_v43 = vld [vmem:[#allocation9 + $0x8d8] sm:$0xff]  ;;  %v1876_v14 = vld [vmem:[#allocation9 + $0x8c8] sm:$0xff]  ;;  %v3858_v48 = vpack.c.bf16 %v1869_v10, %v1863_v41  ;;  %v1669_v10 = vld [vmem:[#allocation9 + $0x250] sm:$0xff] }
 0x356   :  { %v3668_v51 = vpack.c.bf16 %v1878_v43, %v1872_v42  ;;  %v3860_v52 = vpack.c.bf16 %v1882_v46, %v1876_v14  ;;  %v1675_v42 = vld [vmem:[#allocation9 + $0x280] sm:$0xff]  ;;  %v1682_v43 = vld [vmem:[#allocation9 + $0x2b8] sm:$0xff]  ;;  %v1688_v14 = vld [vmem:[#allocation9 + $0x2e8] sm:$0xff] }
 0x357   :  { %v3698_v46 = vpack.c.bf16 %v1675_v42, %v1669_v10  ;;  %v1777_v10 = vld [vmem:[#allocation9 + $0x5b0] sm:$0xff]  ;;  %v1783_v42 = vld [vmem:[#allocation9 + $0x5e0] sm:$0xff] }
 0x358   :  { %3651 = vmatpush1.bf16.msra.mxu1 %v3650_v53  ;;  %3843 = vmatpush1.bf16.msra.mxu0 %v3842_v54  ;;  %v1877_v53 = vld [vmem:[#allocation9 + $0x8d0] sm:$0xff]  ;;  %v1875_v54 = vld [vmem:[#allocation9 + $0x8c0] sm:$0xff] }
 0x359   :  { %3653 = vmatprep.subr.bf16.mxu1 %v3652_v29  ;;  %3845 = vmatprep.subr.bf16.mxu0 %v3844_v31  ;;  %v1604_v29 = vld [vmem:[#allocation9 + $0x48] sm:$0xff]  ;;  %v3670_v31 = vpack.c.bf16 %v1877_v53, %v1871_v50  ;;  %v3862_v49 = vpack.c.bf16 %v1881_v56, %v1875_v54  ;;  %v1687_v50 = vld [vmem:[#allocation9 + $0x2e0] sm:$0xff]  ;;  %v1693_v56 = vld [vmem:[#allocation9 + $0x310] sm:$0xff] }
 0x35a   :  { %v3672_v16 = vpack.c.bf16 %v1604_v29, %v1598_v55  ;;  %v1699_v55 = vld [vmem:[#allocation9 + $0x340] sm:$0xff]  ;;  %v1706_v29 = vld [vmem:[#allocation9 + $0x378] sm:$0xff] }
 0x35c   :  { %3655 = vmatpush1.bf16.msra.mxu1 %v3654_v30  ;;  %3847 = vmatpush1.bf16.msra.mxu0 %v3846_v63  ;;  %v3674_v30 = vpack.c.bf16 %v1603_v62, %v1597_v60  ;;  %v4577_v63 = vmax.f32 %v4560_v2, 0.0  ;;  %v1634_v2 = vld [vmem:[#allocation9 + $0x138] sm:$0xff]  ;;  %v1705_v60 = vld [vmem:[#allocation9 + $0x370] sm:$0xff]  ;;  %v1711_v62 = vld [vmem:[#allocation9 + $0x3a0] sm:$0xff] }
 0x35d   :  { %3657 = vmatprep.subr.bf16.mxu1 %v3656_v4  ;;  %3849 = vmatprep.subr.bf16.mxu0 %v3848_v5  ;;  %v1615_v4 = vld [vmem:[#allocation9 + $0xa0] sm:$0xff]  ;;  %v1622_v5 = vld [vmem:[#allocation9 + $0xd8] sm:$0xff] }
 0x35e   :  { %v3678_v7 = vpack.c.bf16 %v1615_v4, %v1609_v3  ;;  %v3680_v8 = vpack.c.bf16 %v1628_v6, %v1622_v5  ;;  %v1717_v3 = vld [vmem:[#allocation9 + $0x3d0] sm:$0xff]  ;;  %v1723_v4 = vld [vmem:[#allocation9 + $0x400] sm:$0xff]  ;;  %v1730_v5 = vld [vmem:[#allocation9 + $0x438] sm:$0xff] }
 0x35f   :  { %v1736_v6 = vld [vmem:[#allocation9 + $0x468] sm:$0xff] }
 0x360   :  { %3659 = vmatpush1.bf16.msra.mxu1 %v3658_v25  ;;  %3851 = vmatpush1.bf16.msra.mxu0 %v3850_v45  ;;  %v3682_v25 = vpack.c.bf16 %v1627_v13, %v1621_v11  ;;  %v3684_v45 = vpack.c.bf16 %v1640_v15, %v1634_v2  ;;  %v1729_v11 = vld [vmem:[#allocation9 + $0x430] sm:$0xff]  ;;  %v1735_v13 = vld [vmem:[#allocation9 + $0x460] sm:$0xff]  ;;  %v1742_v2 = vld [vmem:[#allocation9 + $0x498] sm:$0xff] }
 0x361   :  { %3661 = vmatprep.subr.bf16.mxu1 %v3660_v19  ;;  %3853 = vmatprep.subr.bf16.mxu0 %v3852_v21  ;;  %v1646_v19 = vld [vmem:[#allocation9 + $0x198] sm:$0xff]  ;;  %v1652_v21 = vld [vmem:[#allocation9 + $0x1c8] sm:$0xff] }
 0x362   :  { %v3688_v23 = vpack.c.bf16 %v1652_v21, %v1646_v19  ;;  %v1748_v15 = vld [vmem:[#allocation9 + $0x4c8] sm:$0xff]  ;;  %v1754_v19 = vld [vmem:[#allocation9 + $0x4f8] sm:$0xff] }
 0x363   :  { %v1760_v21 = vld [vmem:[#allocation9 + $0x528] sm:$0xff] }
 0x364   :  { %3663 = vmatpush1.bf16.msra.mxu1 %v3662_v44  ;;  %3855 = vmatpush1.bf16.msra.mxu0 %v3854_v58  ;;  %v3692_v44 = vpack.c.bf16 %v1664_v34, %v1658_v12  ;;  %v1657_v58 = vld [vmem:[#allocation9 + $0x1f0] sm:$0xff]  ;;  %v1766_v12 = vld [vmem:[#allocation9 + $0x558] sm:$0xff]  ;;  %v1772_v34 = vld [vmem:[#allocation9 + $0x588] sm:$0xff] }
 0x365   :  { %3665 = vmatprep.subr.bf16.mxu1 %v3664_v38  ;;  %3857 = vmatprep.subr.bf16.mxu0 %v3856_v40  ;;  %v1676_v38 = vld [vmem:[#allocation9 + $0x288] sm:$0xff]  ;;  %v3694_v40 = vpack.c.bf16 %v1663_v36, %v1657_v58  ;;  %v1765_v58 = vld [vmem:[#allocation9 + $0x550] sm:$0xff]  ;;  %v1771_v36 = vld [vmem:[#allocation9 + $0x580] sm:$0xff] }
 0x366   :  { %v3696_v41 = vpack.c.bf16 %v1676_v38, %v1670_v37  ;;  %v1778_v37 = vld [vmem:[#allocation9 + $0x5b8] sm:$0xff]  ;;  %v1784_v38 = vld [vmem:[#allocation9 + $0x5e8] sm:$0xff] }
 0x368   :  { %3667 = vmatpush1.bf16.msra.mxu1 %v3666_v47  ;;  %3859 = vmatpush1.bf16.msra.mxu0 %v3858_v48  ;;  %v3700_v47 = vpack.c.bf16 %v1688_v14, %v1682_v43  ;;  %v1681_v48 = vld [vmem:[#allocation9 + $0x2b0] sm:$0xff]  ;;  %v1790_v43 = vld [vmem:[#allocation9 + $0x618] sm:$0xff]  ;;  %v1796_v14 = vld [vmem:[#allocation9 + $0x648] sm:$0xff] }
 0x369   :  { %3669 = vmatprep.subr.bf16.mxu1 %v3668_v51  ;;  %3861 = vmatprep.subr.bf16.mxu0 %v3860_v52  ;;  %v1694_v51 = vld [vmem:[#allocation9 + $0x318] sm:$0xff]  ;;  %v1700_v52 = vld [vmem:[#allocation9 + $0x348] sm:$0xff]  ;;  %v3702_v53 = vpack.c.bf16 %v1687_v50, %v1681_v48  ;;  %v1789_v48 = vld [vmem:[#allocation9 + $0x610] sm:$0xff] }
 0x36a   :  { %v3704_v54 = vpack.c.bf16 %v1700_v52, %v1694_v51  ;;  %v1795_v50 = vld [vmem:[#allocation9 + $0x640] sm:$0xff]  ;;  %v1802_v51 = vld [vmem:[#allocation9 + $0x678] sm:$0xff]  ;;  %v1808_v52 = vld [vmem:[#allocation9 + $0x6a8] sm:$0xff] }
 0x36c   :  { %3671 = vmatpush1.bf16.msra.mxu1 %v3670_v31  ;;  %3863 = vmatpush1.bf16.msra.mxu0 %v3862_v49  ;;  %v1712_v31 = vld [vmem:[#allocation9 + $0x3a8] sm:$0xff]  ;;  %v3706_v49 = vpack.c.bf16 %v1699_v55, %v1693_v56  ;;  %v1801_v56 = vld [vmem:[#allocation9 + $0x670] sm:$0xff]  ;;  %v1807_v55 = vld [vmem:[#allocation9 + $0x6a0] sm:$0xff] }
 0x36d   :  { %3673 = vmatprep.subr.bf16.mxu1 %v3672_v16  ;;  %v3708_v16 = vpack.c.bf16 %v1712_v31, %v1706_v29  ;;  %v1814_v29 = vld [vmem:[#allocation9 + $0x6d8] sm:$0xff]  ;;  %v1820_v31 = vld [vmem:[#allocation9 + $0x708] sm:$0xff] }
 0x36f   :  { %2051 = vmatmul.mubr.f32.vlgmr.msra.gmra.mrb[12].mxu1 %v4577_v63  ;;  %2335 = vmatmul.mubr.f32.vlgmr.msra.gmra.mrb[6].mxu0 %v4577_v63 }
 0x370   :  { %3675 = vmatpush1.bf16.msra.mxu1 %v3674_v30  ;;  %2121 = vmatprep.mubr.f32.mxu1 %v4566_v20  ;;  %v1645_v20 = vld [vmem:[#allocation9 + $0x190] sm:$0xff]  ;;  %v3710_v30 = vpack.c.bf16 %v1711_v62, %v1705_v60  ;;  %v1819_v62 = vld [vmem:[#allocation9 + $0x700] sm:$0xff] }
 0x371   :  { %3677 = vmatprep.subr.bf16.mxu1 %v3676_v1  ;;  %v3690_v28 = vpack.c.bf16 %v1651_v24, %v1645_v20  ;;  %v3712_v1 = vpack.c.bf16 %v1724_v39, %v1718_v27  ;;  %v1753_v20 = vld [vmem:[#allocation9 + $0x4f0] sm:$0xff]  ;;  %v1759_v24 = vld [vmem:[#allocation9 + $0x520] sm:$0xff]  ;;  %v1826_v27 = vld [vmem:[#allocation9 + $0x738] sm:$0xff] }
 0x372   :  { %v1813_v60 = vld [vmem:[#allocation9 + $0x6d0] sm:$0xff]  ;;  %v1832_v39 = vld [vmem:[#allocation9 + $0x768] sm:$0xff] }
 0x374   :  { %3679 = vmatpush1.bf16.msra.mxu1 %v3678_v7  ;;  %v3714_v7 = vpack.c.bf16 %v1723_v4, %v1717_v3  ;;  %v1825_v3 = vld [vmem:[#allocation9 + $0x730] sm:$0xff]  ;;  %v1831_v4 = vld [vmem:[#allocation9 + $0x760] sm:$0xff] }
 0x375   :  { %3681 = vmatprep.subr.bf16.mxu1 %v3680_v8  ;;  %v3716_v8 = vpack.c.bf16 %v1736_v6, %v1730_v5  ;;  %v1838_v5 = vld [vmem:[#allocation9 + $0x798] sm:$0xff]  ;;  %v1844_v6 = vld [vmem:[#allocation9 + $0x7c8] sm:$0xff] }
 0x378   :  { %3683 = vmatpush1.bf16.msra.mxu1 %v3682_v25  ;;  %v3718_v25 = vpack.c.bf16 %v1735_v13, %v1729_v11  ;;  %v1843_v11 = vld [vmem:[#allocation9 + $0x7c0] sm:$0xff]  ;;  %v1850_v13 = vld [vmem:[#allocation9 + $0x7f8] sm:$0xff] }
 0x379   :  { %3685 = vmatprep.subr.bf16.mxu1 %v3684_v45  ;;  %v3720_v45 = vpack.c.bf16 %v1748_v15, %v1742_v2  ;;  %v1856_v2 = vld [vmem:[#allocation9 + $0x828] sm:$0xff] }
 0x37c   :  { %3687 = vmatpush1.bf16.msra.mxu1 %v3686_v22  ;;  %v3722_v22 = vpack.c.bf16 %v1747_v18, %v1741_v17  ;;  %v1855_v17 = vld [vmem:[#allocation9 + $0x820] sm:$0xff]  ;;  %v1862_v18 = vld [vmem:[#allocation9 + $0x858] sm:$0xff] }
 0x37d   :  { %3689 = vmatprep.subr.bf16.mxu1 %v3688_v23  ;;  %v3724_v23 = vpack.c.bf16 %v1760_v21, %v1754_v19  ;;  %v1868_v19 = vld [vmem:[#allocation9 + $0x888] sm:$0xff] }
 0x380   :  { %3691 = vmatpush1.bf16.msra.mxu1 %v3690_v28  ;;  %v3726_v28 = vpack.c.bf16 %v1759_v24, %v1753_v20  ;;  %v1867_v20 = vld [vmem:[#allocation9 + $0x880] sm:$0xff]  ;;  %v1874_v24 = vld [vmem:[#allocation9 + $0x8b8] sm:$0xff] }
 0x381   :  { %3693 = vmatprep.subr.bf16.mxu1 %v3692_v44  ;;  %v3728_v44 = vpack.c.bf16 %v1772_v34, %v1766_v12  ;;  %v1880_v12 = vld [vmem:[#allocation9 + $0x8e8] sm:$0xff] }
 0x384   :  { %3695 = vmatpush1.bf16.msra.mxu1 %v3694_v40  ;;  %v3730_v40 = vpack.c.bf16 %v1771_v36, %v1765_v58  ;;  %v1879_v58 = vld [vmem:[#allocation9 + $0x8e0] sm:$0xff] }
 0x385   :  { %3697 = vmatprep.subr.bf16.mxu1 %v3696_v41  ;;  %v3732_v41 = vpack.c.bf16 %v1784_v38, %v1778_v37  ;;  %v2363_v36 = vld [vmem:[#allocation12 + $0x80] sm:$0xff]  ;;  %v2364_v37 = vld [vmem:[#allocation12 + $0x88] sm:$0xff] }
 0x388   :  { %3699 = vmatpush1.bf16.msra.mxu1 %v3698_v46  ;;  %v3734_v46 = vpack.c.bf16 %v1783_v42, %v1777_v10  ;;  %v2348_v10 = vld [vmem:[#allocation12 + $0x8] sm:$0xff]  ;;  %v2365_v42 = vld [vmem:[#allocation12 + $0x90] sm:$0xff] }
 0x389   :  { %3701 = vmatprep.subr.bf16.mxu1 %v3700_v47  ;;  %v3736_v47 = vpack.c.bf16 %v1796_v14, %v1790_v43  ;;  %v2366_v43 = vld [vmem:[#allocation12 + $0x98] sm:$0xff] }
 0x38c   :  { %3703 = vmatpush1.bf16.msra.mxu1 %v3702_v53  ;;  %v3738_v53 = vpack.c.bf16 %v1795_v50, %v1789_v48  ;;  %v2350_v48 = vld [vmem:[#allocation12 + $0x18] sm:$0xff]  ;;  %v2367_v50 = vld [vmem:[#allocation12 + $0xa0] sm:$0xff] }
 0x38d   :  { %3705 = vmatprep.subr.bf16.mxu1 %v3704_v54  ;;  %v3740_v54 = vpack.c.bf16 %v1808_v52, %v1802_v51  ;;  %v2368_v51 = vld [vmem:[#allocation12 + $0xa8] sm:$0xff] }
 0x390   :  { %3707 = vmatpush1.bf16.msra.mxu1 %v3706_v49  ;;  %v3742_v49 = vpack.c.bf16 %v1807_v55, %v1801_v56  ;;  %v2352_v56 = vld [vmem:[#allocation12 + $0x28] sm:$0xff]  ;;  %v2369_v55 = vld [vmem:[#allocation12 + $0xb0] sm:$0xff] }
 0x391   :  { %3709 = vmatprep.subr.bf16.mxu1 %v3708_v16  ;;  %v3744_v16 = vpack.c.bf16 %v1820_v31, %v1814_v29  ;;  %v2370_v29 = vld [vmem:[#allocation12 + $0xb8] sm:$0xff] }
 0x394   :  { %3711 = vmatpush1.bf16.msra.mxu1 %v3710_v30  ;;  %v3746_v30 = vpack.c.bf16 %v1819_v62, %v1813_v60  ;;  %v2354_v60 = vld [vmem:[#allocation12 + $0x38] sm:$0xff]  ;;  %v2371_v62 = vld [vmem:[#allocation12 + $0xc0] sm:$0xff] }
 0x395   :  { %3713 = vmatprep.subr.bf16.mxu1 %v3712_v1  ;;  %v3748_v1 = vpack.c.bf16 %v1832_v39, %v1826_v27  ;;  %v2372_v27 = vld [vmem:[#allocation12 + $0xc8] sm:$0xff] }
 0x398   :  { %3715 = vmatpush1.bf16.msra.mxu1 %v3714_v7  ;;  %v3752_v7 = vpack.c.bf16 %v1844_v6, %v1838_v5 }
 0x399   :  { %3717 = vmatprep.subr.bf16.mxu1 %v3716_v8  ;;  %v1837_v8 = vld [vmem:[#allocation9 + $0x790] sm:$0xff] }
 0x39a   :  { %v3754_v15 = vpack.c.bf16 %v1843_v11, %v1837_v8  ;;  %v2375_v8 = vld [vmem:[#allocation12 + $0xe0] sm:$0xff]  ;;  %v2376_v11 = vld [vmem:[#allocation12 + $0xe8] sm:$0xff] }
 0x39c   :  { %3719 = vmatpush1.bf16.msra.mxu1 %v3718_v25  ;;  %v3756_v25 = vpack.c.bf16 %v1856_v2, %v1850_v13  ;;  %v3888_v2 = vpack.c.bf16 %v2376_v11, %v2375_v8  ;;  %v2392_v8 = vld [vmem:[#allocation12 + $0x168] sm:$0xff] }
 0x39d   :  { %3721 = vmatprep.subr.bf16.mxu1 %v3720_v45  ;;  %v1849_v45 = vld [vmem:[#allocation9 + $0x7f0] sm:$0xff] }
 0x39e   :  { %v3758_v21 = vpack.c.bf16 %v1855_v17, %v1849_v45  ;;  %v2377_v45 = vld [vmem:[#allocation12 + $0xf0] sm:$0xff]  ;;  %v2378_v17 = vld [vmem:[#allocation12 + $0xf8] sm:$0xff] }
 0x3a0   :  { %3723 = vmatpush1.bf16.msra.mxu1 %v3722_v22  ;;  %v3760_v22 = vpack.c.bf16 %v1868_v19, %v1862_v18  ;;  %v3892_v19 = vpack.c.bf16 %v2378_v17, %v2377_v45  ;;  %v2394_v45 = vld [vmem:[#allocation12 + $0x178] sm:$0xff] }
 0x3a1   :  { %3725 = vmatprep.subr.bf16.mxu1 %v3724_v23  ;;  %v1861_v23 = vld [vmem:[#allocation9 + $0x850] sm:$0xff] }
 0x3a2   :  { %v3762_v34 = vpack.c.bf16 %v1867_v20, %v1861_v23  ;;  %v2427_v23 = vld [vmem:[#allocation12 + $0x280] sm:$0xff]  ;;  %v2428_v20 = vld [vmem:[#allocation12 + $0x288] sm:$0xff] }
 0x3a4   :  { %3727 = vmatpush1.bf16.msra.mxu1 %v3726_v28  ;;  %v3764_v28 = vpack.c.bf16 %v1880_v12, %v1874_v24  ;;  %v3928_v12 = vpack.c.bf16 %v2428_v20, %v2427_v23 }
 0x3a5   :  { %3729 = vmatprep.subr.bf16.mxu1 %v3728_v44  ;;  %v1873_v44 = vld [vmem:[#allocation9 + $0x8b0] sm:$0xff] }
 0x3a6   :  { %v3766_v38 = vpack.c.bf16 %v1879_v58, %v1873_v44  ;;  %v2379_v44 = vld [vmem:[#allocation12 + $0x100] sm:$0xff] }
 0x3a8   :  { %3731 = vmatpush1.bf16.msra.mxu1 %v3730_v40  ;;  %v3864_v40 = vpack.c.bf16 %v2364_v37, %v2363_v36  ;;  %v2380_v36 = vld [vmem:[#allocation12 + $0x108] sm:$0xff]  ;;  %v2397_v37 = vld [vmem:[#allocation12 + $0x190] sm:$0xff] }
 0x3a9   :  { %3733 = vmatprep.subr.bf16.mxu1 %v3732_v41  ;;  %v2347_v41 = vld [vmem:[#allocation12] sm:$0xff] }
 0x3aa   :  { %v3866_v14 = vpack.c.bf16 %v2348_v10, %v2347_v41  ;;  %v2381_v10 = vld [vmem:[#allocation12 + $0x110] sm:$0xff] }
 0x3ac   :  { %3735 = vmatpush1.bf16.msra.mxu1 %v3734_v46  ;;  %v3868_v46 = vpack.c.bf16 %v2366_v43, %v2365_v42  ;;  %v2382_v42 = vld [vmem:[#allocation12 + $0x118] sm:$0xff]  ;;  %v2399_v43 = vld [vmem:[#allocation12 + $0x1a0] sm:$0xff] }
 0x3ad   :  { %3737 = vmatprep.subr.bf16.mxu1 %v3736_v47  ;;  %v2349_v47 = vld [vmem:[#allocation12 + $0x10] sm:$0xff] }
 0x3ae   :  { %v3870_v52 = vpack.c.bf16 %v2350_v48, %v2349_v47  ;;  %v2383_v48 = vld [vmem:[#allocation12 + $0x120] sm:$0xff] }
 0x3af   :  { %2122 = vmatmul.mubr.f32.vlgmr.msra.gmra.mrb[14].mxu1 %v4568_v26  ;;  %v3750_v26 = vpack.c.bf16 %v1831_v4, %v1825_v3  ;;  %v2373_v3 = vld [vmem:[#allocation12 + $0xd0] sm:$0xff]  ;;  %v2374_v4 = vld [vmem:[#allocation12 + $0xd8] sm:$0xff] }
 0x3b0   :  { %3739 = vmatpush1.bf16.msra.mxu1 %v3738_v53  ;;  %2192 = vmatprep.mubr.f32.mxu1 %v4275_v0  ;;  %v3872_v53 = vpack.c.bf16 %v2368_v51, %v2367_v50  ;;  %v3884_v6 = vpack.c.bf16 %v2374_v4, %v2373_v3  ;;  %v2384_v50 = vld [vmem:[#allocation12 + $0x128] sm:$0xff]  ;;  %v2401_v51 = vld [vmem:[#allocation12 + $0x1b0] sm:$0xff]  ;;  %v2390_v3 = vld [vmem:[#allocation12 + $0x158] sm:$0xff] }
 0x3b1   :  { %3741 = vmatprep.subr.bf16.mxu1 %v3740_v54  ;;  %v2351_v54 = vld [vmem:[#allocation12 + $0x20] sm:$0xff] }
 0x3b2   :  { %v3874_v31 = vpack.c.bf16 %v2352_v56, %v2351_v54  ;;  %v2385_v56 = vld [vmem:[#allocation12 + $0x130] sm:$0xff]  ;;  %v2407_v4 = vld [vmem:[#allocation12 + $0x1e0] sm:$0xff] }
 0x3b4   :  { %3743 = vmatpush1.bf16.msra.mxu1 %v3742_v49  ;;  %v3876_v49 = vpack.c.bf16 %v2370_v29, %v2369_v55  ;;  %v2386_v55 = vld [vmem:[#allocation12 + $0x138] sm:$0xff]  ;;  %v2403_v29 = vld [vmem:[#allocation12 + $0x1c0] sm:$0xff] }
 0x3b5   :  { %3745 = vmatprep.subr.bf16.mxu1 %v3744_v16  ;;  %v2353_v16 = vld [vmem:[#allocation12 + $0x30] sm:$0xff] }
 0x3b6   :  { %v3878_v39 = vpack.c.bf16 %v2354_v60, %v2353_v16  ;;  %v2387_v60 = vld [vmem:[#allocation12 + $0x140] sm:$0xff] }
 0x3b8   :  { %3747 = vmatpush1.bf16.msra.mxu1 %v3746_v30  ;;  %v2355_v30 = vld [vmem:[#allocation12 + $0x40] sm:$0xff] }
 0x3b9   :  { %3749 = vmatprep.subr.bf16.mxu1 %v3748_v1  ;;  %v2356_v1 = vld [vmem:[#allocation12 + $0x48] sm:$0xff] }
 0x3ba   :  { %v3882_v5 = vpack.c.bf16 %v2356_v1, %v2355_v30  ;;  %v2389_v1 = vld [vmem:[#allocation12 + $0x150] sm:$0xff] }
 0x3bc   :  { %3751 = vmatpush1.bf16.msra.mxu1 %v3750_v26  ;;  %v2357_v26 = vld [vmem:[#allocation12 + $0x50] sm:$0xff] }
 0x3bd   :  { %3753 = vmatprep.subr.bf16.mxu1 %v3752_v7  ;;  %v2358_v7 = vld [vmem:[#allocation12 + $0x58] sm:$0xff] }
 0x3be   :  { %v3886_v13 = vpack.c.bf16 %v2358_v7, %v2357_v26  ;;  %v2391_v7 = vld [vmem:[#allocation12 + $0x160] sm:$0xff] }
 0x3bf   :  { %v3922_v11 = vpack.c.bf16 %v2392_v8, %v2391_v7  ;;  %v2423_v7 = vld [vmem:[#allocation12 + $0x260] sm:$0xff]  ;;  %v2424_v8 = vld [vmem:[#allocation12 + $0x268] sm:$0xff] }
 0x3c0   :  { %3755 = vmatpush1.bf16.msra.mxu1 %v3754_v15  ;;  %v2359_v15 = vld [vmem:[#allocation12 + $0x60] sm:$0xff] }
 0x3c1   :  { %3757 = vmatprep.subr.bf16.mxu1 %v3756_v25  ;;  %v2360_v25 = vld [vmem:[#allocation12 + $0x68] sm:$0xff] }
 0x3c2   :  { %v3890_v18 = vpack.c.bf16 %v2360_v25, %v2359_v15  ;;  %v2393_v25 = vld [vmem:[#allocation12 + $0x170] sm:$0xff] }
 0x3c3   :  { %v3926_v17 = vpack.c.bf16 %v2394_v45, %v2393_v25  ;;  %v2425_v45 = vld [vmem:[#allocation12 + $0x270] sm:$0xff] }
 0x3c4   :  { %3759 = vmatpush1.bf16.msra.mxu1 %v3758_v21  ;;  %v2361_v21 = vld [vmem:[#allocation12 + $0x70] sm:$0xff] }
 0x3c5   :  { %3761 = vmatprep.subr.bf16.mxu1 %v3760_v22  ;;  %v2362_v22 = vld [vmem:[#allocation12 + $0x78] sm:$0xff] }
 0x3c6   :  { %v3894_v24 = vpack.c.bf16 %v2362_v22, %v2361_v21 }
 0x3c8   :  { %3763 = vmatpush1.bf16.msra.mxu1 %v3762_v34  ;;  %v2395_v34 = vld [vmem:[#allocation12 + $0x180] sm:$0xff] }
 0x3c9   :  { %3765 = vmatprep.subr.bf16.mxu1 %v3764_v28  ;;  %v2396_v28 = vld [vmem:[#allocation12 + $0x188] sm:$0xff] }
 0x3ca   :  { %v3896_v58 = vpack.c.bf16 %v2396_v28, %v2395_v34  ;;  %v2411_v28 = vld [vmem:[#allocation12 + $0x200] sm:$0xff] }
 0x3cc   :  { %3767 = vmatpush1.bf16.msra.mxu1 %v3766_v38  ;;  %v2398_v38 = vld [vmem:[#allocation12 + $0x198] sm:$0xff]  ;;  %3897 = vmatprep.subr.bf16.mxu0 %v3896_v58 }
 0x3cd   :  { %3865 = vmatprep.subr.bf16.mxu1 %v3864_v40  ;;  %v3898_v40 = vpack.c.bf16 %v2380_v36, %v2379_v44  ;;  %v3900_v41 = vpack.c.bf16 %v2398_v38, %v2397_v37  ;;  %v2412_v44 = vld [vmem:[#allocation12 + $0x208] sm:$0xff]  ;;  %v2429_v37 = vld [vmem:[#allocation12 + $0x290] sm:$0xff]  ;;  %v2430_v38 = vld [vmem:[#allocation12 + $0x298] sm:$0xff] }
 0x3cf   :  { %2193 = vmatmul.mubr.f32.vlgmr.msra.gmra.mrb[14].mxu1 %v4577_v63  ;;  %v3880_v63 = vpack.c.bf16 %v2372_v27, %v2371_v62  ;;  %3899 = vmatpush3.bf16.msra.mxu0 %v3898_v40  ;;  %v2388_v62 = vld [vmem:[#allocation12 + $0x148] sm:$0xff]  ;;  %v2405_v27 = vld [vmem:[#allocation12 + $0x1d0] sm:$0xff]  ;;  %v3930_v40 = vpack.c.bf16 %v2412_v44, %v2411_v28 }
 0x3d0   :  { %3867 = vmatpush3.bf16.msra.mxu1 %v3866_v14  ;;  %v2400_v14 = vld [vmem:[#allocation12 + $0x1a8] sm:$0xff]  ;;  %3901 = vmatprep.subr.bf16.mxu0 %v3900_v41 }
 0x3d1   :  { %3869 = vmatprep.subr.bf16.mxu1 %v3868_v46  ;;  %v3902_v46 = vpack.c.bf16 %v2382_v42, %v2381_v10  ;;  %v3904_v47 = vpack.c.bf16 %v2400_v14, %v2399_v43  ;;  %v2413_v10 = vld [vmem:[#allocation12 + $0x210] sm:$0xff]  ;;  %v2414_v42 = vld [vmem:[#allocation12 + $0x218] sm:$0xff]  ;;  %v2432_v14 = vld [vmem:[#allocation12 + $0x2a8] sm:$0xff] }
 0x3d3   :  { %3903 = vmatpush3.bf16.msra.mxu0 %v3902_v46  ;;  %v3934_v46 = vpack.c.bf16 %v2414_v42, %v2413_v10  ;;  %v2669_v42 = vld [vmem:[#allocation15 + $0x40] sm:$0xff] }
 0x3d4   :  { %3871 = vmatpush3.bf16.msra.mxu1 %v3870_v52  ;;  %v2402_v52 = vld [vmem:[#allocation12 + $0x1b8] sm:$0xff]  ;;  %3905 = vmatprep.subr.bf16.mxu0 %v3904_v47 }
 0x3d5   :  { %3873 = vmatprep.subr.bf16.mxu1 %v3872_v53  ;;  %v3906_v53 = vpack.c.bf16 %v2384_v50, %v2383_v48  ;;  %v3908_v54 = vpack.c.bf16 %v2402_v52, %v2401_v51  ;;  %v2415_v48 = vld [vmem:[#allocation12 + $0x220] sm:$0xff]  ;;  %v2416_v50 = vld [vmem:[#allocation12 + $0x228] sm:$0xff]  ;;  %v2433_v51 = vld [vmem:[#allocation12 + $0x2b0] sm:$0xff] }
 0x3d6   :  { %v2434_v52 = vld [vmem:[#allocation12 + $0x2b8] sm:$0xff] }
 0x3d7   :  { %3907 = vmatpush3.bf16.msra.mxu0 %v3906_v53  ;;  %v3938_v53 = vpack.c.bf16 %v2416_v50, %v2415_v48  ;;  %v2673_v48 = vld [vmem:[#allocation15 + $0x60] sm:$0xff]  ;;  %v2674_v50 = vld [vmem:[#allocation15 + $0x68] sm:$0xff] }
 0x3d8   :  { %3875 = vmatpush3.bf16.msra.mxu1 %v3874_v31  ;;  %v2404_v31 = vld [vmem:[#allocation12 + $0x1c8] sm:$0xff]  ;;  %3909 = vmatprep.subr.bf16.mxu0 %v3908_v54  ;;  %v3940_v54 = vpack.c.bf16 %v2434_v52, %v2433_v51  ;;  %v3979_v51 = vpack.c.bf16 %v2674_v50, %v2673_v48  ;;  %v2675_v52 = vld [vmem:[#allocation15 + $0x70] sm:$0xff] }
 0x3d9   :  { %3877 = vmatprep.subr.bf16.mxu1 %v3876_v49  ;;  %v3910_v49 = vpack.c.bf16 %v2386_v55, %v2385_v56  ;;  %v3912_v16 = vpack.c.bf16 %v2404_v31, %v2403_v29  ;;  %v2417_v56 = vld [vmem:[#allocation12 + $0x230] sm:$0xff]  ;;  %v2418_v55 = vld [vmem:[#allocation12 + $0x238] sm:$0xff]  ;;  %v2435_v29 = vld [vmem:[#allocation12 + $0x2c0] sm:$0xff] }
 0x3da   :  { %v2436_v31 = vld [vmem:[#allocation12 + $0x2c8] sm:$0xff] }
 0x3db   :  { %3911 = vmatpush3.bf16.msra.mxu0 %v3910_v49  ;;  %v3942_v49 = vpack.c.bf16 %v2418_v55, %v2417_v56 }
 0x3dc   :  { %3879 = vmatpush3.bf16.msra.mxu1 %v3878_v39  ;;  %v2406_v39 = vld [vmem:[#allocation12 + $0x1d8] sm:$0xff]  ;;  %3913 = vmatprep.subr.bf16.mxu0 %v3912_v16  ;;  %v3944_v16 = vpack.c.bf16 %v2436_v31, %v2435_v29 }
 0x3dd   :  { %3881 = vmatprep.subr.bf16.mxu1 %v3880_v63  ;;  %v3914_v63 = vpack.c.bf16 %v2388_v62, %v2387_v60  ;;  %v3916_v30 = vpack.c.bf16 %v2406_v39, %v2405_v27  ;;  %v2419_v60 = vld [vmem:[#allocation12 + $0x240] sm:$0xff]  ;;  %v2420_v62 = vld [vmem:[#allocation12 + $0x248] sm:$0xff]  ;;  %v2437_v27 = vld [vmem:[#allocation12 + $0x2d0] sm:$0xff] }
 0x3de   :  { %v2438_v39 = vld [vmem:[#allocation12 + $0x2d8] sm:$0xff] }
 0x3df   :  { %3915 = vmatpush3.bf16.msra.mxu0 %v3914_v63  ;;  %v3946_v63 = vpack.c.bf16 %v2420_v62, %v2419_v60  ;;  %v2765_v60 = vld [vmem:[#allocation13] ss:$0 sm:$0xff] }
 0x3e0   :  { %3883 = vmatpush3.bf16.msra.mxu1 %v3882_v5  ;;  %v2408_v5 = vld [vmem:[#allocation12 + $0x1e8] sm:$0xff]  ;;  %3917 = vmatprep.subr.bf16.mxu0 %v3916_v30  ;;  %v3948_v30 = vpack.c.bf16 %v2438_v39, %v2437_v27 }
 0x3e1   :  { %3885 = vmatprep.subr.bf16.mxu1 %v3884_v6  ;;  %v3918_v6 = vpack.c.bf16 %v2390_v3, %v2389_v1  ;;  %v3920_v26 = vpack.c.bf16 %v2408_v5, %v2407_v4  ;;  %v2421_v1 = vld [vmem:[#allocation12 + $0x250] sm:$0xff]  ;;  %v2422_v3 = vld [vmem:[#allocation12 + $0x258] sm:$0xff]  ;;  %v2439_v4 = vld [vmem:[#allocation12 + $0x2e0] sm:$0xff] }
 0x3e2   :  { %v2440_v5 = vld [vmem:[#allocation12 + $0x2e8] sm:$0xff] }
 0x3e3   :  { %3919 = vmatpush3.bf16.msra.mxu0 %v3918_v6  ;;  %v3950_v6 = vpack.c.bf16 %v2422_v3, %v2421_v1 }
 0x3e4   :  { %3887 = vmatpush3.bf16.msra.mxu1 %v3886_v13  ;;  %3921 = vmatprep.subr.bf16.mxu0 %v3920_v26  ;;  %v2409_v13 = vld [vmem:[#allocation12 + $0x1f0] sm:$0xff]  ;;  %v3952_v26 = vpack.c.bf16 %v2440_v5, %v2439_v4  ;;  %v2766_v4 = vld [vmem:[#allocation16] ss:$0 sm:$0xff] }
 0x3e5   :  { %3889 = vmatprep.subr.bf16.mxu1 %v3888_v2  ;;  %v2410_v2 = vld [vmem:[#allocation12 + $0x1f8] sm:$0xff] }
 0x3e6   :  { %v3924_v15 = vpack.c.bf16 %v2410_v2, %v2409_v13  ;;  %v2442_v13 = vld [vmem:[#allocation12 + $0x2f8] sm:$0xff]  ;;  %v3954_v2 = vpack.c.bf16 %v2424_v8, %v2423_v7 }
 0x3e7   :  { %3923 = vmatpush3.bf16.msra.mxu0 %v3922_v11  ;;  %v2441_v11 = vld [vmem:[#allocation12 + $0x2f0] sm:$0xff] }
 0x3e8   :  { %3891 = vmatpush3.bf16.msra.mxu1 %v3890_v18  ;;  %3925 = vmatprep.subr.bf16.mxu0 %v3924_v15  ;;  %v4585_v18 = vld [vmem:[#allocation10] sm:$0x3f]  ;;  %v3956_v25 = vpack.c.bf16 %v2442_v13, %v2441_v11 }
 0x3e9   :  { %3893 = vmatprep.subr.bf16.mxu1 %v3892_v19  ;;  %v1888_v19 = vrot.slane %v4585_v18, %v4474_v33  ;;  %v1892_v21 = vrot.slane %v4585_v18, %v4479_v35  ;;  %v1908_v22 = vrot.slane %v4585_v18, %v317_v9  ;;  %v3932_v35 = vpack.c.bf16 %v2430_v38, %v2429_v37  ;;  %v2431_v9 = vld [vmem:[#allocation12 + $0x2a0] sm:$0xff]  ;;  %v2663_v37 = vld [vmem:[#allocation15 + $0x10] sm:$0xff] }
 0x3ea   :  { %v3936_v47 = vpack.c.bf16 %v2432_v14, %v2431_v9  ;;  %v1904_v15 = vrot.slane %v4585_v18, %v313_v57  ;;  %v4276_v38 = vmov 0.0|0.0   ;;  %v2671_v14 = vld [vmem:[#allocation15 + $0x50] sm:$0xff] }
 0x3eb   :  { %3927 = vmatpush3.bf16.msra.mxu0 %v3926_v17  ;;  %v2426_v17 = vld [vmem:[#allocation12 + $0x278] sm:$0xff] }
 0x3ec   :  { %3895 = vmatpush3.bf16.msra.mxu1 %v3894_v24  ;;  %3960 = vmatprep.subr.bf16.mxu0 %v4276_v38 }
 0x3ed   :  { %3929 = vmatprep.subr.bf16.mxu1 %v3928_v12 }
 0x442   :  { %v2052_v23 = vpop.f32.mrb[12].mxu1  ;;  %v4594_v20 = vpop.f32.mrb[6].mxu0 }
 0x443   :  { %v3986_v24 = vadd.f32 %v2052_v23, %v1888_v19  ;;  %v2054_v12 = vpop.f32.mrb[13].mxu1  ;;  %v2338_v34 = vpop.f32.mrb[7].mxu0  ;;  %v3958_v19 = vpack.c.bf16 %v2426_v17, %v2425_v45  ;;  %v1896_v23 = vrot.slane %v4585_v18, %v4492_v59 }
 0x444   :  { %v3987_v58 = vadd.f32 %v2054_v12, %v1892_v21  ;;  %v3991_v36 = vadd.f32 %v2338_v34, %v1908_v22  ;;  %v3990_v21 = vadd.f32 %v4594_v20, %v1904_v15  ;;  %v2661_v20 = vld [vmem:[#allocation15] sm:$0xff] }
 0x445   :  { %v2341_v41 = vmax.f32 %v3986_v24, 0.0  ;;  %v1900_v24 = vrot.slane %v4585_v18, %v309_v61  ;;  %v2666_v61 = vld [vmem:[#allocation15 + $0x28] sm:$0xff] }
 0x446   :  { %v2342_v33 = vmax.f32 %v3987_v58, 0.0  ;;  %v2346_v43 = vmax.f32 %v3991_v36, 0.0  ;;  %v2345_v22 = vmax.f32 %v3990_v21, 0.0  ;;  %v2662_v36 = vld [vmem:[#allocation15 + $0x8] sm:$0xff]  ;;  %v3967_v18 = vpack.c.bf16 %v2666_v61, %v2665_v32 }
 0x448   :  { %2514 = vmatprep.mubr.f32.mxu1 %v2342_v33  ;;  %v3961_v33 = vpack.c.bf16 %v2662_v36, %v2661_v20 }
 0x449   :  { %2515 = vmatmul.mubr.f32.vlgmr.msra.gmra.mrb[16].mxu1 %v2341_v41  ;;  %v2667_v41 = vld [vmem:[#allocation15 + $0x30] sm:$0xff] }
 0x44a   :  { %3931 = vmatpush3.bf16.msra.mxu1 %v3930_v40  ;;  %2654 = vmatprep.mubr.f32.mxu1 %v2346_v43  ;;  %v2664_v40 = vld [vmem:[#allocation15 + $0x18] sm:$0xff]  ;;  %v2670_v43 = vld [vmem:[#allocation15 + $0x48] sm:$0xff] }
 0x44b   :  { %3933 = vmatprep.subr.bf16.mxu1 %v3932_v35  ;;  %v3964_v59 = vpack.c.bf16 %v2664_v40, %v2663_v37  ;;  %v2668_v35 = vld [vmem:[#allocation15 + $0x38] sm:$0xff]  ;;  %v3973_v9 = vpack.c.bf16 %v2670_v43, %v2669_v42 }
 0x44c   :  { %v3970_v10 = vpack.c.bf16 %v2668_v35, %v2667_v41 }
 0x44e   :  { %3935 = vmatpush3.bf16.msra.mxu1 %v3934_v46  ;;  %v2672_v46 = vld [vmem:[#allocation15 + $0x58] sm:$0xff] }
 0x44f   :  { %3937 = vmatprep.subr.bf16.mxu1 %v3936_v47  ;;  %v3976_v47 = vpack.c.bf16 %v2672_v46, %v2671_v14 }
 0x452   :  { %3939 = vmatpush3.bf16.msra.mxu1 %v3938_v53  ;;  %v2676_v53 = vld [vmem:[#allocation15 + $0x78] sm:$0xff] }
 0x453   :  { %3941 = vmatprep.subr.bf16.mxu1 %v3940_v54  ;;  %v3982_v54 = vpack.c.bf16 %v2676_v53, %v2675_v52 }
 0x456   :  { %3943 = vmatpush3.bf16.msra.mxu1 %v3942_v49 }
 0x457   :  { %3945 = vmatprep.subr.bf16.mxu1 %v3944_v16 }
 0x45a   :  { %3947 = vmatpush3.bf16.msra.mxu1 %v3946_v63 }
 0x45b   :  { %3949 = vmatprep.subr.bf16.mxu1 %v3948_v30 }
 0x45e   :  { %3951 = vmatpush3.bf16.msra.mxu1 %v3950_v6 }
 0x45f   :  { %3953 = vmatprep.subr.bf16.mxu1 %v3952_v26 }
 0x462   :  { %3955 = vmatpush3.bf16.msra.mxu1 %v3954_v2 }
 0x463   :  { %3957 = vmatprep.subr.bf16.mxu1 %v3956_v25 }
 0x466   :  { %3959 = vmatpush3.bf16.msra.mxu1 %v3958_v19 }
 0x469   :  { %2655 = vmatmul.mubr.f32.vlgmr.msra.gmra.mrb[18].mxu1 %v2345_v22 }
 0x4a2   :  { %v2194_v57 = vpop.f32.mrb[14].mxu1 }
 0x4a3   :  { %v3988_v12 = vadd.f32 %v2194_v57, %v1896_v23  ;;  %v2196_v34 = vpop.f32.mrb[15].mxu1 }
 0x4a4   :  { %v3989_v28 = vadd.f32 %v2196_v34, %v1900_v24 }
 0x4a5   :  { %v2343_v58 = vmax.f32 %v3988_v12, 0.0 }
 0x4a6   :  { %v2344_v44 = vmax.f32 %v3989_v28, 0.0 }
 0x4a8   :  { %2584 = vmatprep.mubr.f32.mxu0 %v2344_v44 }
 0x4a9   :  { %2585 = vmatmul.mubr.f32.vlgmr.msra.gmra.mrb[8].mxu0 %v2343_v58 }
 0x4aa   :  { %3962 = vmatpush3.bf16.msra.mxu0 %v3961_v33  ;;  %3061 = vmatprep.mubr.msk.f32.mxu0 %vm4277_vm0, %v4275_v0 }
 0x4ab   :  { %3963 = vmatprep.subr.bf16.mxu0 %v4276_v38 }
 0x4ae   :  { %3965 = vmatpush3.bf16.msra.mxu0 %v3964_v59 }
 0x4af   :  { %3966 = vmatprep.subr.bf16.mxu0 %v4276_v38 }
 0x4b2   :  { %3968 = vmatpush3.bf16.msra.mxu0 %v3967_v18 }
 0x4b3   :  { %3969 = vmatprep.subr.bf16.mxu0 %v4276_v38 }
 0x4b6   :  { %3971 = vmatpush3.bf16.msra.mxu0 %v3970_v10 }
 0x4b7   :  { %3972 = vmatprep.subr.bf16.mxu0 %v4276_v38 }
 0x4ba   :  { %3974 = vmatpush3.bf16.msra.mxu0 %v3973_v9 }
 0x4bb   :  { %3975 = vmatprep.subr.bf16.mxu0 %v4276_v38 }
 0x4be   :  { %3977 = vmatpush3.bf16.msra.mxu0 %v3976_v47 }
 0x4bf   :  { %3978 = vmatprep.subr.bf16.mxu0 %v4276_v38 }
 0x4c2   :  { %3980 = vmatpush3.bf16.msra.mxu0 %v3979_v51 }
 0x4c3   :  { %3981 = vmatprep.subr.bf16.mxu0 %v4276_v38 }
 0x4c6   :  { %3983 = vmatpush3.bf16.msra.mxu0 %v3982_v54 }
 0x51c   :  { %v2939_v56 = vpop.f32.mrb[16].mxu1 }
 0x51d   :  { %v2940_v55 = vpop.f32.mrb[17].mxu1 }
 0x51e   :  { %v2941_v29 = vadd.f32 %v2940_v55, %v2939_v56 }
 0x520   :  { %v2517_v39 = vadd.f32 %v2941_v29, %v2765_v60 }
 0x53c   :  { %v3009_v31 = vpop.f32.mrb[18].mxu1 }
 0x53d   :  { %v3010_v49 = vpop.f32.mrb[19].mxu1 }
 0x53e   :  { %v3011_v16 = vadd.f32 %v3010_v49, %v3009_v31 }
 0x57c   :  { %v2974_v62 = vpop.f32.mrb[8].mxu0 }
 0x57d   :  { %v2975_v27 = vpop.f32.mrb[9].mxu0 }
 0x57e   :  { %v2976_v63 = vadd.f32 %v2975_v27, %v2974_v62 }
 0x580   :  { %v2587_v30 = vadd.f32 %v2976_v63, %v2517_v39 }
 0x582   :  { %v2657_v1 = vadd.f32 %v3011_v16, %v2587_v30 }
 0x584   :  { %v2660_v3 = vmax.f32 %v2657_v1, 0.0 }
 0x586   :  { %3062 = vmatmul.mubr.f32.vlgmr.msra.gmra.mrb[10].mxu0 %v2660_v3 }
 0x659   :  { %v2750_v5 = vpop.f32.mrb[10].mxu0 }
 0x65a   :  { %v2751_v6 = vadd.f32 %v2766_v4, %v2750_v5  ;;  %v3063_v26 = vpop.f32.mrb[11].mxu0 }
 0x65c   :  { %2754 = vst [vmem:[%s4620_s11] sm:$0xff] %v2751_v6 }
 0x65d   :  { %2759 = vsyncpa [#allocation3], 1 }
 0x65e   :  { %2760 = vsyncpa [#allocation5], 1 }
 0x65f   :  { %2761 = vsyncpa [#allocation8], 1 }
 0x660   :  { %2762 = vsyncpa [#allocation11], 1 }
 0x661   :  { %2763 = vsyncpa [#allocation14], 1 }
 0x662   :  { %2764 = vsyncpa [#allocation17], 1 }

</bundles_post_ra>
